<compile_context>
chip_gen: v7x
topology: tpu7x:2x2x1
jax: 0.10.0
libtpu: 0.0.40
codegen_flags: <defaults>
</compile_context>

<pallas_src>
import functools

import jax
import jax.numpy as jnp
from jax.experimental import pallas as pl
from jax.experimental.pallas import tpu as pltpu

_NEG_MASK = -1e9    # finite "masked key" value (avoids -inf -> NaN rows)
_NEG_INIT = -1e30   # finite running-max init


@functools.lru_cache(maxsize=None)
def _tpu_defaults():
    """Generation-aware VMEM budget + tile-size preferences."""
    kind = ""
    try:
        kind = jax.devices()[0].device_kind.lower()
    except Exception:
        pass
    mib = 2 ** 20
    if "v7" in kind or "7x" in kind:
        # 64 MiB physical VMEM per TC, 2 TCs, 256-wide MXU -> cap VMEM, shrink LN tm.
        return dict(vmem=48 * mib, tm=256, ln_tm=128, tn=512, tk=512, tq=256, tkv=256)
    if "v6" in kind:
        # 128 MiB VMEM, 256-wide MXU -> big tiles, big kv tiles.
        return dict(vmem=96 * mib, tm=256, ln_tm=256, tn=512, tk=512, tq=256, tkv=512)
    if "v5 lite" in kind or "v5e" in kind or "v5litepod" in kind:
        # 128 MiB VMEM, 128-wide MXU, ~0.82 TB/s HBM -> moderate kv tiles.
        return dict(vmem=96 * mib, tm=256, ln_tm=256, tn=512, tk=512, tq=128, tkv=256)
    if "v5" in kind or "v4" in kind:
        return dict(vmem=64 * mib, tm=256, ln_tm=256, tn=512, tk=512, tq=128, tkv=256)
    # unknown generation / interpreter: leave the compiler's scoped-VMEM default.
    return dict(vmem=None, tm=256, ln_tm=128, tn=512, tk=512, tq=128, tkv=128)


def _pick_tile(dim, preferred, align):
    """Largest tile <= preferred that divides dim and is a multiple of align.
    Falls back to the full dim (a full-extent block is always legal)."""
    start = (min(preferred, dim) // align) * align
    for t in range(start, 0, -align):
        if dim % t == 0:
            return t
    return dim


# --------------------------- tiled linear kernels ---------------------------

def _matmul_bias_kernel(x_ref, w_ref, b_ref, o_ref, acc_ref, *, activation):
    k = pl.program_id(2)

    @pl.when(k == 0)
    def _init():
        acc_ref[...] = jnp.zeros_like(acc_ref)

    acc_ref[...] += jnp.dot(x_ref[...], w_ref[...],
                            preferred_element_type=jnp.float32)

    @pl.when(k == pl.num_programs(2) - 1)
    def _finalize():
        y = acc_ref[...] + b_ref[...]
        if activation == "relu":
            y = jnp.maximum(y, 0.0)
        o_ref[...] = y.astype(o_ref.dtype)


def linear(x, w, b, activation=None, out_dtype=jnp.float32):
    """y = act(x @ w + b). x:(M,K); w:(K,N) (= transpose of torch (N,K)); b:(N,)."""
    cfg = _tpu_defaults()
    M, K = x.shape
    N = w.shape[1]
    xb = x.astype(jnp.bfloat16)
    wb = w.astype(jnp.bfloat16)
    b2 = b.astype(jnp.float32).reshape(1, N)
    tm = _pick_tile(M, cfg["tm"], 16)   # 16-row align: bf16 packs 16 sublanes/vreg
    tn = _pick_tile(N, cfg["tn"], 128)
    tk = _pick_tile(K, cfg["tk"], 128)
    grid = (M // tm, N // tn, K // tk)
    out_bytes = M * N * (2 if out_dtype == jnp.bfloat16 else 4)
    return pl.pallas_call(
        functools.partial(_matmul_bias_kernel, activation=activation),
        out_shape=jax.ShapeDtypeStruct((M, N), out_dtype),
        grid_spec=pltpu.PrefetchScalarGridSpec(
            num_scalar_prefetch=0,
            grid=grid,
            in_specs=[
                pl.BlockSpec((tm, tk), lambda i, j, k: (i, k)),
                pl.BlockSpec((tk, tn), lambda i, j, k: (k, j)),
                pl.BlockSpec((1, tn), lambda i, j, k: (0, j)),
            ],
            out_specs=pl.BlockSpec((tm, tn), lambda i, j, k: (i, j)),
            scratch_shapes=[pltpu.VMEM((tm, tn), jnp.float32)],
        ),
        compiler_params=pltpu.CompilerParams(
            dimension_semantics=("parallel", "parallel", "arbitrary"),
            vmem_limit_bytes=cfg["vmem"]),
        cost_estimate=pl.CostEstimate(
            flops=2 * M * N * K, transcendentals=0,
            bytes_accessed=int(2 * M * K + 2 * K * N + 4 * N + out_bytes)),
    )(xb, wb, b2)


def _matmul_bias_res_ln_kernel(x_ref, w_ref, b_ref, res_ref, g_ref, bt_ref,
                               o_ref, acc_ref, *, eps):
    k = pl.program_id(1)

    @pl.when(k == 0)
    def _init():
        acc_ref[...] = jnp.zeros_like(acc_ref)

    acc_ref[...] += jnp.dot(x_ref[...], w_ref[...],
                            preferred_element_type=jnp.float32)

    @pl.when(k == pl.num_programs(1) - 1)
    def _finalize():
        # dropout (eval) = identity;  out = LayerNorm(residual + (x @ w + b))
        y = acc_ref[...] + b_ref[...] + res_ref[...].astype(jnp.float32)
        mean = jnp.mean(y, axis=-1, keepdims=True)
        yc = y - mean
        var = jnp.mean(yc * yc, axis=-1, keepdims=True)
        inv = jax.lax.rsqrt(var + eps)
        o_ref[...] = (yc * inv * g_ref[...] + bt_ref[...]).astype(o_ref.dtype)


def linear_add_layernorm(x, w, b, residual, gamma, beta, eps=1e-5):
    """LayerNorm(residual + x @ w + b), fp32 statistics, epilogue fused into the
    matmul finalize step (full output row per block: tn == N).  The residual is
    streamed as bf16 (halves its HBM/VMEM footprint) and upcast in-kernel."""
    cfg = _tpu_defaults()
    M, K = x.shape
    N = w.shape[1]
    xb = x.astype(jnp.bfloat16)
    wb = w.astype(jnp.bfloat16)
    b2 = b.astype(jnp.float32).reshape(1, N)
    g2 = gamma.astype(jnp.float32).reshape(1, N)
    bt2 = beta.astype(jnp.float32).reshape(1, N)
    res = residual.astype(jnp.bfloat16)
    tk = _pick_tile(K, cfg["tk"], 128)
    tn = N  # LayerNorm statistics need the full row
    # Cap tm so the full-row slabs (res bf16 x2, out f32 x2, acc f32, x/w tiles)
    # stay within the scoped VMEM budget -- matters for very large E on v7x.
    budget = cfg["vmem"] or (32 * 2 ** 20)
    per_row = N * (2 * 2 + 2 * 4 + 4) + 2 * tk * 2
    avail = max(int(budget * 0.6) - 2 * tk * N * 2, 16 * per_row)
    cap_rows = max(16, (int(avail // per_row) // 16) * 16)
    tm = _pick_tile(M, min(cfg["ln_tm"], cap_rows), 16)
    grid = (M // tm, K // tk)
    return pl.pallas_call(
        functools.partial(_matmul_bias_res_ln_kernel, eps=eps),
        out_shape=jax.ShapeDtypeStruct((M, N), jnp.float32),
        grid_spec=pltpu.PrefetchScalarGridSpec(
            num_scalar_prefetch=0,
            grid=grid,
            in_specs=[
                pl.BlockSpec((tm, tk), lambda i, k: (i, k)),
                pl.BlockSpec((tk, tn), lambda i, k: (k, 0)),
                pl.BlockSpec((1, tn), lambda i, k: (0, 0)),
                pl.BlockSpec((tm, tn), lambda i, k: (i, 0)),    # residual (bf16)
                pl.BlockSpec((1, tn), lambda i, k: (0, 0)),     # gamma
                pl.BlockSpec((1, tn), lambda i, k: (0, 0)),     # beta
            ],
            out_specs=pl.BlockSpec((tm, tn), lambda i, k: (i, 0)),
            scratch_shapes=[pltpu.VMEM((tm, tn), jnp.float32)],
        ),
        compiler_params=pltpu.CompilerParams(
            dimension_semantics=("parallel", "arbitrary"),
            vmem_limit_bytes=cfg["vmem"]),
        cost_estimate=pl.CostEstimate(
            flops=2 * M * N * K + 8 * M * N, transcendentals=M,
            bytes_accessed=int(2 * M * K + 2 * K * N + 6 * M * N + 12 * N)),
    )(xb, wb, b2, res, g2, bt2)


# ----------------------- flash multi-head attention -----------------------

def _flash_mha_kernel(*refs, has_attn_mask, has_kpm):
    q_ref, k_ref, v_ref = refs[0], refs[1], refs[2]
    i = 3
    am_ref = None
    kpm_ref = None
    if has_attn_mask:
        am_ref = refs[i]; i += 1
    if has_kpm:
        kpm_ref = refs[i]; i += 1
    o_ref = refs[i]
    qt_scr, m_scr, l_scr, acc_scr = refs[i + 1:i + 5]

    ki = pl.program_id(2)

    @pl.when(ki == 0)
    def _init():
        # transpose q once per (head, q-tile): (tq, B, Dp) -> (B, tq, Dp)
        qt_scr[...] = jnp.transpose(q_ref[...], (1, 0, 2))
        m_scr[...] = jnp.full(m_scr.shape, _NEG_INIT, jnp.float32)
        l_scr[...] = jnp.zeros_like(l_scr)
        acc_scr[...] = jnp.zeros_like(acc_scr)

    k = jnp.transpose(k_ref[...], (1, 0, 2))     # (B, tkv, Dp) bf16
    v = jnp.transpose(v_ref[...], (1, 0, 2))     # (B, tkv, Dp) bf16

    # one batched MXU contraction over the full 128-padded head dim
    s = jnp.einsum("bqd,bkd->bqk", qt_scr[...], k,
                   preferred_element_type=jnp.float32)        # (B, tq, tkv)
    if has_attn_mask:
        s = s + am_ref[...][None, :, :]                       # (tq, tkv) bias
    if has_kpm:
        s = s + kpm_ref[...]                                  # (B, 1, tkv) bias

    m_prev = m_scr[...]                                       # (B, tq, 1)
    m_curr = jnp.max(s, axis=-1, keepdims=True)
    m_next = jnp.maximum(m_prev, m_curr)
    alpha = jnp.exp(m_prev - m_next)
    p = jnp.exp(s - m_next)                                   # (B, tq, tkv)
    l_scr[...] = alpha * l_scr[...] + jnp.sum(p, axis=-1, keepdims=True)
    acc_scr[...] = alpha * acc_scr[...] + jnp.einsum(
        "bqk,bkd->bqd", p.astype(v.dtype), v,
        preferred_element_type=jnp.float32)
    m_scr[...] = m_next

    @pl.when(ki == pl.num_programs(2) - 1)
    def _finalize():
        l = l_scr[...]
        l = jnp.where(l == 0.0, 1.0, l)          # all-masked guard
        out = acc_scr[...] * pl.reciprocal(l, approx=True)    # (B, tq, Dp)
        # single lane-dense (tq, B, Dp) store (unmasked vst, Dp multiple of 128)
        o_ref[...] = jnp.transpose(out, (1, 0, 2)).astype(o_ref.dtype)


def flash_mha(qkv, attn_bias, kpm_bias, num_heads, out_dtype=jnp.bfloat16):
    """qkv: (S, B, 3*H*Dp) with per-head 128-padded [Q|K|V] slots on the last
    axis (Q pre-scaled by 1/sqrt(D) via folded weights).
    attn_bias: (S, S) additive fp32 or None.  kpm_bias: (B, 1, S) fp32 or None."""
    cfg = _tpu_defaults()
    S, B, C = qkv.shape
    H = num_heads
    Dp = C // (3 * H)
    tq = _pick_tile(S, cfg["tq"], 16)
    tkv = _pick_tile(S, cfg["tkv"], 128)
    grid = (H, S // tq, S // tkv)
    has_am = attn_bias is not None
    has_kpm = kpm_bias is not None

    in_specs = [
        # Q / K / V heads are lane-aligned Dp-wide column blocks of the same array
        pl.BlockSpec((tq, B, Dp), lambda h, qi, ki: (qi, 0, h)),
        pl.BlockSpec((tkv, B, Dp), lambda h, qi, ki: (ki, 0, H + h)),
        pl.BlockSpec((tkv, B, Dp), lambda h, qi, ki: (ki, 0, 2 * H + h)),
    ]
    args = [qkv, qkv, qkv]
    if has_am:
        in_specs.append(pl.BlockSpec((tq, tkv), lambda h, qi, ki: (qi, ki)))
        args.append(attn_bias)
    if has_kpm:
        in_specs.append(pl.BlockSpec((B, 1, tkv), lambda h, qi, ki: (0, 0, ki)))
        args.append(kpm_bias)

    kern = functools.partial(_flash_mha_kernel,
                             has_attn_mask=has_am, has_kpm=has_kpm)
    return pl.pallas_call(
        kern,
        out_shape=jax.ShapeDtypeStruct((S, B, H * Dp), out_dtype),
        grid_spec=pltpu.PrefetchScalarGridSpec(
            num_scalar_prefetch=0,
            grid=grid,
            in_specs=in_specs,
            out_specs=pl.BlockSpec((tq, B, Dp), lambda h, qi, ki: (qi, 0, h)),
            scratch_shapes=[
                pltpu.VMEM((B, tq, Dp), jnp.bfloat16),   # q transposed (per q-tile)
                pltpu.VMEM((B, tq, 1), jnp.float32),     # running max m
                pltpu.VMEM((B, tq, 1), jnp.float32),     # running sum l
                pltpu.VMEM((B, tq, Dp), jnp.float32),    # output accumulator
            ],
        ),
        compiler_params=pltpu.CompilerParams(
            dimension_semantics=("parallel", "parallel", "arbitrary"),
            vmem_limit_bytes=cfg["vmem"]),
        cost_estimate=pl.CostEstimate(
            flops=4 * B * H * S * S * Dp, transcendentals=B * H * S * S,
            bytes_accessed=int(8 * S * B * H * Dp
                               + (4 * S * S if has_am else 0)
                               + (4 * B * S if has_kpm else 0))),
    )(*args)


# ------------------------------ layer forward ------------------------------

def prepare_params(raw, num_heads):
    """Fold the 1/sqrt(head_dim) query scaling into (wq, bq), split every
    projection per head and zero-pad the head dim to Dp = round_up(D, 128) so
    the attention kernel receives lane-aligned 128-wide per-head blocks, fuse
    Q/K/V into one (E, 3*H*Dp) matrix, and cast matmul weights to bf16 (biases
    and LayerNorm params stay fp32).  Weights are stored as (in, out) = torch w.T."""
    E = raw["wq"].shape[0]
    H = num_heads
    assert E % H == 0, "embed_dim must be divisible by num_heads"
    D = E // H
    Dp = max(128, ((D + 127) // 128) * 128)
    scaling = float(D) ** -0.5

    def split_pad_cols(w, b, scale=1.0):
        w = (w * scale).reshape(E, H, D)
        b = (b * scale).reshape(H, D)
        wp = jnp.zeros((E, H, Dp), w.dtype).at[:, :, :D].set(w).reshape(E, H * Dp)
        bp = jnp.zeros((H, Dp), b.dtype).at[:, :D].set(b).reshape(H * Dp)
        return wp, bp

    wq, bq = split_pad_cols(raw["wq"], raw["bq"], scaling)
    wk, bk = split_pad_cols(raw["wk"], raw["bk"])
    wv, bv = split_pad_cols(raw["wv"], raw["bv"])
    w_qkv = jnp.concatenate([wq, wk, wv], axis=1)         # (E, 3*H*Dp)
    b_qkv = jnp.concatenate([bq, bk, bv])                  # (3*H*Dp,)

    # out projection consumes the padded concat-of-heads (H*Dp) activation
    wo = raw["wo"].reshape(H, D, E)
    wo_p = jnp.zeros((H, Dp, E), wo.dtype).at[:, :D, :].set(wo).reshape(H * Dp, E)

    f32, bf16 = jnp.float32, jnp.bfloat16
    return {
        "w_qkv": w_qkv.astype(bf16), "b_qkv": b_qkv.astype(f32),
        "wo": wo_p.astype(bf16), "bo": raw["bo"].astype(f32),
        "w_fc1": raw["w_fc1"].astype(bf16), "b_fc1": raw["b_fc1"].astype(f32),
        "w_fc2": raw["w_fc2"].astype(bf16), "b_fc2": raw["b_fc2"].astype(f32),
        "ln1_g": raw["ln1_g"].astype(f32), "ln1_b": raw["ln1_b"].astype(f32),
        "ln2_g": raw["ln2_g"].astype(f32), "ln2_b": raw["ln2_b"].astype(f32),
    }


def transformer_encoder_layer(x, params, encoder_padding_mask=None,
                              attn_mask=None, num_heads=4, eps=1e-5):
    """Post-norm (encoder_normalize_before=False) TransformerEncoderLayerBase
    forward, dense FFN path, eval mode.  x: (S, B, E) fp32 -> (S, B, E) fp32.
    No layout transposes: everything stays in fairseq's (S, B, ...) order."""
    S, B, E = x.shape
    H = num_heads
    HDp = params["w_qkv"].shape[1] // 3
    # TODO(synk): pre-norm (encoder_normalize_before=True), attn_ln (scale_attn),
    #             ffn_layernorm (scale_fc), training-mode dropout and the MoE
    #             branch are not implemented.

    x2 = x.reshape(S * B, E).astype(jnp.float32)          # (S*B, E), no transpose

    # attn_mask.masked_fill(attn_mask.bool(), -1e8) for fp32 inputs (fairseq)
    am = None
    if attn_mask is not None:
        am = jnp.where(attn_mask.astype(bool), jnp.float32(-1e8),
                       attn_mask.astype(jnp.float32))
    # key-padding mask -> small (B, 1, S) additive bias (finite: no NaN rows)
    kpm = None
    if encoder_padding_mask is not None:
        kpm = jnp.where(encoder_padding_mask.astype(bool)[:, None, :],
                        jnp.float32(_NEG_MASK), jnp.float32(0.0))

    # ---- self attention ----
    # fused QKV projection (q already scaled by 1/sqrt(D) via folded weights)
    qkv = linear(x2, params["w_qkv"], params["b_qkv"], out_dtype=jnp.bfloat16)
    qkv = qkv.reshape(S, B, 3 * HDp)

    attn = flash_mha(qkv, am, kpm, num_heads=H)            # (S, B, H*Dp) bf16
    attn = attn.reshape(S * B, HDp)

    # out_proj + dropout(identity) + residual + self_attn_layer_norm, fused
    x_ln1 = linear_add_layernorm(attn, params["wo"], params["bo"], x2,
                                 params["ln1_g"], params["ln1_b"], eps=eps)

    # ---- feed-forward ----
    h = linear(x_ln1, params["w_fc1"], params["b_fc1"], activation="relu",
               out_dtype=jnp.bfloat16)
    # fc2 + dropout(identity) + residual + final_layer_norm, fused
    out = linear_add_layernorm(h, params["w_fc2"], params["b_fc2"], x_ln1,
                               params["ln2_g"], params["ln2_b"], eps=eps)

    return out.reshape(S, B, E)


# ------------------------- pure-JAX fp32 reference -------------------------

def reference_layer(x, raw, num_heads, encoder_padding_mask=None,
                    attn_mask=None, eps=1e-5):
    S, B, E = x.shape
    H = num_heads
    D = E // H
    scaling = float(D) ** -0.5

    def lin(t, w, b):
        return t @ w + b

    q = lin(x, raw["wq"], raw["bq"]) * scaling
    k = lin(x, raw["wk"], raw["bk"])
    v = lin(x, raw["wv"], raw["bv"])

    def to_bhsd(t):
        return jnp.transpose(t.reshape(S, B, H, D), (1, 2, 0, 3))

    qh, kh, vh = to_bhsd(q), to_bhsd(k), to_bhsd(v)
    s = jnp.einsum("bhqd,bhkd->bhqk", qh, kh)
    if attn_mask is not None:
        am = jnp.where(attn_mask.astype(bool), jnp.float32(-1e8),
                       attn_mask.astype(jnp.float32))
        s = s + am[None, None]
    if encoder_padding_mask is not None:
        s = s + jnp.where(encoder_padding_mask.astype(bool),
                          jnp.float32(_NEG_MASK), 0.0)[:, None, None, :]
    p = jax.nn.softmax(s, axis=-1)
    o = jnp.einsum("bhqk,bhkd->bhqd", p, vh)
    o = jnp.transpose(o, (2, 0, 1, 3)).reshape(S, B, E)
    o = lin(o, raw["wo"], raw["bo"])

    def ln(t, g, b):
        m = t.mean(-1, keepdims=True)
        var = ((t - m) ** 2).mean(-1, keepdims=True)
        return (t - m) * jax.lax.rsqrt(var + eps) * g + b

    y = ln(x + o, raw["ln1_g"], raw["ln1_b"])
    h1 = jnp.maximum(y @ raw["w_fc1"] + raw["b_fc1"], 0.0)
    return ln(y + h1 @ raw["w_fc2"] + raw["b_fc2"], raw["ln2_g"], raw["ln2_b"])


# ----------------------------- demo / main -----------------------------

if __name__ == "__main__":
    S, B, E, H, F = 16, 4, 128, 4, 256  # seq, batch, embed_dim, heads, ffn_dim

    key = jax.random.PRNGKey(0)
    keys = jax.random.split(key, 16)

    def init(k, shape, scale=0.05):
        return jax.random.normal(k, shape, jnp.float32) * scale

    raw = {
        # projection weights stored as (in, out) = transpose of torch's (out, in)
        "wq": init(keys[0], (E, E)), "bq": init(keys[1], (E,)),
        "wk": init(keys[2], (E, E)), "bk": init(keys[3], (E,)),
        "wv": init(keys[4], (E, E)), "bv": init(keys[5], (E,)),
        "wo": init(keys[6], (E, E)), "bo": init(keys[7], (E,)),
        "w_fc1": init(keys[8], (E, F)), "b_fc1": init(keys[9], (F,)),
        "w_fc2": init(keys[10], (F, E)), "b_fc2": init(keys[11], (E,)),
        "ln1_g": jnp.ones((E,), jnp.float32), "ln1_b": jnp.zeros((E,), jnp.float32),
        "ln2_g": jnp.ones((E,), jnp.float32), "ln2_b": jnp.zeros((E,), jnp.float32),
    }
    params = prepare_params(raw, num_heads=H)

    x = jax.random.normal(keys[12], (S, B, E), jnp.float32)
    # batch 1 has its last three positions padded
    encoder_padding_mask = jnp.zeros((B, S), jnp.bool_).at[1, S - 3:].set(True)
    # strided-attention style mask: nobody may attend to the last source position
    attn_mask = jnp.zeros((S, S), jnp.float32).at[:, S - 1].set(1.0)

    fwd = jax.jit(functools.partial(transformer_encoder_layer, num_heads=H))
    out = jax.block_until_ready(fwd(x, params, encoder_padding_mask, attn_mask))

    assert out.shape == (S, B, E)
    assert bool(jnp.all(jnp.isfinite(out)))

    ref = reference_layer(x, raw, H, encoder_padding_mask, attn_mask)
    err = float(jnp.max(jnp.abs(out - ref)))
    assert err < 0.15, f"max abs error vs fp32 reference too large: {err}"

    # also exercise the mask-specialized (no attn_mask / no padding mask) path
    out2 = jax.block_until_ready(fwd(x, params, None, None))
    assert bool(jnp.all(jnp.isfinite(out2)))

    print("KERNEL_OK")
</pallas_src>

<mosaic_0001>
module attributes {stable_mosaic.version = 11 : i64} {
  func.func @_matmul_bias_kernel(%arg0: i32, %arg1: i32, %arg2: i32, %arg3: memref<64x128xbf16, #tpu.memory_space<vmem>>, %arg4: memref<128x512xbf16, #tpu.memory_space<vmem>>, %arg5: memref<1x512xf32, #tpu.memory_space<vmem>>, %arg6: memref<64x512xbf16, #tpu.memory_space<vmem>>, %arg7: memref<64x512xf32, #tpu.memory_space<vmem>>) attributes {dimension_semantics = [#tpu.dimension_semantics<parallel>, #tpu.dimension_semantics<parallel>, #tpu.dimension_semantics<arbitrary>], iteration_bounds = array<i64: 1, 3, 1>, scalar_prefetch = 0 : i64, scratch_operands = 1 : i64, tpu.core_type = #tpu.core_type<tc>, window_params = [{transform_indices = @transform_0, window_bounds = array<i64: 64, 128>}, {transform_indices = @transform_1, window_bounds = array<i64: 128, 512>}, {transform_indices = @transform_2, window_bounds = array<i64: 1, 512>}, {transform_indices = @transform_3, window_bounds = array<i64: 64, 512>}]} {
    %c0_i32 = arith.constant 0 : i32
    %0 = arith.cmpi eq, %arg2, %c0_i32 : i32
    %1 = arith.extui %0 : i1 to i32
    %c0_i32_0 = arith.constant 0 : i32
    %2 = arith.cmpi ne, %1, %c0_i32_0 : i32
    scf.if %2 {
      %cst_10 = arith.constant 0.000000e+00 : f32
      %12 = vector.broadcast %cst_10 : f32 to vector<64x512xf32>
      %c0_11 = arith.constant 0 : index
      %c0_12 = arith.constant 0 : index
      %13 = vector.load %arg7[%c0_11, %c0_12] : memref<64x512xf32, #tpu.memory_space<vmem>>, vector<64x512xf32>
      tpu.vector_store %arg7[%c0_11, %c0_12], %12 {strides = array<i32>} : memref<64x512xf32, #tpu.memory_space<vmem>>, vector<64x512xf32>,
    } else {
    }
    %c0 = arith.constant 0 : index
    %c0_1 = arith.constant 0 : index
    %3 = vector.load %arg7[%c0, %c0_1] : memref<64x512xf32, #tpu.memory_space<vmem>>, vector<64x512xf32>
    %c0_2 = arith.constant 0 : index
    %c0_3 = arith.constant 0 : index
    %4 = vector.load %arg3[%c0_2, %c0_3] : memref<64x128xbf16, #tpu.memory_space<vmem>>, vector<64x128xbf16>
    %c0_4 = arith.constant 0 : index
    %c0_5 = arith.constant 0 : index
    %5 = vector.load %arg4[%c0_4, %c0_5] : memref<128x512xbf16, #tpu.memory_space<vmem>>, vector<128x512xbf16>
    %cst = arith.constant dense<0.000000e+00> : vector<64x512xf32>
    %6 = tpu.matmul %4, %5, %cst {dimension_numbers = #tpu.dot_dimension_numbers<[1], [0], [0], [1], [0, 0, 1, 1], [], []>} : vector<64x128xbf16>, vector<128x512xbf16>, vector<64x512xf32> -> vector<64x512xf32>
    %7 = arith.addf %3, %6 : vector<64x512xf32>
    %c0_6 = arith.constant 0 : index
    %c0_7 = arith.constant 0 : index
    %8 = vector.load %arg7[%c0_6, %c0_7] : memref<64x512xf32, #tpu.memory_space<vmem>>, vector<64x512xf32>
    tpu.vector_store %arg7[%c0_6, %c0_7], %7 {strides = array<i32>} : memref<64x512xf32, #tpu.memory_space<vmem>>, vector<64x512xf32>,
    %c0_i32_8 = arith.constant 0 : i32
    %9 = arith.cmpi eq, %arg2, %c0_i32_8 : i32
    %10 = arith.extui %9 : i1 to i32
    %c0_i32_9 = arith.constant 0 : i32
    %11 = arith.cmpi ne, %10, %c0_i32_9 : i32
    scf.if %11 {
      %c0_10 = arith.constant 0 : index
      %c0_11 = arith.constant 0 : index
      %12 = vector.load %arg7[%c0_10, %c0_11] : memref<64x512xf32, #tpu.memory_space<vmem>>, vector<64x512xf32>
      %c0_12 = arith.constant 0 : index
      %c0_13 = arith.constant 0 : index
      %13 = vector.load %arg5[%c0_12, %c0_13] : memref<1x512xf32, #tpu.memory_space<vmem>>, vector<1x512xf32>
      %14 = vector.broadcast %13 : vector<1x512xf32> to vector<64x512xf32>
      %15 = arith.addf %12, %14 : vector<64x512xf32>
      %16 = arith.truncf %15 : vector<64x512xf32> to vector<64x512xbf16>
      %c0_14 = arith.constant 0 : index
      %c0_15 = arith.constant 0 : index
      %17 = vector.load %arg6[%c0_14, %c0_15] : memref<64x512xbf16, #tpu.memory_space<vmem>>, vector<64x512xbf16>
      tpu.vector_store %arg6[%c0_14, %c0_15], %16 {strides = array<i32>} : memref<64x512xbf16, #tpu.memory_space<vmem>>, vector<64x512xbf16>,
    } else {
    }
    return
  }
  func.func @transform_0(%arg0: i32, %arg1: i32, %arg2: i32) -> (i32, i32) {
    %c0_i32 = arith.constant 0 : i32
    return %arg0, %arg2 : i32, i32
  }
  func.func @transform_1(%arg0: i32, %arg1: i32, %arg2: i32) -> (i32, i32) {
    %c0_i32 = arith.constant 0 : i32
    return %arg2, %arg1 : i32, i32
  }
  func.func @transform_2(%arg0: i32, %arg1: i32, %arg2: i32) -> (i32, i32) {
    %c0_i32 = arith.constant 0 : i32
    %c0_i32_0 = arith.constant 0 : i32
    return %c0_i32, %arg1 : i32, i32
  }
  func.func @transform_3(%arg0: i32, %arg1: i32, %arg2: i32) -> (i32, i32) {
    %c0_i32 = arith.constant 0 : i32
    return %arg0, %arg1 : i32, i32
  }
}

module attributes {stable_mosaic.version = 11 : i64} {
  func.func @_flash_mha_kernel(%arg0: i32, %arg1: i32, %arg2: i32, %arg3: memref<16x4x128xbf16, #tpu.memory_space<vmem>>, %arg4: memref<16x4x128xbf16, #tpu.memory_space<vmem>>, %arg5: memref<16x4x128xbf16, #tpu.memory_space<vmem>>, %arg6: memref<16x16xf32, #tpu.memory_space<vmem>>, %arg7: memref<4x1x16xf32, #tpu.memory_space<vmem>>, %arg8: memref<16x4x128xbf16, #tpu.memory_space<vmem>>, %arg9: memref<4x16x128xbf16, #tpu.memory_space<vmem>>, %arg10: memref<4x16x1xf32, #tpu.memory_space<vmem>>, %arg11: memref<4x16x1xf32, #tpu.memory_space<vmem>>, %arg12: memref<4x16x128xf32, #tpu.memory_space<vmem>>) attributes {dimension_semantics = [#tpu.dimension_semantics<parallel>, #tpu.dimension_semantics<parallel>, #tpu.dimension_semantics<arbitrary>], iteration_bounds = array<i64: 4, 1, 1>, scalar_prefetch = 0 : i64, scratch_operands = 4 : i64, tpu.core_type = #tpu.core_type<tc>, window_params = [{transform_indices = @transform_0, window_bounds = array<i64: 16, 4, 128>}, {transform_indices = @transform_1, window_bounds = array<i64: 16, 4, 128>}, {transform_indices = @transform_2, window_bounds = array<i64: 16, 4, 128>}, {transform_indices = @transform_3, window_bounds = array<i64: 16, 16>}, {transform_indices = @transform_4, window_bounds = array<i64: 4, 1, 16>}, {transform_indices = @transform_5, window_bounds = array<i64: 16, 4, 128>}]} {
    %c0_i32 = arith.constant 0 : i32
    %0 = arith.cmpi eq, %arg2, %c0_i32 : i32
    %1 = arith.extui %0 : i1 to i32
    %c0_i32_0 = arith.constant 0 : i32
    %2 = arith.cmpi ne, %1, %c0_i32_0 : i32
    scf.if %2 {
      %c0_37 = arith.constant 0 : index
      %c0_38 = arith.constant 0 : index
      %c0_39 = arith.constant 0 : index
      %42 = vector.load %arg3[%c0_37, %c0_38, %c0_39] : memref<16x4x128xbf16, #tpu.memory_space<vmem>>, vector<16x4x128xbf16>
      %43 = tpu.transpose %42, [1, 0, 2] : vector<16x4x128xbf16> -> vector<4x16x128xbf16>
      %c0_40 = arith.constant 0 : index
      %c0_41 = arith.constant 0 : index
      %c0_42 = arith.constant 0 : index
      %44 = vector.load %arg9[%c0_40, %c0_41, %c0_42] : memref<4x16x128xbf16, #tpu.memory_space<vmem>>, vector<4x16x128xbf16>
      tpu.vector_store %arg9[%c0_40, %c0_41, %c0_42], %43 {strides = array<i32>} : memref<4x16x128xbf16, #tpu.memory_space<vmem>>, vector<4x16x128xbf16>,
      %cst_43 = arith.constant -1.000000e+30 : f32
      %45 = vector.broadcast %cst_43 : f32 to vector<4x16x1xf32>
      %c0_44 = arith.constant 0 : index
      %c0_45 = arith.constant 0 : index
      %c0_46 = arith.constant 0 : index
      %46 = vector.load %arg10[%c0_44, %c0_45, %c0_46] : memref<4x16x1xf32, #tpu.memory_space<vmem>>, vector<4x16x1xf32>
      tpu.vector_store %arg10[%c0_44, %c0_45, %c0_46], %45 {strides = array<i32>} : memref<4x16x1xf32, #tpu.memory_space<vmem>>, vector<4x16x1xf32>,
      %cst_47 = arith.constant 0.000000e+00 : f32
      %47 = vector.broadcast %cst_47 : f32 to vector<4x16x1xf32>
      %c0_48 = arith.constant 0 : index
      %c0_49 = arith.constant 0 : index
      %c0_50 = arith.constant 0 : index
      %48 = vector.load %arg11[%c0_48, %c0_49, %c0_50] : memref<4x16x1xf32, #tpu.memory_space<vmem>>, vector<4x16x1xf32>
      tpu.vector_store %arg11[%c0_48, %c0_49, %c0_50], %47 {strides = array<i32>} : memref<4x16x1xf32, #tpu.memory_space<vmem>>, vector<4x16x1xf32>,
      %cst_51 = arith.constant 0.000000e+00 : f32
      %49 = vector.broadcast %cst_51 : f32 to vector<4x16x128xf32>
      %c0_52 = arith.constant 0 : index
      %c0_53 = arith.constant 0 : index
      %c0_54 = arith.constant 0 : index
      %50 = vector.load %arg12[%c0_52, %c0_53, %c0_54] : memref<4x16x128xf32, #tpu.memory_space<vmem>>, vector<4x16x128xf32>
      tpu.vector_store %arg12[%c0_52, %c0_53, %c0_54], %49 {strides = array<i32>} : memref<4x16x128xf32, #tpu.memory_space<vmem>>, vector<4x16x128xf32>,
    } else {
    }
    %c0 = arith.constant 0 : index
    %c0_1 = arith.constant 0 : index
    %c0_2 = arith.constant 0 : index
    %3 = vector.load %arg4[%c0, %c0_1, %c0_2] : memref<16x4x128xbf16, #tpu.memory_space<vmem>>, vector<16x4x128xbf16>
    %4 = tpu.transpose %3, [1, 0, 2] : vector<16x4x128xbf16> -> vector<4x16x128xbf16>
    %c0_3 = arith.constant 0 : index
    %c0_4 = arith.constant 0 : index
    %c0_5 = arith.constant 0 : index
    %5 = vector.load %arg5[%c0_3, %c0_4, %c0_5] : memref<16x4x128xbf16, #tpu.memory_space<vmem>>, vector<16x4x128xbf16>
    %6 = tpu.transpose %5, [1, 0, 2] : vector<16x4x128xbf16> -> vector<4x16x128xbf16>
    %c0_6 = arith.constant 0 : index
    %c0_7 = arith.constant 0 : index
    %c0_8 = arith.constant 0 : index
    %7 = vector.load %arg9[%c0_6, %c0_7, %c0_8] : memref<4x16x128xbf16, #tpu.memory_space<vmem>>, vector<4x16x128xbf16>
    "tpu.trace_start"() <{level = 10 : i32, message = "bqd,bkd->bqk"}> : () -> ()
    %cst = arith.constant dense<0.000000e+00> : vector<4x16x16xf32>
    %8 = tpu.matmul %7, %4, %cst {dimension_numbers = #tpu.dot_dimension_numbers<[2], [2], [1], [1], [0, 0, 0, 1, 1, 1], [0], [0]>} : vector<4x16x128xbf16>, vector<4x16x128xbf16>, vector<4x16x16xf32> -> vector<4x16x16xf32>
    "tpu.trace_stop"() : () -> ()
    %c0_9 = arith.constant 0 : index
    %c0_10 = arith.constant 0 : index
    %9 = vector.load %arg6[%c0_9, %c0_10] : memref<16x16xf32, #tpu.memory_space<vmem>>, vector<16x16xf32>
    %10 = vector.shape_cast %9 : vector<16x16xf32> to vector<1x16x16xf32>
    %11 = vector.broadcast %10 : vector<1x16x16xf32> to vector<4x16x16xf32>
    %12 = arith.addf %8, %11 : vector<4x16x16xf32>
    %c0_11 = arith.constant 0 : index
    %c0_12 = arith.constant 0 : index
    %c0_13 = arith.constant 0 : index
    %13 = vector.load %arg7[%c0_11, %c0_12, %c0_13] : memref<4x1x16xf32, #tpu.memory_space<vmem>>, vector<4x1x16xf32>
    %14 = vector.broadcast %13 : vector<4x1x16xf32> to vector<4x16x16xf32>
    %15 = arith.addf %12, %14 : vector<4x16x16xf32>
    %c0_14 = arith.constant 0 : index
    %c0_15 = arith.constant 0 : index
    %c0_16 = arith.constant 0 : index
    %16 = vector.load %arg10[%c0_14, %c0_15, %c0_16] : memref<4x16x1xf32, #tpu.memory_space<vmem>>, vector<4x16x1xf32>
    %cst_17 = arith.constant dense<0xFF800000> : vector<4x16xf32>
    %17 = vector.multi_reduction <maximumf>, %15, %cst_17 [2] : vector<4x16x16xf32> to vector<4x16xf32>
    %18 = vector.shape_cast %17 : vector<4x16xf32> to vector<4x16x1xf32>
    %19 = arith.maximumf %16, %18 : vector<4x16x1xf32>
    %20 = arith.subf %16, %19 : vector<4x16x1xf32>
    %21 = math.exp %20 : vector<4x16x1xf32>
    %22 = vector.broadcast %19 : vector<4x16x1xf32> to vector<4x16x16xf32>
    %23 = arith.subf %15, %22 : vector<4x16x16xf32>
    %24 = math.exp %23 : vector<4x16x16xf32>
    %c0_18 = arith.constant 0 : index
    %c0_19 = arith.constant 0 : index
    %c0_20 = arith.constant 0 : index
    %25 = vector.load %arg11[%c0_18, %c0_19, %c0_20] : memref<4x16x1xf32, #tpu.memory_space<vmem>>, vector<4x16x1xf32>
    %26 = arith.mulf %21, %25 : vector<4x16x1xf32>
    %cst_21 = arith.constant dense<0.000000e+00> : vector<4x16xf32>
    %27 = vector.multi_reduction <add>, %24, %cst_21 [2] : vector<4x16x16xf32> to vector<4x16xf32>
    %28 = vector.shape_cast %27 : vector<4x16xf32> to vector<4x16x1xf32>
    %29 = arith.addf %26, %28 : vector<4x16x1xf32>
    %c0_22 = arith.constant 0 : index
    %c0_23 = arith.constant 0 : index
    %c0_24 = arith.constant 0 : index
    %30 = vector.load %arg11[%c0_22, %c0_23, %c0_24] : memref<4x16x1xf32, #tpu.memory_space<vmem>>, vector<4x16x1xf32>
    tpu.vector_store %arg11[%c0_22, %c0_23, %c0_24], %29 {strides = array<i32>} : memref<4x16x1xf32, #tpu.memory_space<vmem>>, vector<4x16x1xf32>,
    %c0_25 = arith.constant 0 : index
    %c0_26 = arith.constant 0 : index
    %c0_27 = arith.constant 0 : index
    %31 = vector.load %arg12[%c0_25, %c0_26, %c0_27] : memref<4x16x128xf32, #tpu.memory_space<vmem>>, vector<4x16x128xf32>
    %32 = vector.broadcast %21 : vector<4x16x1xf32> to vector<4x16x128xf32>
    %33 = arith.mulf %32, %31 : vector<4x16x128xf32>
    %34 = arith.truncf %24 : vector<4x16x16xf32> to vector<4x16x16xbf16>
    "tpu.trace_start"() <{level = 10 : i32, message = "bqk,bkd->bqd"}> : () -> ()
    %cst_28 = arith.constant dense<0.000000e+00> : vector<4x16x128xf32>
    %35 = tpu.matmul %34, %6, %cst_28 {dimension_numbers = #tpu.dot_dimension_numbers<[2], [1], [1], [2], [0, 0, 0, 1, 1, 2], [0], [0]>} : vector<4x16x16xbf16>, vector<4x16x128xbf16>, vector<4x16x128xf32> -> vector<4x16x128xf32>
    "tpu.trace_stop"() : () -> ()
    %36 = arith.addf %33, %35 : vector<4x16x128xf32>
    %c0_29 = arith.constant 0 : index
    %c0_30 = arith.constant 0 : index
    %c0_31 = arith.constant 0 : index
    %37 = vector.load %arg12[%c0_29, %c0_30, %c0_31] : memref<4x16x128xf32, #tpu.memory_space<vmem>>, vector<4x16x128xf32>
    tpu.vector_store %arg12[%c0_29, %c0_30, %c0_31], %36 {strides = array<i32>} : memref<4x16x128xf32, #tpu.memory_space<vmem>>, vector<4x16x128xf32>,
    %c0_32 = arith.constant 0 : index
    %c0_33 = arith.constant 0 : index
    %c0_34 = arith.constant 0 : index
    %38 = vector.load %arg10[%c0_32, %c0_33, %c0_34] : memref<4x16x1xf32, #tpu.memory_space<vmem>>, vector<4x16x1xf32>
    tpu.vector_store %arg10[%c0_32, %c0_33, %c0_34], %19 {strides = array<i32>} : memref<4x16x1xf32, #tpu.memory_space<vmem>>, vector<4x16x1xf32>,
    %c0_i32_35 = arith.constant 0 : i32
    %39 = arith.cmpi eq, %arg2, %c0_i32_35 : i32
    %40 = arith.extui %39 : i1 to i32
    %c0_i32_36 = arith.constant 0 : i32
    %41 = arith.cmpi ne, %40, %c0_i32_36 : i32
    scf.if %41 {
      %c0_37 = arith.constant 0 : index
      %c0_38 = arith.constant 0 : index
      %c0_39 = arith.constant 0 : index
      %42 = vector.load %arg11[%c0_37, %c0_38, %c0_39] : memref<4x16x1xf32, #tpu.memory_space<vmem>>, vector<4x16x1xf32>
      %cst_40 = arith.constant 0.000000e+00 : f32
      %43 = vector.broadcast %cst_40 : f32 to vector<4x16x1xf32>
      %44 = arith.cmpf oeq, %42, %43 : vector<4x16x1xf32>
      %cst_41 = arith.constant 1.000000e+00 : f32
      %45 = vector.broadcast %cst_41 : f32 to vector<4x16x1xf32>
      %46 = arith.select %44, %45, %42 : vector<4x16x1xi1>, vector<4x16x1xf32>
      %c0_42 = arith.constant 0 : index
      %c0_43 = arith.constant 0 : index
      %c0_44 = arith.constant 0 : index
      %47 = vector.load %arg12[%c0_42, %c0_43, %c0_44] : memref<4x16x128xf32, #tpu.memory_space<vmem>>, vector<4x16x128xf32>
      %48 = tpu.reciprocal %46 {approx = true} : vector<4x16x1xf32> -> vector<4x16x1xf32>
      %49 = vector.broadcast %48 : vector<4x16x1xf32> to vector<4x16x128xf32>
      %50 = arith.mulf %47, %49 : vector<4x16x128xf32>
      %51 = tpu.transpose %50, [1, 0, 2] : vector<4x16x128xf32> -> vector<16x4x128xf32>
      %52 = arith.truncf %51 : vector<16x4x128xf32> to vector<16x4x128xbf16>
      %c0_45 = arith.constant 0 : index
      %c0_46 = arith.constant 0 : index
      %c0_47 = arith.constant 0 : index
      %53 = vector.load %arg8[%c0_45, %c0_46, %c0_47] : memref<16x4x128xbf16, #tpu.memory_space<vmem>>, vector<16x4x128xbf16>
      tpu.vector_store %arg8[%c0_45, %c0_46, %c0_47], %52 {strides = array<i32>} : memref<16x4x128xbf16, #tpu.memory_space<vmem>>, vector<16x4x128xbf16>,
    } else {
    }
    return
  }
  func.func @transform_0(%arg0: i32, %arg1: i32, %arg2: i32) -> (i32, i32, i32) {
    %c0_i32 = arith.constant 0 : i32
    %c0_i32_0 = arith.constant 0 : i32
    return %arg1, %c0_i32, %arg0 : i32, i32, i32
  }
  func.func @transform_1(%arg0: i32, %arg1: i32, %arg2: i32) -> (i32, i32, i32) {
    %c4_i32 = arith.constant 4 : i32
    %0 = arith.addi %c4_i32, %arg0 : i32
    %c0_i32 = arith.constant 0 : i32
    %c0_i32_0 = arith.constant 0 : i32
    return %arg2, %c0_i32, %0 : i32, i32, i32
  }
  func.func @transform_2(%arg0: i32, %arg1: i32, %arg2: i32) -> (i32, i32, i32) {
    %c8_i32 = arith.constant 8 : i32
    %0 = arith.addi %c8_i32, %arg0 : i32
    %c0_i32 = arith.constant 0 : i32
    %c0_i32_0 = arith.constant 0 : i32
    return %arg2, %c0_i32, %0 : i32, i32, i32
  }
  func.func @transform_3(%arg0: i32, %arg1: i32, %arg2: i32) -> (i32, i32) {
    %c0_i32 = arith.constant 0 : i32
    return %arg1, %arg2 : i32, i32
  }
  func.func @transform_4(%arg0: i32, %arg1: i32, %arg2: i32) -> (i32, i32, i32) {
    %c0_i32 = arith.constant 0 : i32
    %c0_i32_0 = arith.constant 0 : i32
    %c0_i32_1 = arith.constant 0 : i32
    return %c0_i32, %c0_i32_0, %arg2 : i32, i32, i32
  }
  func.func @transform_5(%arg0: i32, %arg1: i32, %arg2: i32) -> (i32, i32, i32) {
    %c0_i32 = arith.constant 0 : i32
    %c0_i32_0 = arith.constant 0 : i32
    return %arg1, %c0_i32, %arg0 : i32, i32, i32
  }
}

module attributes {stable_mosaic.version = 11 : i64} {
  func.func @_matmul_bias_res_ln_kernel(%arg0: i32, %arg1: i32, %arg2: memref<64x512xbf16, #tpu.memory_space<vmem>>, %arg3: memref<512x128xbf16, #tpu.memory_space<vmem>>, %arg4: memref<1x128xf32, #tpu.memory_space<vmem>>, %arg5: memref<64x128xbf16, #tpu.memory_space<vmem>>, %arg6: memref<1x128xf32, #tpu.memory_space<vmem>>, %arg7: memref<1x128xf32, #tpu.memory_space<vmem>>, %arg8: memref<64x128xf32, #tpu.memory_space<vmem>>, %arg9: memref<64x128xf32, #tpu.memory_space<vmem>>) attributes {dimension_semantics = [#tpu.dimension_semantics<parallel>, #tpu.dimension_semantics<arbitrary>], iteration_bounds = array<i64: 1, 1>, scalar_prefetch = 0 : i64, scratch_operands = 1 : i64, tpu.core_type = #tpu.core_type<tc>, window_params = [{transform_indices = @transform_0, window_bounds = array<i64: 64, 512>}, {transform_indices = @transform_1, window_bounds = array<i64: 512, 128>}, {pipeline_mode = #tpu.pipeline_mode<synchronous>, transform_indices = @transform_2, window_bounds = array<i64: 1, 128>}, {transform_indices = @transform_3, window_bounds = array<i64: 64, 128>}, {pipeline_mode = #tpu.pipeline_mode<synchronous>, transform_indices = @transform_4, window_bounds = array<i64: 1, 128>}, {pipeline_mode = #tpu.pipeline_mode<synchronous>, transform_indices = @transform_5, window_bounds = array<i64: 1, 128>}, {transform_indices = @transform_6, window_bounds = array<i64: 64, 128>}]} {
    %c0_i32 = arith.constant 0 : i32
    %0 = arith.cmpi eq, %arg1, %c0_i32 : i32
    %1 = arith.extui %0 : i1 to i32
    %c0_i32_0 = arith.constant 0 : i32
    %2 = arith.cmpi ne, %1, %c0_i32_0 : i32
    scf.if %2 {
      %cst_10 = arith.constant 0.000000e+00 : f32
      %12 = vector.broadcast %cst_10 : f32 to vector<64x128xf32>
      %c0_11 = arith.constant 0 : index
      %c0_12 = arith.constant 0 : index
      %13 = vector.load %arg9[%c0_11, %c0_12] : memref<64x128xf32, #tpu.memory_space<vmem>>, vector<64x128xf32>
      tpu.vector_store %arg9[%c0_11, %c0_12], %12 {strides = array<i32>} : memref<64x128xf32, #tpu.memory_space<vmem>>, vector<64x128xf32>,
    } else {
    }
    %c0 = arith.constant 0 : index
    %c0_1 = arith.constant 0 : index
    %3 = vector.load %arg9[%c0, %c0_1] : memref<64x128xf32, #tpu.memory_space<vmem>>, vector<64x128xf32>
    %c0_2 = arith.constant 0 : index
    %c0_3 = arith.constant 0 : index
    %4 = vector.load %arg2[%c0_2, %c0_3] : memref<64x512xbf16, #tpu.memory_space<vmem>>, vector<64x512xbf16>
    %c0_4 = arith.constant 0 : index
    %c0_5 = arith.constant 0 : index
    %5 = vector.load %arg3[%c0_4, %c0_5] : memref<512x128xbf16, #tpu.memory_space<vmem>>, vector<512x128xbf16>
    %cst = arith.constant dense<0.000000e+00> : vector<64x128xf32>
    %6 = tpu.matmul %4, %5, %cst {dimension_numbers = #tpu.dot_dimension_numbers<[1], [0], [0], [1], [0, 0, 1, 1], [], []>} : vector<64x512xbf16>, vector<512x128xbf16>, vector<64x128xf32> -> vector<64x128xf32>
    %7 = arith.addf %3, %6 : vector<64x128xf32>
    %c0_6 = arith.constant 0 : index
    %c0_7 = arith.constant 0 : index
    %8 = vector.load %arg9[%c0_6, %c0_7] : memref<64x128xf32, #tpu.memory_space<vmem>>, vector<64x128xf32>
    tpu.vector_store %arg9[%c0_6, %c0_7], %7 {strides = array<i32>} : memref<64x128xf32, #tpu.memory_space<vmem>>, vector<64x128xf32>,
    %c0_i32_8 = arith.constant 0 : i32
    %9 = arith.cmpi eq, %arg1, %c0_i32_8 : i32
    %10 = arith.extui %9 : i1 to i32
    %c0_i32_9 = arith.constant 0 : i32
    %11 = arith.cmpi ne, %10, %c0_i32_9 : i32
    scf.if %11 {
      %c0_10 = arith.constant 0 : index
      %c0_11 = arith.constant 0 : index
      %12 = vector.load %arg9[%c0_10, %c0_11] : memref<64x128xf32, #tpu.memory_space<vmem>>, vector<64x128xf32>
      %c0_12 = arith.constant 0 : index
      %c0_13 = arith.constant 0 : index
      %13 = vector.load %arg4[%c0_12, %c0_13] : memref<1x128xf32, #tpu.memory_space<vmem>>, vector<1x128xf32>
      %14 = vector.broadcast %13 : vector<1x128xf32> to vector<64x128xf32>
      %15 = arith.addf %12, %14 : vector<64x128xf32>
      %c0_14 = arith.constant 0 : index
      %c0_15 = arith.constant 0 : index
      %16 = vector.load %arg5[%c0_14, %c0_15] : memref<64x128xbf16, #tpu.memory_space<vmem>>, vector<64x128xbf16>
      %17 = arith.extf %16 : vector<64x128xbf16> to vector<64x128xf32>
      %18 = arith.addf %15, %17 : vector<64x128xf32>
      %cst_16 = arith.constant dense<0.000000e+00> : vector<64xf32>
      %19 = vector.multi_reduction <add>, %18, %cst_16 [1] : vector<64x128xf32> to vector<64xf32>
      %20 = vector.shape_cast %19 : vector<64xf32> to vector<64x1xf32>
      %cst_17 = arith.constant 1.280000e+02 : f32
      %21 = vector.broadcast %cst_17 : f32 to vector<64x1xf32>
      %22 = arith.divf %20, %21 : vector<64x1xf32>
      %23 = vector.broadcast %22 : vector<64x1xf32> to vector<64x128xf32>
      %24 = arith.subf %18, %23 : vector<64x128xf32>
      %25 = arith.mulf %24, %24 : vector<64x128xf32>
      %cst_18 = arith.constant dense<0.000000e+00> : vector<64xf32>
      %26 = vector.multi_reduction <add>, %25, %cst_18 [1] : vector<64x128xf32> to vector<64xf32>
      %27 = vector.shape_cast %26 : vector<64xf32> to vector<64x1xf32>
      %cst_19 = arith.constant 1.280000e+02 : f32
      %28 = vector.broadcast %cst_19 : f32 to vector<64x1xf32>
      %29 = arith.divf %27, %28 : vector<64x1xf32>
      %cst_20 = arith.constant 9.99999974E-6 : f32
      %30 = vector.broadcast %cst_20 : f32 to vector<64x1xf32>
      %31 = arith.addf %29, %30 : vector<64x1xf32>
      %32 = math.rsqrt %31 : vector<64x1xf32>
      %33 = vector.broadcast %32 : vector<64x1xf32> to vector<64x128xf32>
      %34 = arith.mulf %24, %33 : vector<64x128xf32>
      %c0_21 = arith.constant 0 : index
      %c0_22 = arith.constant 0 : index
      %35 = vector.load %arg6[%c0_21, %c0_22] : memref<1x128xf32, #tpu.memory_space<vmem>>, vector<1x128xf32>
      %36 = vector.broadcast %35 : vector<1x128xf32> to vector<64x128xf32>
      %37 = arith.mulf %34, %36 : vector<64x128xf32>
      %c0_23 = arith.constant 0 : index
      %c0_24 = arith.constant 0 : index
      %38 = vector.load %arg7[%c0_23, %c0_24] : memref<1x128xf32, #tpu.memory_space<vmem>>, vector<1x128xf32>
      %39 = vector.broadcast %38 : vector<1x128xf32> to vector<64x128xf32>
      %40 = arith.addf %37, %39 : vector<64x128xf32>
      %c0_25 = arith.constant 0 : index
      %c0_26 = arith.constant 0 : index
      %41 = vector.load %arg8[%c0_25, %c0_26] : memref<64x128xf32, #tpu.memory_space<vmem>>, vector<64x128xf32>
      tpu.vector_store %arg8[%c0_25, %c0_26], %40 {strides = array<i32>} : memref<64x128xf32, #tpu.memory_space<vmem>>, vector<64x128xf32>,
    } else {
    }
    return
  }
  func.func @transform_0(%arg0: i32, %arg1: i32) -> (i32, i32) {
    %c0_i32 = arith.constant 0 : i32
    return %arg0, %arg1 : i32, i32
  }
  func.func @transform_1(%arg0: i32, %arg1: i32) -> (i32, i32) {
    %c0_i32 = arith.constant 0 : i32
    %c0_i32_0 = arith.constant 0 : i32
    return %arg1, %c0_i32 : i32, i32
  }
  func.func @transform_2(%arg0: i32, %arg1: i32) -> (i32, i32) {
    %c0_i32 = arith.constant 0 : i32
    %c0_i32_0 = arith.constant 0 : i32
    %c0_i32_1 = arith.constant 0 : i32
    return %c0_i32, %c0_i32_0 : i32, i32
  }
  func.func @transform_3(%arg0: i32, %arg1: i32) -> (i32, i32) {
    %c0_i32 = arith.constant 0 : i32
    %c0_i32_0 = arith.constant 0 : i32
    return %arg0, %c0_i32 : i32, i32
  }
  func.func @transform_4(%arg0: i32, %arg1: i32) -> (i32, i32) {
    %c0_i32 = arith.constant 0 : i32
    %c0_i32_0 = arith.constant 0 : i32
    %c0_i32_1 = arith.constant 0 : i32
    return %c0_i32, %c0_i32_0 : i32, i32
  }
  func.func @transform_5(%arg0: i32, %arg1: i32) -> (i32, i32) {
    %c0_i32 = arith.constant 0 : i32
    %c0_i32_0 = arith.constant 0 : i32
    %c0_i32_1 = arith.constant 0 : i32
    return %c0_i32, %c0_i32_0 : i32, i32
  }
  func.func @transform_6(%arg0: i32, %arg1: i32) -> (i32, i32) {
    %c0_i32 = arith.constant 0 : i32
    %c0_i32_0 = arith.constant 0 : i32
    return %arg0, %c0_i32 : i32, i32
  }
}

module attributes {stable_mosaic.version = 11 : i64} {
  func.func @_matmul_bias_kernel(%arg0: i32, %arg1: i32, %arg2: i32, %arg3: memref<64x128xbf16, #tpu.memory_space<vmem>>, %arg4: memref<128x256xbf16, #tpu.memory_space<vmem>>, %arg5: memref<1x256xf32, #tpu.memory_space<vmem>>, %arg6: memref<64x256xbf16, #tpu.memory_space<vmem>>, %arg7: memref<64x256xf32, #tpu.memory_space<vmem>>) attributes {dimension_semantics = [#tpu.dimension_semantics<parallel>, #tpu.dimension_semantics<parallel>, #tpu.dimension_semantics<arbitrary>], iteration_bounds = array<i64: 1, 1, 1>, scalar_prefetch = 0 : i64, scratch_operands = 1 : i64, tpu.core_type = #tpu.core_type<tc>, window_params = [{transform_indices = @transform_0, window_bounds = array<i64: 64, 128>}, {transform_indices = @transform_1, window_bounds = array<i64: 128, 256>}, {transform_indices = @transform_2, window_bounds = array<i64: 1, 256>}, {transform_indices = @transform_3, window_bounds = array<i64: 64, 256>}]} {
    %c0_i32 = arith.constant 0 : i32
    %0 = arith.cmpi eq, %arg2, %c0_i32 : i32
    %1 = arith.extui %0 : i1 to i32
    %c0_i32_0 = arith.constant 0 : i32
    %2 = arith.cmpi ne, %1, %c0_i32_0 : i32
    scf.if %2 {
      %cst_10 = arith.constant 0.000000e+00 : f32
      %12 = vector.broadcast %cst_10 : f32 to vector<64x256xf32>
      %c0_11 = arith.constant 0 : index
      %c0_12 = arith.constant 0 : index
      %13 = vector.load %arg7[%c0_11, %c0_12] : memref<64x256xf32, #tpu.memory_space<vmem>>, vector<64x256xf32>
      tpu.vector_store %arg7[%c0_11, %c0_12], %12 {strides = array<i32>} : memref<64x256xf32, #tpu.memory_space<vmem>>, vector<64x256xf32>,
    } else {
    }
    %c0 = arith.constant 0 : index
    %c0_1 = arith.constant 0 : index
    %3 = vector.load %arg7[%c0, %c0_1] : memref<64x256xf32, #tpu.memory_space<vmem>>, vector<64x256xf32>
    %c0_2 = arith.constant 0 : index
    %c0_3 = arith.constant 0 : index
    %4 = vector.load %arg3[%c0_2, %c0_3] : memref<64x128xbf16, #tpu.memory_space<vmem>>, vector<64x128xbf16>
    %c0_4 = arith.constant 0 : index
    %c0_5 = arith.constant 0 : index
    %5 = vector.load %arg4[%c0_4, %c0_5] : memref<128x256xbf16, #tpu.memory_space<vmem>>, vector<128x256xbf16>
    %cst = arith.constant dense<0.000000e+00> : vector<64x256xf32>
    %6 = tpu.matmul %4, %5, %cst {dimension_numbers = #tpu.dot_dimension_numbers<[1], [0], [0], [1], [0, 0, 1, 1], [], []>} : vector<64x128xbf16>, vector<128x256xbf16>, vector<64x256xf32> -> vector<64x256xf32>
    %7 = arith.addf %3, %6 : vector<64x256xf32>
    %c0_6 = arith.constant 0 : index
    %c0_7 = arith.constant 0 : index
    %8 = vector.load %arg7[%c0_6, %c0_7] : memref<64x256xf32, #tpu.memory_space<vmem>>, vector<64x256xf32>
    tpu.vector_store %arg7[%c0_6, %c0_7], %7 {strides = array<i32>} : memref<64x256xf32, #tpu.memory_space<vmem>>, vector<64x256xf32>,
    %c0_i32_8 = arith.constant 0 : i32
    %9 = arith.cmpi eq, %arg2, %c0_i32_8 : i32
    %10 = arith.extui %9 : i1 to i32
    %c0_i32_9 = arith.constant 0 : i32
    %11 = arith.cmpi ne, %10, %c0_i32_9 : i32
    scf.if %11 {
      %c0_10 = arith.constant 0 : index
      %c0_11 = arith.constant 0 : index
      %12 = vector.load %arg7[%c0_10, %c0_11] : memref<64x256xf32, #tpu.memory_space<vmem>>, vector<64x256xf32>
      %c0_12 = arith.constant 0 : index
      %c0_13 = arith.constant 0 : index
      %13 = vector.load %arg5[%c0_12, %c0_13] : memref<1x256xf32, #tpu.memory_space<vmem>>, vector<1x256xf32>
      %14 = vector.broadcast %13 : vector<1x256xf32> to vector<64x256xf32>
      %15 = arith.addf %12, %14 : vector<64x256xf32>
      %cst_14 = arith.constant 0.000000e+00 : f32
      %16 = vector.broadcast %cst_14 : f32 to vector<64x256xf32>
      %17 = arith.maximumf %15, %16 : vector<64x256xf32>
      %18 = arith.truncf %17 : vector<64x256xf32> to vector<64x256xbf16>
      %c0_15 = arith.constant 0 : index
      %c0_16 = arith.constant 0 : index
      %19 = vector.load %arg6[%c0_15, %c0_16] : memref<64x256xbf16, #tpu.memory_space<vmem>>, vector<64x256xbf16>
      tpu.vector_store %arg6[%c0_15, %c0_16], %18 {strides = array<i32>} : memref<64x256xbf16, #tpu.memory_space<vmem>>, vector<64x256xbf16>,
    } else {
    }
    return
  }
  func.func @transform_0(%arg0: i32, %arg1: i32, %arg2: i32) -> (i32, i32) {
    %c0_i32 = arith.constant 0 : i32
    return %arg0, %arg2 : i32, i32
  }
  func.func @transform_1(%arg0: i32, %arg1: i32, %arg2: i32) -> (i32, i32) {
    %c0_i32 = arith.constant 0 : i32
    return %arg2, %arg1 : i32, i32
  }
  func.func @transform_2(%arg0: i32, %arg1: i32, %arg2: i32) -> (i32, i32) {
    %c0_i32 = arith.constant 0 : i32
    %c0_i32_0 = arith.constant 0 : i32
    return %c0_i32, %arg1 : i32, i32
  }
  func.func @transform_3(%arg0: i32, %arg1: i32, %arg2: i32) -> (i32, i32) {
    %c0_i32 = arith.constant 0 : i32
    return %arg0, %arg1 : i32, i32
  }
}

module attributes {stable_mosaic.version = 11 : i64} {
  func.func @_matmul_bias_res_ln_kernel(%arg0: i32, %arg1: i32, %arg2: memref<64x256xbf16, #tpu.memory_space<vmem>>, %arg3: memref<256x128xbf16, #tpu.memory_space<vmem>>, %arg4: memref<1x128xf32, #tpu.memory_space<vmem>>, %arg5: memref<64x128xbf16, #tpu.memory_space<vmem>>, %arg6: memref<1x128xf32, #tpu.memory_space<vmem>>, %arg7: memref<1x128xf32, #tpu.memory_space<vmem>>, %arg8: memref<64x128xf32, #tpu.memory_space<vmem>>, %arg9: memref<64x128xf32, #tpu.memory_space<vmem>>) attributes {dimension_semantics = [#tpu.dimension_semantics<parallel>, #tpu.dimension_semantics<arbitrary>], iteration_bounds = array<i64: 1, 1>, scalar_prefetch = 0 : i64, scratch_operands = 1 : i64, tpu.core_type = #tpu.core_type<tc>, window_params = [{transform_indices = @transform_0, window_bounds = array<i64: 64, 256>}, {transform_indices = @transform_1, window_bounds = array<i64: 256, 128>}, {pipeline_mode = #tpu.pipeline_mode<synchronous>, transform_indices = @transform_2, window_bounds = array<i64: 1, 128>}, {transform_indices = @transform_3, window_bounds = array<i64: 64, 128>}, {pipeline_mode = #tpu.pipeline_mode<synchronous>, transform_indices = @transform_4, window_bounds = array<i64: 1, 128>}, {pipeline_mode = #tpu.pipeline_mode<synchronous>, transform_indices = @transform_5, window_bounds = array<i64: 1, 128>}, {transform_indices = @transform_6, window_bounds = array<i64: 64, 128>}]} {
    %c0_i32 = arith.constant 0 : i32
    %0 = arith.cmpi eq, %arg1, %c0_i32 : i32
    %1 = arith.extui %0 : i1 to i32
    %c0_i32_0 = arith.constant 0 : i32
    %2 = arith.cmpi ne, %1, %c0_i32_0 : i32
    scf.if %2 {
      %cst_10 = arith.constant 0.000000e+00 : f32
      %12 = vector.broadcast %cst_10 : f32 to vector<64x128xf32>
      %c0_11 = arith.constant 0 : index
      %c0_12 = arith.constant 0 : index
      %13 = vector.load %arg9[%c0_11, %c0_12] : memref<64x128xf32, #tpu.memory_space<vmem>>, vector<64x128xf32>
      tpu.vector_store %arg9[%c0_11, %c0_12], %12 {strides = array<i32>} : memref<64x128xf32, #tpu.memory_space<vmem>>, vector<64x128xf32>,
    } else {
    }
    %c0 = arith.constant 0 : index
    %c0_1 = arith.constant 0 : index
    %3 = vector.load %arg9[%c0, %c0_1] : memref<64x128xf32, #tpu.memory_space<vmem>>, vector<64x128xf32>
    %c0_2 = arith.constant 0 : index
    %c0_3 = arith.constant 0 : index
    %4 = vector.load %arg2[%c0_2, %c0_3] : memref<64x256xbf16, #tpu.memory_space<vmem>>, vector<64x256xbf16>
    %c0_4 = arith.constant 0 : index
    %c0_5 = arith.constant 0 : index
    %5 = vector.load %arg3[%c0_4, %c0_5] : memref<256x128xbf16, #tpu.memory_space<vmem>>, vector<256x128xbf16>
    %cst = arith.constant dense<0.000000e+00> : vector<64x128xf32>
    %6 = tpu.matmul %4, %5, %cst {dimension_numbers = #tpu.dot_dimension_numbers<[1], [0], [0], [1], [0, 0, 1, 1], [], []>} : vector<64x256xbf16>, vector<256x128xbf16>, vector<64x128xf32> -> vector<64x128xf32>
    %7 = arith.addf %3, %6 : vector<64x128xf32>
    %c0_6 = arith.constant 0 : index
    %c0_7 = arith.constant 0 : index
    %8 = vector.load %arg9[%c0_6, %c0_7] : memref<64x128xf32, #tpu.memory_space<vmem>>, vector<64x128xf32>
    tpu.vector_store %arg9[%c0_6, %c0_7], %7 {strides = array<i32>} : memref<64x128xf32, #tpu.memory_space<vmem>>, vector<64x128xf32>,
    %c0_i32_8 = arith.constant 0 : i32
    %9 = arith.cmpi eq, %arg1, %c0_i32_8 : i32
    %10 = arith.extui %9 : i1 to i32
    %c0_i32_9 = arith.constant 0 : i32
    %11 = arith.cmpi ne, %10, %c0_i32_9 : i32
    scf.if %11 {
      %c0_10 = arith.constant 0 : index
      %c0_11 = arith.constant 0 : index
      %12 = vector.load %arg9[%c0_10, %c0_11] : memref<64x128xf32, #tpu.memory_space<vmem>>, vector<64x128xf32>
      %c0_12 = arith.constant 0 : index
      %c0_13 = arith.constant 0 : index
      %13 = vector.load %arg4[%c0_12, %c0_13] : memref<1x128xf32, #tpu.memory_space<vmem>>, vector<1x128xf32>
      %14 = vector.broadcast %13 : vector<1x128xf32> to vector<64x128xf32>
      %15 = arith.addf %12, %14 : vector<64x128xf32>
      %c0_14 = arith.constant 0 : index
      %c0_15 = arith.constant 0 : index
      %16 = vector.load %arg5[%c0_14, %c0_15] : memref<64x128xbf16, #tpu.memory_space<vmem>>, vector<64x128xbf16>
      %17 = arith.extf %16 : vector<64x128xbf16> to vector<64x128xf32>
      %18 = arith.addf %15, %17 : vector<64x128xf32>
      %cst_16 = arith.constant dense<0.000000e+00> : vector<64xf32>
      %19 = vector.multi_reduction <add>, %18, %cst_16 [1] : vector<64x128xf32> to vector<64xf32>
      %20 = vector.shape_cast %19 : vector<64xf32> to vector<64x1xf32>
      %cst_17 = arith.constant 1.280000e+02 : f32
      %21 = vector.broadcast %cst_17 : f32 to vector<64x1xf32>
      %22 = arith.divf %20, %21 : vector<64x1xf32>
      %23 = vector.broadcast %22 : vector<64x1xf32> to vector<64x128xf32>
      %24 = arith.subf %18, %23 : vector<64x128xf32>
      %25 = arith.mulf %24, %24 : vector<64x128xf32>
      %cst_18 = arith.constant dense<0.000000e+00> : vector<64xf32>
      %26 = vector.multi_reduction <add>, %25, %cst_18 [1] : vector<64x128xf32> to vector<64xf32>
      %27 = vector.shape_cast %26 : vector<64xf32> to vector<64x1xf32>
      %cst_19 = arith.constant 1.280000e+02 : f32
      %28 = vector.broadcast %cst_19 : f32 to vector<64x1xf32>
      %29 = arith.divf %27, %28 : vector<64x1xf32>
      %cst_20 = arith.constant 9.99999974E-6 : f32
      %30 = vector.broadcast %cst_20 : f32 to vector<64x1xf32>
      %31 = arith.addf %29, %30 : vector<64x1xf32>
      %32 = math.rsqrt %31 : vector<64x1xf32>
      %33 = vector.broadcast %32 : vector<64x1xf32> to vector<64x128xf32>
      %34 = arith.mulf %24, %33 : vector<64x128xf32>
      %c0_21 = arith.constant 0 : index
      %c0_22 = arith.constant 0 : index
      %35 = vector.load %arg6[%c0_21, %c0_22] : memref<1x128xf32, #tpu.memory_space<vmem>>, vector<1x128xf32>
      %36 = vector.broadcast %35 : vector<1x128xf32> to vector<64x128xf32>
      %37 = arith.mulf %34, %36 : vector<64x128xf32>
      %c0_23 = arith.constant 0 : index
      %c0_24 = arith.constant 0 : index
      %38 = vector.load %arg7[%c0_23, %c0_24] : memref<1x128xf32, #tpu.memory_space<vmem>>, vector<1x128xf32>
      %39 = vector.broadcast %38 : vector<1x128xf32> to vector<64x128xf32>
      %40 = arith.addf %37, %39 : vector<64x128xf32>
      %c0_25 = arith.constant 0 : index
      %c0_26 = arith.constant 0 : index
      %41 = vector.load %arg8[%c0_25, %c0_26] : memref<64x128xf32, #tpu.memory_space<vmem>>, vector<64x128xf32>
      tpu.vector_store %arg8[%c0_25, %c0_26], %40 {strides = array<i32>} : memref<64x128xf32, #tpu.memory_space<vmem>>, vector<64x128xf32>,
    } else {
    }
    return
  }
  func.func @transform_0(%arg0: i32, %arg1: i32) -> (i32, i32) {
    %c0_i32 = arith.constant 0 : i32
    return %arg0, %arg1 : i32, i32
  }
  func.func @transform_1(%arg0: i32, %arg1: i32) -> (i32, i32) {
    %c0_i32 = arith.constant 0 : i32
    %c0_i32_0 = arith.constant 0 : i32
    return %arg1, %c0_i32 : i32, i32
  }
  func.func @transform_2(%arg0: i32, %arg1: i32) -> (i32, i32) {
    %c0_i32 = arith.constant 0 : i32
    %c0_i32_0 = arith.constant 0 : i32
    %c0_i32_1 = arith.constant 0 : i32
    return %c0_i32, %c0_i32_0 : i32, i32
  }
  func.func @transform_3(%arg0: i32, %arg1: i32) -> (i32, i32) {
    %c0_i32 = arith.constant 0 : i32
    %c0_i32_0 = arith.constant 0 : i32
    return %arg0, %c0_i32 : i32, i32
  }
  func.func @transform_4(%arg0: i32, %arg1: i32) -> (i32, i32) {
    %c0_i32 = arith.constant 0 : i32
    %c0_i32_0 = arith.constant 0 : i32
    %c0_i32_1 = arith.constant 0 : i32
    return %c0_i32, %c0_i32_0 : i32, i32
  }
  func.func @transform_5(%arg0: i32, %arg1: i32) -> (i32, i32) {
    %c0_i32 = arith.constant 0 : i32
    %c0_i32_0 = arith.constant 0 : i32
    %c0_i32_1 = arith.constant 0 : i32
    return %c0_i32, %c0_i32_0 : i32, i32
  }
  func.func @transform_6(%arg0: i32, %arg1: i32) -> (i32, i32) {
    %c0_i32 = arith.constant 0 : i32
    %c0_i32_0 = arith.constant 0 : i32
    return %arg0, %c0_i32 : i32, i32
  }
}

</mosaic_0001>

<bundles_post_ra>
// kernel: transformer_encoder_layer.5
= control target key start
LH: loop header
LB: loop body
LE: loop exit
PB: predicated region body
PF: predicated region fallthrough
CT: control target
= control target key end

     0   :  { %8 = vsyncpa [#allocation4], 0  ;;  %s1710_s0 = inlined_call_operand.vmem [shape: bf16[64,128], index: 0, kind: input, shape index: {}]   ;;  %s1711_s1 = inlined_call_operand.hbm [shape: bf16[128,1536], index: 1, kind: input, shape index: {}]   ;;  %s1712_s2 = inlined_call_operand.vmem [shape: f32[1,1536], index: 2, kind: input, shape index: {}]   ;;  %s1713_s3 = inlined_call_operand.vmem [shape: bf16[64,1536], index: 3, kind: output, shape index: {}]  }
   0x1   :  { %10 = vsyncpa [#allocation4 + $0x1], 0  ;;  %s1442_s12 = smov 0   ;;  %s1444_s13 = smov 0  }
   0x2   :  { %s1446_s14 = smov 0   ;;  %s1448_s15 = smov 0  }
   0x3   :  { %s1450_s16 = smov 0   ;;  %s1452_s17 = smov 0  }
   0x4 LB: > { %s1137_s18 = sadd.s32 4294967295, %s1415_s17   ;;  %s31_s19 = sadd.s32 1, %s1411_s16  ;;  %s1415_s17 = sphi %s1452_s17, %s16_s17   ;;  %s1411_s16 = sphi %s1450_s16, %s1724_s16   ;;  %s1407_s15 = sphi %s1448_s15, %s1723_s15   ;;  %s1403_s14 = sphi %s1446_s14, %s1722_s14   ;;  %s1399_s13 = sphi %s1444_s13, %s1721_s13   ;;  %s1395_s12 = sphi %s1442_s12, %s1720_s12  }
   0x5   : > { %p33_p0 = scmp.ge.s32.totalorder %s31_s19, 3  ;;  %s72_s20 = sadd.s32 1, %s1403_s14 }
   0x6   : > { %p79_p1 = scmp.ne.s32.totalorder %s1403_s14, %s1399_s13  ;;  %p80_p2 = scmp.eq.s32.totalorder %s1415_s17, 0 }
   0x7   : > { %s1726_s19 = smov (%p33_p0, %s31_s19), 0  ;;  %p85_p4 = scmp.ne.s32.totalorder %s1399_s13, %s1395_s12 }
   0x8   : > { %p1478_p3 = por %p80_p2, %p79_p1  ;;  %s68_s22 = ssub.s32 %s1411_s16, %s1726_s19 }
   0x9   : > { %p86_p5 = scmp.eq.s32.totalorder %s1137_s18, 0  ;;  %p70_p6 = scmp.eq.s32.totalorder %s68_s22, 0 }
   0xa   : > { %p137_p7 = scmp.eq.s32.totalorder %s1137_s18, 2  ;;  %p1230_p10 = scmp.lt.s32.totalorder %s1415_s17, 3 }
   0xb   : > { %p1485_p8 = por %p86_p5, %p85_p4  ;;  %s175_s26 = sand.u32 1, %s1403_s14  }
   0xc   : > { %s1490_s24 = scalar_select %p70_p6, %s1403_s14, %s72_s20  }
   0xd   : > { %p1492_p9 = por %p137_p7, %p79_p1  ;;  %s1206_s27 = sshll.u32 %s1411_s16, 8 }
   0xe   : > { %s1142_s28 = sshll.u32 %s175_s26, 8  ;;  %s1502_s4 = scalar_lea.hbm %s1711_s1, %s1206_s27 }
   0xf   : > { %s1716_s25 = scalar_select %p1492_p9, 1, 0 }
  0x10   : > { %s179_s5 = scalar_lea.vmem [#allocation3], %s1142_s28  ;;  %p1506_p11 = pnand %p1230_p10, %p1478_p3 }
  0x11   : > { %s189_s6 = sshll.u32 %s179_s5, 4  ;;  %s1513_s8 = scalar_lea.sflag [#allocation4], %s175_s26  ;;  %s1510_s6 = int_to_ptr.vmem [resolvable:$true] %s189_s6 }
  0x12   : > { %s1335_s9 = scalar_lea.hbm %s1502_s4, 4096  ;;  %p1337_p0 = pneg %p1506_p11 }
  0x13   : > { %p1336_p13 = scmp.ne.s32.totalorder %s1502_s4, %s1335_s9  ;;  %s1340_s12 = scalar_lea.hbm %s1711_s1, 12288 }
  0x14   : > { %p1341_p3 = scmp.lt.u32.totalorder %s1502_s4, %s1711_s1  ;;  %p1342_p4 = scmp.lt.u32.totalorder %s1340_s12, %s1335_s9 }
  0x15   : > { %p1338_p1 = pnand %p1337_p0, %p1336_p13  ;;  %p1344_p6 = scmp.lt.u32.totalorder %s1335_s9, %s1502_s4 }
  0x16   : > { %p1343_p5 = por %p1342_p4, %p1341_p3 }
  0x17   : > { %p1339_p2 = pneg %p1338_p1 }
  0x18   : > { %p1345_p7 = por %p1344_p6, %p1343_p5 }
  0x1a   : > { %p1346_p10 = pnand %p1345_p7, %p1339_p2 }
  0x1c   : > { %1349 = shalt.err (!%p1346_p10)
}
  0x1d   : > { %s1350_s21 = scalar_lea.vmem %s1510_s6, 4096  ;;  %s1417_s22 = smov [#allocation3]  }
  0x1e   : > { %p1351_p13 = scmp.ne.s32.totalorder %s1510_s6, %s1350_s21  ;;  %s1355_s26 = sshll.u32 %s1417_s22, 4  ;;  %s1356_s26 = int_to_ptr.vmem [resolvable:$false] %s1355_s26 }
  0x1f   : > { %s1357_s27 = scalar_lea.vmem %s1356_s26, 8192  ;;  %p1358_p9 = scmp.lt.s32.totalorder %s1510_s6, %s1356_s26 }
  0x20   : > { %p1353_p1 = pnand %p1351_p13, %p1337_p0  ;;  %p1359_p3 = scmp.lt.s32.totalorder %s1357_s27, %s1350_s21 }
  0x22   : > { %p1354_p12 = pneg %p1353_p1  ;;  %p1360_p4 = por %p1359_p3, %p1358_p9 }
  0x24   : > { %p1361_p5 = pnand %p1360_p4, %p1354_p12 }
  0x26   : > { %1364 = shalt.err (!%p1361_p5)
}
  0x27   : > { %s1418_s28 = smov 768   ;;  %s1419_s29 = smov 256  }
  0x28   : > { %s1420_s30 = smov 16   ;;  %p205_p0 = scmp.lt.s32.totalorder %s1415_s17, 4 }
  0x29   : > { %1229 = dma.hbm_to_vmem [thread:$0]  (!%p1506_p11), %s1502_s4, 4096, %s1510_s6, %s1513_s8, %s1418_s28, %s1419_s29, %s1420_s30  }
  0x2a   : > { %p1718_p2 = scmp.ge.s32.totalorder %s1415_s17, 1 }
  0x2c   : > { %p206_p6 = pnand %p1718_p2, %p205_p0 }
  0x2d   : > { %s1545_s5 = sand.u32 (!%p206_p6), 1, %s1399_s13  }
  0x2e   : > { %209 = sbr.rel (%p206_p6) target bundleno = 340 (0x154), region = 32  ;;  %s1146_s9 = sshll.u32 (!%p206_p6), %s1545_s5, 8 }
  0x2f   : > { %s212_s10 = scalar_lea.sflag (!%p206_p6), [#allocation4], %s1545_s5  ;;  %s1549_s11 = scalar_lea.vmem (!%p206_p6), [#allocation3], %s1146_s9 }
  0x35   : > { %1390 = dma.done.wait (%p1485_p8), %s212_s10, 4096  }
  0x36   : > { %1392 = vsyncadd (%p1485_p8), %s212_s10, 4294963200  ;;  %v1421_v0 = vmov 0   ;;  %v1283_v1 = vld [vmem:[%s1549_s11 + $0x4] ss:$16 sps:$4 sm:$0xff]   ;;  %v1285_v2 = vld [vmem:[%s1549_s11 + $0xc] ss:$16 sps:$4 sm:$0xff]   ;;  %v807_v37 = vlaneseq }
  0x37   : > { %592 = vmatprep.mubr.bf16.mxu0 %v1421_v0  ;;  %665 = vmatprep.mubr.bf16.mxu1 %v1421_v0  ;;  %v1287_v3 = vld [vmem:[%s1549_s11] ss:$16 sps:$4 sm:$0xff]   ;;  %v1288_v4 = vld [vmem:[%s1549_s11 + $0x8] ss:$16 sps:$4 sm:$0xff]   ;;  %v1289_v5 = vld [vmem:[%s1549_s11 + $0x24] ss:$16 sps:$4 sm:$0xff]  }
  0x38   : > { %560 = vmatprep.subr.bf16.mxu0 %v1283_v1  ;;  %633 = vmatprep.subr.bf16.mxu1 %v1285_v2  ;;  %v1291_v6 = vld [vmem:[%s1549_s11 + $0x2c] ss:$16 sps:$4 sm:$0xff]   ;;  %v1293_v7 = vld [vmem:[%s1549_s11 + $0x20] ss:$16 sps:$4 sm:$0xff]   ;;  %v1294_v8 = vld [vmem:[%s1549_s11 + $0x28] ss:$16 sps:$4 sm:$0xff]  }
  0x39   : > { %561 = vmatpush1.bf16.msra.mxu0 %v1287_v3  ;;  %634 = vmatpush1.bf16.msra.mxu1 %v1288_v4  ;;  %v1295_v9 = vld [vmem:[%s1549_s11 + $0x44] ss:$16 sps:$4 sm:$0xff]   ;;  %v1297_v10 = vld [vmem:[%s1549_s11 + $0x4c] ss:$16 sps:$4 sm:$0xff]   ;;  %v1299_v11 = vld [vmem:[%s1549_s11 + $0x40] ss:$16 sps:$4 sm:$0xff]  }
  0x3a   : > { %562 = vmatprep.subr.bf16.mxu0 %v1289_v5  ;;  %635 = vmatprep.subr.bf16.mxu1 %v1291_v6  ;;  %v1300_v12 = vld [vmem:[%s1549_s11 + $0x48] ss:$16 sps:$4 sm:$0xff]   ;;  %v1301_v13 = vld [vmem:[%s1549_s11 + $0x64] ss:$16 sps:$4 sm:$0xff]   ;;  %v1303_v14 = vld [vmem:[%s1549_s11 + $0x6c] ss:$16 sps:$4 sm:$0xff]  }
  0x3b   : > { %v1305_v15 = vld [vmem:[%s1549_s11 + $0x60] ss:$16 sps:$4 sm:$0xff]   ;;  %v1306_v16 = vld [vmem:[%s1549_s11 + $0x68] ss:$16 sps:$4 sm:$0xff]   ;;  %v1307_v17 = vld [vmem:[%s1549_s11 + $0x84] ss:$16 sps:$4 sm:$0xff]  }
  0x3c   : > { %v1309_v18 = vld [vmem:[%s1549_s11 + $0x8c] ss:$16 sps:$4 sm:$0xff]   ;;  %v1311_v19 = vld [vmem:[%s1549_s11 + $0x80] ss:$16 sps:$4 sm:$0xff]   ;;  %v1312_v20 = vld [vmem:[%s1549_s11 + $0x88] ss:$16 sps:$4 sm:$0xff]  }
  0x3d   : > { %563 = vmatpush1.bf16.msra.mxu0 %v1293_v7  ;;  %636 = vmatpush1.bf16.msra.mxu1 %v1294_v8  ;;  %v1313_v21 = vld [vmem:[%s1549_s11 + $0xa4] ss:$16 sps:$4 sm:$0xff]   ;;  %v1315_v22 = vld [vmem:[%s1549_s11 + $0xac] ss:$16 sps:$4 sm:$0xff]   ;;  %v1317_v23 = vld [vmem:[%s1549_s11 + $0xa0] ss:$16 sps:$4 sm:$0xff]  }
  0x3e   : > { %564 = vmatprep.subr.bf16.mxu0 %v1295_v9  ;;  %637 = vmatprep.subr.bf16.mxu1 %v1297_v10  ;;  %v1318_v24 = vld [vmem:[%s1549_s11 + $0xa8] ss:$16 sps:$4 sm:$0xff]   ;;  %v1319_v25 = vld [vmem:[%s1549_s11 + $0xc4] ss:$16 sps:$4 sm:$0xff]   ;;  %v1321_v26 = vld [vmem:[%s1549_s11 + $0xcc] ss:$16 sps:$4 sm:$0xff]  }
  0x3f   : > { %v1323_v27 = vld [vmem:[%s1549_s11 + $0xc0] ss:$16 sps:$4 sm:$0xff]   ;;  %v1324_v28 = vld [vmem:[%s1549_s11 + $0xc8] ss:$16 sps:$4 sm:$0xff]   ;;  %v1325_v29 = vld [vmem:[%s1549_s11 + $0xe4] ss:$16 sps:$4 sm:$0xff]  }
  0x40   : > { %v1327_v30 = vld [vmem:[%s1549_s11 + $0xec] ss:$16 sps:$4 sm:$0xff]   ;;  %v1329_v31 = vld [vmem:[%s1549_s11 + $0xe0] ss:$16 sps:$4 sm:$0xff]   ;;  %v1330_v32 = vld [vmem:[%s1549_s11 + $0xe8] ss:$16 sps:$4 sm:$0xff]  }
  0x41   : > { %565 = vmatpush1.bf16.msra.mxu0 %v1299_v11  ;;  %638 = vmatpush1.bf16.msra.mxu1 %v1300_v12  ;;  %v1331_v33 = vld [vmem:[%s1710_s0] sm:$0xff]   ;;  %v1332_v34 = vld [vmem:[%s1710_s0 + $0x8] sm:$0xff]   ;;  %v1333_v35 = vld [vmem:[%s1710_s0 + $0x10] sm:$0xff]   ;;  %s1148_s21 = sshll.u32 %s1407_s15, 2  ;;  %v808_v38 = vshrl.u32 %v807_v37, 7  ;;  %s1147_s28 = sshll.u32 %s1545_s5, 7 }
  0x42   : > { %566 = vmatprep.subr.bf16.mxu0 %v1301_v13  ;;  %639 = vmatprep.subr.bf16.mxu1 %v1303_v14  ;;  %v1334_v36 = vld [vmem:[%s1710_s0 + $0x18] sm:$0xff]   ;;  %p261_p8 = scmp.lt.s32.totalorder %s1148_s21, 11  ;;  %s1628_s29 = scalar_lea.vmem [#allocation5], %s1147_s28 }
  0x43   : > { %v809_v39 = vsub.s32 0, %v808_v38  ;;  %v817_v40 = vsub.s32 2, %v808_v38  ;;  %v813_v42 = vsub.s32 1, %v808_v38  ;;  %v821_v43 = vsub.s32 3, %v808_v38  ;;  %p1719_p9 = scmp.ne.s32.totalorder %s1716_s25, 0 }
  0x44   : > { %s1728_s21 = smov (!%p261_p8, %s1148_s21), 11  ;;  %s1223_s30 = sshll.u32 (%p1719_p9), %s1407_s15, 4 }
  0x45   : > { %567 = vmatpush1.bf16.msra.mxu0 %v1305_v15  ;;  %640 = vmatpush1.bf16.msra.mxu1 %v1306_v16  ;;  %s263_s27 = scalar_lea.vmem %s1712_s2, %s1728_s21  ;;  %s983_s10 = scalar_lea.vmem (%p1719_p9), %s1713_s3, %s1223_s30 }
  0x46   : > { %568 = vmatprep.subr.bf16.mxu0 %v1307_v17  ;;  %641 = vmatprep.subr.bf16.mxu1 %v1309_v18  ;;  %v805_v41 = vld [vmem:[%s263_s27] sm:$0xf] }
  0x47   : > { %v1611_v44 = vrot.slane %v805_v41, %v809_v39  ;;  %v1613_v45 = vrot.slane %v805_v41, %v817_v40  ;;  %v1615_v46 = vrot.slane %v805_v41, %v813_v42  ;;  %v1617_v47 = vrot.slane %v805_v41, %v821_v43 }
  0x49   : > { %569 = vmatpush1.bf16.msra.mxu0 %v1311_v19  ;;  %642 = vmatpush1.bf16.msra.mxu1 %v1312_v20 }
  0x4a   : > { %570 = vmatprep.subr.bf16.mxu0 %v1313_v21  ;;  %643 = vmatprep.subr.bf16.mxu1 %v1315_v22 }
  0x4d   : > { %571 = vmatpush1.bf16.msra.mxu0 %v1317_v23  ;;  %644 = vmatpush1.bf16.msra.mxu1 %v1318_v24 }
  0x4e   : > { %572 = vmatprep.subr.bf16.mxu0 %v1319_v25  ;;  %645 = vmatprep.subr.bf16.mxu1 %v1321_v26 }
  0x51   : > { %573 = vmatpush1.bf16.msra.mxu0 %v1323_v27  ;;  %646 = vmatpush1.bf16.msra.mxu1 %v1324_v28 }
  0x52   : > { %574 = vmatprep.subr.bf16.mxu0 %v1325_v29  ;;  %647 = vmatprep.subr.bf16.mxu1 %v1327_v30 }
  0x55   : > { %575 = vmatpush1.bf16.msra.mxu0 %v1329_v31  ;;  %648 = vmatpush1.bf16.msra.mxu1 %v1330_v32 }
  0x58   : > { %593 = vmatmul.mubr.bf16.vlgmr.msra.gmra.mrb[0].mxu0 %v1331_v33  ;;  %666 = vmatmul.mubr.bf16.vlgmr.msra.gmra.mrb[0].mxu1 %v1331_v33 }
  0x59   : > { %602 = vmatprep.mubr.bf16.mxu0 %v1421_v0  ;;  %675 = vmatprep.mubr.bf16.mxu1 %v1421_v0 }
  0x60   : > { %603 = vmatmul.mubr.bf16.gmra.mrb[4].mxu0 %v1332_v34  ;;  %676 = vmatmul.mubr.bf16.gmra.mrb[4].mxu1 %v1332_v34 }
  0x61   : > { %612 = vmatprep.mubr.bf16.mxu0 %v1421_v0  ;;  %685 = vmatprep.mubr.bf16.mxu1 %v1421_v0 }
  0x68   : > { %613 = vmatmul.mubr.bf16.gmra.mrb[8].mxu0 %v1333_v35  ;;  %686 = vmatmul.mubr.bf16.gmra.mrb[8].mxu1 %v1333_v35 }
  0x69   : > { %622 = vmatprep.mubr.bf16.mxu0 %v1421_v0  ;;  %695 = vmatprep.mubr.bf16.mxu1 %v1421_v0 }
  0x70   : > { %623 = vmatmul.mubr.bf16.gmra.mrb[12].mxu0 %v1334_v36  ;;  %696 = vmatmul.mubr.bf16.gmra.mrb[12].mxu1 %v1334_v36 }
 0x12b   : > { %v594_v48 = vpop.f32.mrb[0].mxu0  ;;  %v667_v49 = vpop.f32.mrb[0].mxu1 }
 0x12c   : > { %v827_v50 = vadd.f32 %v1611_v44, %v594_v48  ;;  %v829_v51 = vadd.f32 %v1613_v45, %v667_v49  ;;  %v596_v52 = vpop.f32.mrb[1].mxu0  ;;  %v669_v53 = vpop.f32.mrb[1].mxu1 }
 0x12d   : > { %v828_v54 = vadd.f32 %v1615_v46, %v596_v52  ;;  %v830_v55 = vadd.f32 %v1617_v47, %v669_v53  ;;  %v598_v56 = vpop.f32.mrb[2].mxu0  ;;  %v671_v57 = vpop.f32.mrb[2].mxu1 }
 0x12e   : > { %v831_v58 = vadd.f32 %v1611_v44, %v598_v56  ;;  %v833_v59 = vadd.f32 %v1613_v45, %v671_v57  ;;  %v600_v60 = vpop.f32.mrb[3].mxu0  ;;  %v673_v61 = vpop.f32.mrb[3].mxu1 }
 0x12f   : > { %v1207_v62 = vpack.c.bf16 %v828_v54, %v827_v50  ;;  %v1208_v63 = vpack.c.bf16 %v830_v55, %v829_v51  ;;  %v832_v0 = vadd.f32 %v1615_v46, %v600_v60  ;;  %v834_v1 = vadd.f32 %v1617_v47, %v673_v61 }
 0x131   : > { %955 = vst [vmem:[%s1628_s29] sm:$0xff] %v1207_v62  ;;  %956 = vst [vmem:[%s1628_s29 + $0x8] sm:$0xff] %v1208_v63  ;;  %v1209_v2 = vpack.c.bf16 %v832_v0, %v831_v58  ;;  %v1210_v3 = vpack.c.bf16 %v834_v1, %v833_v59 }
 0x133   : > { %957 = vst [vmem:[%s1628_s29 + $0x10] sm:$0xff] %v1209_v2  ;;  %958 = vst [vmem:[%s1628_s29 + $0x18] sm:$0xff] %v1210_v3  ;;  %v604_v4 = vpop.f32.mrb[4].mxu0  ;;  %v677_v5 = vpop.f32.mrb[4].mxu1 }
 0x134   : > { %v835_v6 = vadd.f32 %v1611_v44, %v604_v4  ;;  %v837_v7 = vadd.f32 %v1613_v45, %v677_v5  ;;  %v606_v8 = vpop.f32.mrb[5].mxu0  ;;  %v679_v9 = vpop.f32.mrb[5].mxu1 }
 0x135   : > { %v836_v10 = vadd.f32 %v1615_v46, %v606_v8  ;;  %v838_v11 = vadd.f32 %v1617_v47, %v679_v9  ;;  %v608_v12 = vpop.f32.mrb[6].mxu0  ;;  %v681_v13 = vpop.f32.mrb[6].mxu1 }
 0x136   : > { %v839_v14 = vadd.f32 %v1611_v44, %v608_v12  ;;  %v841_v15 = vadd.f32 %v1613_v45, %v681_v13  ;;  %v610_v16 = vpop.f32.mrb[7].mxu0  ;;  %v683_v17 = vpop.f32.mrb[7].mxu1 }
 0x137   : > { %v1211_v18 = vpack.c.bf16 %v836_v10, %v835_v6  ;;  %v1212_v19 = vpack.c.bf16 %v838_v11, %v837_v7  ;;  %v840_v20 = vadd.f32 %v1615_v46, %v610_v16  ;;  %v842_v21 = vadd.f32 %v1617_v47, %v683_v17 }
 0x139   : > { %959 = vst [vmem:[%s1628_s29 + $0x20] sm:$0xff] %v1211_v18  ;;  %960 = vst [vmem:[%s1628_s29 + $0x28] sm:$0xff] %v1212_v19  ;;  %v1213_v22 = vpack.c.bf16 %v840_v20, %v839_v14  ;;  %v1214_v23 = vpack.c.bf16 %v842_v21, %v841_v15 }
 0x13b   : > { %961 = vst [vmem:[%s1628_s29 + $0x30] sm:$0xff] %v1213_v22  ;;  %962 = vst [vmem:[%s1628_s29 + $0x38] sm:$0xff] %v1214_v23  ;;  %v614_v24 = vpop.f32.mrb[8].mxu0  ;;  %v687_v25 = vpop.f32.mrb[8].mxu1 }
 0x13c   : > { %v843_v26 = vadd.f32 %v1611_v44, %v614_v24  ;;  %v845_v27 = vadd.f32 %v1613_v45, %v687_v25  ;;  %v616_v28 = vpop.f32.mrb[9].mxu0  ;;  %v689_v29 = vpop.f32.mrb[9].mxu1 }
 0x13d   : > { %v844_v30 = vadd.f32 %v1615_v46, %v616_v28  ;;  %v846_v31 = vadd.f32 %v1617_v47, %v689_v29  ;;  %v618_v32 = vpop.f32.mrb[10].mxu0  ;;  %v691_v33 = vpop.f32.mrb[10].mxu1 }
 0x13e   : > { %v847_v34 = vadd.f32 %v1611_v44, %v618_v32  ;;  %v849_v35 = vadd.f32 %v1613_v45, %v691_v33  ;;  %v620_v36 = vpop.f32.mrb[11].mxu0  ;;  %v693_v37 = vpop.f32.mrb[11].mxu1 }
 0x13f   : > { %v1215_v38 = vpack.c.bf16 %v844_v30, %v843_v26  ;;  %v1216_v39 = vpack.c.bf16 %v846_v31, %v845_v27  ;;  %v848_v40 = vadd.f32 %v1615_v46, %v620_v36  ;;  %v850_v41 = vadd.f32 %v1617_v47, %v693_v37 }
 0x140   : > { %v1004_v4 = vld [vmem:[%s1628_s29 + $0x20] sm:$0xff] (%p1719_p9)  ;;  %v1006_v5 = vld [vmem:[%s1628_s29 + $0x28] sm:$0xff] (%p1719_p9) }
 0x141   : > { %963 = vst [vmem:[%s1628_s29 + $0x40] sm:$0xff] %v1215_v38  ;;  %964 = vst [vmem:[%s1628_s29 + $0x48] sm:$0xff] %v1216_v39  ;;  %v1217_v42 = vpack.c.bf16 %v848_v40, %v847_v34  ;;  %v1218_v43 = vpack.c.bf16 %v850_v41, %v849_v35 }
 0x142   : > { %1005 = vst [vmem:[%s983_s10 + $0x60] sm:$0xff] (%p1719_p9), %v1004_v4  ;;  %1007 = vst [vmem:[%s983_s10 + $0x68] sm:$0xff] (%p1719_p9), %v1006_v5  ;;  %v1008_v6 = vld [vmem:[%s1628_s29 + $0x30] sm:$0xff] (%p1719_p9)  ;;  %v1010_v7 = vld [vmem:[%s1628_s29 + $0x38] sm:$0xff] (%p1719_p9) }
 0x143   : > { %965 = vst [vmem:[%s1628_s29 + $0x50] sm:$0xff] %v1217_v42  ;;  %966 = vst [vmem:[%s1628_s29 + $0x58] sm:$0xff] %v1218_v43  ;;  %v624_v48 = vpop.f32.mrb[12].mxu0  ;;  %v697_v49 = vpop.f32.mrb[12].mxu1 }
 0x144   : > { %v851_v50 = vadd.f32 %v1611_v44, %v624_v48  ;;  %v853_v51 = vadd.f32 %v1613_v45, %v697_v49  ;;  %v626_v52 = vpop.f32.mrb[13].mxu0  ;;  %v699_v53 = vpop.f32.mrb[13].mxu1  ;;  %1009 = vst [vmem:[%s983_s10 + $0x90] sm:$0xff] (%p1719_p9), %v1008_v6  ;;  %1011 = vst [vmem:[%s983_s10 + $0x98] sm:$0xff] (%p1719_p9), %v1010_v7 }
 0x145   : > { %v852_v54 = vadd.f32 %v1615_v46, %v626_v52  ;;  %v854_v55 = vadd.f32 %v1617_v47, %v699_v53  ;;  %v628_v56 = vpop.f32.mrb[14].mxu0  ;;  %v701_v57 = vpop.f32.mrb[14].mxu1  ;;  %977 = sbr.rel (!%p1719_p9) target bundleno = 340 (0x154), region = 48 }
 0x146   : > { %v855_v58 = vadd.f32 %v1611_v44, %v628_v56  ;;  %v857_v59 = vadd.f32 %v1613_v45, %v701_v57  ;;  %v630_v60 = vpop.f32.mrb[15].mxu0  ;;  %v703_v61 = vpop.f32.mrb[15].mxu1  ;;  %v996_v44 = vld [vmem:[%s1628_s29] sm:$0xff] (%p1719_p9)  ;;  %v998_v45 = vld [vmem:[%s1628_s29 + $0x8] sm:$0xff] (%p1719_p9) }
 0x147   : > { %v1219_v62 = vpack.c.bf16 %v852_v54, %v851_v50  ;;  %v1220_v63 = vpack.c.bf16 %v854_v55, %v853_v51  ;;  %v856_v0 = vadd.f32 %v1615_v46, %v630_v60  ;;  %v858_v1 = vadd.f32 %v1617_v47, %v703_v61  ;;  %v1000_v46 = vld [vmem:[%s1628_s29 + $0x10] sm:$0xff] (%p1719_p9)  ;;  %v1002_v47 = vld [vmem:[%s1628_s29 + $0x18] sm:$0xff] (%p1719_p9)  ;;  %997 = vst [vmem:[%s983_s10] sm:$0xff] (%p1719_p9), %v996_v44 }
 0x148   : > { %999 = vst [vmem:[%s983_s10 + $0x8] sm:$0xff] (%p1719_p9), %v998_v45  ;;  %1001 = vst [vmem:[%s983_s10 + $0x30] sm:$0xff] (%p1719_p9), %v1000_v46  ;;  %v1012_v8 = vld [vmem:[%s1628_s29 + $0x40] sm:$0xff] (%p1719_p9)  ;;  %v1014_v9 = vld [vmem:[%s1628_s29 + $0x48] sm:$0xff] (%p1719_p9) }
 0x149   : > { %967 = vst [vmem:[%s1628_s29 + $0x60] sm:$0xff] %v1219_v62  ;;  %968 = vst [vmem:[%s1628_s29 + $0x68] sm:$0xff] %v1220_v63  ;;  %v1221_v2 = vpack.c.bf16 %v856_v0, %v855_v58  ;;  %v1222_v3 = vpack.c.bf16 %v858_v1, %v857_v59 }
 0x14a   : > { %1003 = vst [vmem:[%s983_s10 + $0x38] sm:$0xff] (%p1719_p9), %v1002_v47  ;;  %1013 = vst [vmem:[%s983_s10 + $0xc0] sm:$0xff] (%p1719_p9), %v1012_v8  ;;  %v1016_v10 = vld [vmem:[%s1628_s29 + $0x50] sm:$0xff] (%p1719_p9)  ;;  %v1018_v11 = vld [vmem:[%s1628_s29 + $0x58] sm:$0xff] (%p1719_p9) }
 0x14b   : > { %969 = vst [vmem:[%s1628_s29 + $0x70] sm:$0xff] %v1221_v2  ;;  %970 = vst [vmem:[%s1628_s29 + $0x78] sm:$0xff] %v1222_v3 }
 0x14c   : > { %1015 = vst [vmem:[%s983_s10 + $0xc8] sm:$0xff] %v1014_v9  ;;  %1017 = vst [vmem:[%s983_s10 + $0xf0] sm:$0xff] %v1016_v10 }
 0x14d   : > { %1019 = vst [vmem:[%s983_s10 + $0xf8] sm:$0xff] %v1018_v11 }
 0x150   : > { %v1020_v12 = vld [vmem:[%s1628_s29 + $0x60] sm:$0xff]  ;;  %v1022_v13 = vld [vmem:[%s1628_s29 + $0x68] sm:$0xff] }
 0x151   : > { %1021 = vst [vmem:[%s983_s10 + $0x120] sm:$0xff] %v1020_v12  ;;  %1023 = vst [vmem:[%s983_s10 + $0x128] sm:$0xff] %v1022_v13 }
 0x152   : > { %v1024_v14 = vld [vmem:[%s1628_s29 + $0x70] sm:$0xff]  ;;  %v1026_v15 = vld [vmem:[%s1628_s29 + $0x78] sm:$0xff] }
 0x153   : > { %1025 = vst [vmem:[%s983_s10 + $0x150] sm:$0xff] %v1024_v14  ;;  %1027 = vst [vmem:[%s983_s10 + $0x158] sm:$0xff] %v1026_v15 }
 0x154 PF: > { %s16_s17 = sadd.s32 1, %s1415_s17   ;;  %s1720_s12 = smov %s1399_s13 }
 0x155   : > { %p13_p11 = scmp.ge.s32.totalorder %s16_s17, 5   ;;  %s1721_s13 = smov %s1403_s14 }
 0x156   : > { %s1722_s14 = smov %s1490_s24  ;;  %s1723_s15 = smov %s1411_s16 }
 0x157   : > { %s1724_s16 = smov %s1726_s19  ;;  %15 = sbr.rel (!%p13_p11) target bundleno = 4 (0x4), region = 109 }
 0x15e   :  { %1043 = vsyncpa [#allocation4], 1 }
 0x15f   :  { %1045 = vsyncpa [#allocation4 + $0x1], 1 }

// kernel: transformer_encoder_layer.6
= control target key start
LH: loop header
LB: loop body
LE: loop exit
PB: predicated region body
PF: predicated region fallthrough
CT: control target
= control target key end

     0   :  { %s2890_s18 = smov 0   ;;  %s2892_s19 = smov 0   ;;  %s3494_s0 = inlined_call_operand.vmem [shape: bf16[16,4,1536], index: 0, kind: input, shape index: {}, may-alias: {0,1,2}]   ;;  %s3495_s1 = inlined_call_operand.vmem [shape: bf16[16,4,1536], index: 1, kind: input, shape index: {}, may-alias: {0,1,2}]   ;;  %s3496_s2 = inlined_call_operand.vmem [shape: bf16[16,4,1536], index: 2, kind: input, shape index: {}, may-alias: {0,1,2}]   ;;  %s3497_s3 = inlined_call_operand.vmem [shape: f32[16,16], index: 3, kind: input, shape index: {}]   ;;  %s3498_s4 = inlined_call_operand.vmem [shape: f32[4,1,16], index: 4, kind: input, shape index: {}]   ;;  %s3499_s5 = inlined_call_operand.vmem [shape: bf16[16,4,512], index: 5, kind: output, shape index: {}]  }
   0x1   :  { %s2894_s20 = smov 0   ;;  %s2896_s21 = smov 0  }
   0x2   :  { %s2898_s22 = smov 0   ;;  %s2900_s23 = smov 0  }
   0x3   :  { %s2902_s24 = smov 0   ;;  %s2904_s25 = smov 0  }
   0x4   :  { %s2906_s26 = smov 0  }
   0x5 LB: > { %s2481_s27 = sadd.s32 4294967295, %s2852_s26   ;;  %s34_s28 = sadd.s32 1, %s2848_s25  ;;  %s2852_s26 = sphi %s2906_s26, %s15_s26   ;;  %s2848_s25 = sphi %s2904_s25, %s3511_s25   ;;  %s2844_s24 = sphi %s2902_s24, %s3510_s24   ;;  %s2840_s23 = sphi %s2900_s23, %s3509_s23   ;;  %s2836_s22 = sphi %s2898_s22, %s3508_s22   ;;  %s2832_s21 = sphi %s2896_s21, %s3507_s21   ;;  %s2828_s20 = sphi %s2894_s20, %s3506_s20   ;;  %s2824_s19 = sphi %s2892_s19, %s3505_s19   ;;  %s2820_s18 = sphi %s2890_s18, %s3504_s18  }
   0x6   : > { %p36_p0 = scmp.ge.s32.totalorder %s34_s28, 4  ;;  %s43_s29 = sadd.s32 1, %s2840_s23 }
   0x7   : > { %p50_p1 = scmp.ne.s32.totalorder %s2840_s23, %s2836_s22  ;;  %p51_p2 = scmp.eq.s32.totalorder %s2852_s26, 0 }
   0x8   : > { %s3513_s28 = smov (%p36_p0, %s34_s28), 0  ;;  %s66_s6 = sadd.s32 4, %s2848_s25 }
   0x9   : > { %p2948_p3 = por %p51_p2, %p50_p1  ;;  %s39_s7 = ssub.s32 %s2848_s25, %s3513_s28 }
   0xa   : > { %s67_s8 = sadd.s32 4, %s3513_s28  ;;  %p41_p4 = scmp.eq.s32.totalorder %s39_s7, 0 }
   0xb   : > { %s69_s9 = ssub.s32 %s66_s6, %s67_s8  ;;  %s73_s10 = sadd.s32 1, %s2832_s21 }
   0xc   : > { %p71_p5 = scmp.eq.s32.totalorder %s69_s9, 0  ;;  %p80_p6 = scmp.ne.s32.totalorder %s2832_s21, %s2828_s20 }
   0xd   : > { %s2958_s11 = scalar_select %p41_p4, %s2840_s23, %s43_s29  }
   0xe   : > { %s2961_s12 = scalar_select %p71_p5, %s2832_s21, %s73_s10  }
   0xf   : > { %s96_s13 = sadd.s32 8, %s2848_s25  ;;  %s97_s14 = sadd.s32 8, %s3513_s28 }
  0x10   : > { %s103_s15 = sadd.s32 1, %s2824_s19  ;;  %p2970_p7 = por %p80_p6, %p51_p2 }
  0x11   : > { %s99_s17 = ssub.s32 %s96_s13, %s97_s14  ;;  %p110_p9 = scmp.ne.s32.totalorder %s2824_s19, %s2820_s18 }
  0x12   : > { %p101_p8 = scmp.eq.s32.totalorder %s99_s17, 0  ;;  %p196_p10 = scmp.eq.s32.totalorder %s2481_s27, 3 }
  0x13   : > { %p2981_p11 = por %p110_p9, %p51_p2  ;;  %p2486_p13 = scmp.ge.s32.totalorder %s2852_s26, 4 }
  0x14   : > { %s2977_s6 = scalar_select %p101_p8, %s2824_s19, %s103_s15  }
  0x15   : > { %p2988_p12 = por %p196_p10, %p50_p1  ;;  %236 = sbr.rel (%p2486_p13) target bundleno = 70 (0x46), region = 24 }
  0x1c   : > { %239 = sbr.rel (!%p2948_p3) target bundleno = 42 (0x2a), region = 28  ;;  %s241_s27 = sand.u32 (%p2948_p3), 1, %s2840_s23  }
  0x1d   : > { %s2488_s8 = sshll.u32 (%p2948_p3), %s2848_s25, 1  ;;  %s2487_s9 = sshll.u32 (%p2948_p3), %s241_s27, 5 }
  0x1e   : > { %s3000_s14 = scalar_lea.vmem (%p2948_p3), %s3494_s0, %s2488_s8  ;;  %s243_s30 = scalar_lea.vmem (%p2948_p3), [#allocation6], %s2487_s9 }
  0x1f   : > { %v264_v0 = vld [vmem:[%s3000_s14] sm:$0x3] (%p2948_p3)  ;;  %v266_v1 = vld [vmem:[%s3000_s14 + $0x18] sm:$0x3] (%p2948_p3)  ;;  %v268_v2 = vld [vmem:[%s3000_s14 + $0x30] sm:$0x3] (%p2948_p3) }
  0x20   : > { %265 = vst [vmem:[%s243_s30] sm:$0x3] (%p2948_p3), %v264_v0  ;;  %267 = vst [vmem:[%s243_s30 + $0x2] sm:$0x3] (%p2948_p3), %v266_v1  ;;  %v270_v3 = vld [vmem:[%s3000_s14 + $0x48] sm:$0x3] (%p2948_p3) }
  0x21   : > { %v272_v4 = vld [vmem:[%s3000_s14 + $0x60] sm:$0x3] (%p2948_p3)  ;;  %269 = vst [vmem:[%s243_s30 + $0x4] sm:$0x3] (%p2948_p3), %v268_v2  ;;  %271 = vst [vmem:[%s243_s30 + $0x6] sm:$0x3] (%p2948_p3), %v270_v3 }
  0x22   : > { %273 = vst [vmem:[%s243_s30 + $0x8] sm:$0x3] (%p2948_p3), %v272_v4  ;;  %v274_v5 = vld [vmem:[%s3000_s14 + $0x78] sm:$0x3] (%p2948_p3)  ;;  %v276_v6 = vld [vmem:[%s3000_s14 + $0x90] sm:$0x3] (%p2948_p3) }
  0x23   : > { %v278_v7 = vld [vmem:[%s3000_s14 + $0xa8] sm:$0x3]  ;;  %275 = vst [vmem:[%s243_s30 + $0xa] sm:$0x3] %v274_v5  ;;  %277 = vst [vmem:[%s243_s30 + $0xc] sm:$0x3] %v276_v6 }
  0x24   : > { %279 = vst [vmem:[%s243_s30 + $0xe] sm:$0x3] %v278_v7  ;;  %v280_v8 = vld [vmem:[%s3000_s14 + $0xc0] sm:$0x3]  ;;  %v282_v9 = vld [vmem:[%s3000_s14 + $0xd8] sm:$0x3] }
  0x25   : > { %v284_v10 = vld [vmem:[%s3000_s14 + $0xf0] sm:$0x3]  ;;  %281 = vst [vmem:[%s243_s30 + $0x10] sm:$0x3] %v280_v8  ;;  %283 = vst [vmem:[%s243_s30 + $0x12] sm:$0x3] %v282_v9 }
  0x26   : > { %285 = vst [vmem:[%s243_s30 + $0x14] sm:$0x3] %v284_v10  ;;  %v286_v11 = vld [vmem:[%s3000_s14 + $0x108] sm:$0x3]  ;;  %v288_v12 = vld [vmem:[%s3000_s14 + $0x120] sm:$0x3] }
  0x27   : > { %v290_v13 = vld [vmem:[%s3000_s14 + $0x138] sm:$0x3]  ;;  %287 = vst [vmem:[%s243_s30 + $0x16] sm:$0x3] %v286_v11  ;;  %289 = vst [vmem:[%s243_s30 + $0x18] sm:$0x3] %v288_v12 }
  0x28   : > { %291 = vst [vmem:[%s243_s30 + $0x1a] sm:$0x3] %v290_v13  ;;  %v292_v14 = vld [vmem:[%s3000_s14 + $0x150] sm:$0x3]  ;;  %v294_v15 = vld [vmem:[%s3000_s14 + $0x168] sm:$0x3] }
  0x29   : > { %293 = vst [vmem:[%s243_s30 + $0x1c] sm:$0x3] %v292_v14  ;;  %295 = vst [vmem:[%s243_s30 + $0x1e] sm:$0x3] %v294_v15 }
  0x2a PF: > { %350 = sbr.rel (!%p2970_p7) target bundleno = 56 (0x38), region = 69  ;;  %s352_s15 = sand.u32 (%p2970_p7), 1, %s2832_s21  }
  0x2b   : > { %s2490_s17 = sshll.u32 (%p2970_p7), %s2848_s25, 1  ;;  %s2489_s27 = sshll.u32 (%p2970_p7), %s352_s15, 5 }
  0x2c   : > { %s3025_s10 = scalar_lea.vmem (%p2970_p7), %s3495_s1, %s2490_s17  ;;  %s354_s16 = scalar_lea.vmem (%p2970_p7), [#allocation7], %s2489_s27 }
  0x2d   : > { %v2491_v16 = vld [vmem:[%s3025_s10 + $0x8] sm:$0x3] (%p2970_p7)  ;;  %v2492_v17 = vld [vmem:[%s3025_s10 + $0x20] sm:$0x3] (%p2970_p7)  ;;  %v2493_v18 = vld [vmem:[%s3025_s10 + $0x38] sm:$0x3] (%p2970_p7) }
  0x2e   : > { %377 = vst [vmem:[%s354_s16] sm:$0x3] (%p2970_p7), %v2491_v16  ;;  %379 = vst [vmem:[%s354_s16 + $0x2] sm:$0x3] (%p2970_p7), %v2492_v17  ;;  %v2494_v19 = vld [vmem:[%s3025_s10 + $0x50] sm:$0x3] (%p2970_p7) }
  0x2f   : > { %v2495_v20 = vld [vmem:[%s3025_s10 + $0x68] sm:$0x3] (%p2970_p7)  ;;  %381 = vst [vmem:[%s354_s16 + $0x4] sm:$0x3] (%p2970_p7), %v2493_v18  ;;  %383 = vst [vmem:[%s354_s16 + $0x6] sm:$0x3] (%p2970_p7), %v2494_v19 }
  0x30   : > { %385 = vst [vmem:[%s354_s16 + $0x8] sm:$0x3] (%p2970_p7), %v2495_v20  ;;  %v2496_v21 = vld [vmem:[%s3025_s10 + $0x80] sm:$0x3] (%p2970_p7)  ;;  %v2497_v22 = vld [vmem:[%s3025_s10 + $0x98] sm:$0x3] (%p2970_p7) }
  0x31   : > { %v2498_v23 = vld [vmem:[%s3025_s10 + $0xb0] sm:$0x3]  ;;  %387 = vst [vmem:[%s354_s16 + $0xa] sm:$0x3] %v2496_v21  ;;  %389 = vst [vmem:[%s354_s16 + $0xc] sm:$0x3] %v2497_v22 }
  0x32   : > { %391 = vst [vmem:[%s354_s16 + $0xe] sm:$0x3] %v2498_v23  ;;  %v2499_v24 = vld [vmem:[%s3025_s10 + $0xc8] sm:$0x3]  ;;  %v2500_v25 = vld [vmem:[%s3025_s10 + $0xe0] sm:$0x3] }
  0x33   : > { %v2501_v26 = vld [vmem:[%s3025_s10 + $0xf8] sm:$0x3]  ;;  %393 = vst [vmem:[%s354_s16 + $0x10] sm:$0x3] %v2499_v24  ;;  %395 = vst [vmem:[%s354_s16 + $0x12] sm:$0x3] %v2500_v25 }
  0x34   : > { %397 = vst [vmem:[%s354_s16 + $0x14] sm:$0x3] %v2501_v26  ;;  %v2502_v27 = vld [vmem:[%s3025_s10 + $0x110] sm:$0x3]  ;;  %v2503_v28 = vld [vmem:[%s3025_s10 + $0x128] sm:$0x3] }
  0x35   : > { %v2504_v29 = vld [vmem:[%s3025_s10 + $0x140] sm:$0x3]  ;;  %399 = vst [vmem:[%s354_s16 + $0x16] sm:$0x3] %v2502_v27  ;;  %401 = vst [vmem:[%s354_s16 + $0x18] sm:$0x3] %v2503_v28 }
  0x36   : > { %403 = vst [vmem:[%s354_s16 + $0x1a] sm:$0x3] %v2504_v29  ;;  %v2505_v30 = vld [vmem:[%s3025_s10 + $0x158] sm:$0x3]  ;;  %v2506_v31 = vld [vmem:[%s3025_s10 + $0x170] sm:$0x3] }
  0x37   : > { %405 = vst [vmem:[%s354_s16 + $0x1c] sm:$0x3] %v2505_v30  ;;  %407 = vst [vmem:[%s354_s16 + $0x1e] sm:$0x3] %v2506_v31 }
  0x38 PF: > { %462 = sbr.rel (!%p2981_p11) target bundleno = 70 (0x46), region = 110  ;;  %s464_s13 = sand.u32 (%p2981_p11), 1, %s2824_s19  }
  0x39   : > { %s2508_s14 = sshll.u32 (%p2981_p11), %s2848_s25, 1  ;;  %s2507_s30 = sshll.u32 (%p2981_p11), %s464_s13, 5 }
  0x3a   : > { %s3050_s27 = scalar_lea.vmem (%p2981_p11), %s3496_s2, %s2508_s14  ;;  %s466_s29 = scalar_lea.vmem (%p2981_p11), [#allocation8], %s2507_s30 }
  0x3b   : > { %v2509_v32 = vld [vmem:[%s3050_s27 + $0x10] sm:$0x3] (%p2981_p11)  ;;  %v2510_v33 = vld [vmem:[%s3050_s27 + $0x28] sm:$0x3] (%p2981_p11)  ;;  %v2511_v34 = vld [vmem:[%s3050_s27 + $0x40] sm:$0x3] (%p2981_p11) }
  0x3c   : > { %489 = vst [vmem:[%s466_s29] sm:$0x3] (%p2981_p11), %v2509_v32  ;;  %491 = vst [vmem:[%s466_s29 + $0x2] sm:$0x3] (%p2981_p11), %v2510_v33  ;;  %v2512_v35 = vld [vmem:[%s3050_s27 + $0x58] sm:$0x3] (%p2981_p11) }
  0x3d   : > { %v2513_v36 = vld [vmem:[%s3050_s27 + $0x70] sm:$0x3] (%p2981_p11)  ;;  %493 = vst [vmem:[%s466_s29 + $0x4] sm:$0x3] (%p2981_p11), %v2511_v34  ;;  %495 = vst [vmem:[%s466_s29 + $0x6] sm:$0x3] (%p2981_p11), %v2512_v35 }
  0x3e   : > { %497 = vst [vmem:[%s466_s29 + $0x8] sm:$0x3] (%p2981_p11), %v2513_v36  ;;  %v2514_v37 = vld [vmem:[%s3050_s27 + $0x88] sm:$0x3] (%p2981_p11)  ;;  %v2515_v38 = vld [vmem:[%s3050_s27 + $0xa0] sm:$0x3] (%p2981_p11) }
  0x3f   : > { %v2516_v39 = vld [vmem:[%s3050_s27 + $0xb8] sm:$0x3]  ;;  %499 = vst [vmem:[%s466_s29 + $0xa] sm:$0x3] %v2514_v37  ;;  %501 = vst [vmem:[%s466_s29 + $0xc] sm:$0x3] %v2515_v38 }
  0x40   : > { %503 = vst [vmem:[%s466_s29 + $0xe] sm:$0x3] %v2516_v39  ;;  %v2517_v40 = vld [vmem:[%s3050_s27 + $0xd0] sm:$0x3]  ;;  %v2518_v41 = vld [vmem:[%s3050_s27 + $0xe8] sm:$0x3] }
  0x41   : > { %v2519_v42 = vld [vmem:[%s3050_s27 + $0x100] sm:$0x3]  ;;  %505 = vst [vmem:[%s466_s29 + $0x10] sm:$0x3] %v2517_v40  ;;  %507 = vst [vmem:[%s466_s29 + $0x12] sm:$0x3] %v2518_v41 }
  0x42   : > { %509 = vst [vmem:[%s466_s29 + $0x14] sm:$0x3] %v2519_v42  ;;  %v2520_v43 = vld [vmem:[%s3050_s27 + $0x118] sm:$0x3]  ;;  %v2521_v44 = vld [vmem:[%s3050_s27 + $0x130] sm:$0x3] }
  0x43   : > { %v2522_v45 = vld [vmem:[%s3050_s27 + $0x148] sm:$0x3]  ;;  %511 = vst [vmem:[%s466_s29 + $0x16] sm:$0x3] %v2520_v43  ;;  %513 = vst [vmem:[%s466_s29 + $0x18] sm:$0x3] %v2521_v44 }
  0x44   : > { %515 = vst [vmem:[%s466_s29 + $0x1a] sm:$0x3] %v2522_v45  ;;  %v2523_v46 = vld [vmem:[%s3050_s27 + $0x160] sm:$0x3]  ;;  %v2524_v47 = vld [vmem:[%s3050_s27 + $0x178] sm:$0x3] }
  0x45   : > { %517 = vst [vmem:[%s466_s29 + $0x1c] sm:$0x3] %v2523_v46  ;;  %519 = vst [vmem:[%s466_s29 + $0x1e] sm:$0x3] %v2524_v47 }
  0x46 PF: > { %p2525_p0 = scmp.ge.s32.totalorder %s2852_s26, 1  ;;  %p573_p1 = scmp.lt.s32.totalorder %s2852_s26, 5 }
  0x48   : > { %p574_p2 = pnand %p2525_p0, %p573_p1 }
  0x49   : > { %s587_s8 = sand.u32 (!%p574_p2), 1, %s2828_s20   ;;  %v682_v48 = vlaneseq (!%p574_p2)  ;;  %v2854_v49 = vmov (!%p574_p2), 0.0   ;;  %v2855_v50 = vmov (!%p574_p2), 1934713408   ;;  %s580_s10 = sand.u32 (!%p574_p2), 1, %s2836_s22   ;;  %vm2856_vm0 = vmmov (!%p574_p2), 0  }
  0x4a   : > { %577 = sbr.rel (%p574_p2) target bundleno = 956 (0x3bc), region = 151  ;;  %2558 = vmatprep.subr.bf16.mxu0 (!%p574_p2), %v2854_v49  ;;  %s2527_s9 = sshll.u32 (!%p574_p2), %s587_s8, 5  ;;  %v680_v51 = vunpack.c.l.s4 (!%p574_p2), %v2855_v50  ;;  %2564 = vmatprep.subr.bf16.mxu1 (!%p574_p2), %v2854_v49  ;;  %v2857_v54 = vmov (!%p574_p2), 1983009808   ;;  %v2858_v56 = vmov (!%p574_p2), 0   ;;  %vm874_vm1 = vcmask (!%p574_p2), 7168  }
  0x4b   : > { %v683_v52 = vshrl.u32 (!%p574_p2), %v682_v48, 7  ;;  %2560 = vmatprep.mubr.msk.bf16.mxu0 (!%p574_p2), %vm2856_vm0, %v2854_v49  ;;  %s3076_s16 = sshll.u32 (!%p574_p2), %s580_s10, 5  ;;  %2566 = vmatprep.mubr.msk.bf16.mxu1 (!%p574_p2), %vm2856_vm0, %v2854_v49  ;;  %v801_v55 = vunpack.c.l.s4 (!%p574_p2), %v2857_v54  ;;  %s589_s20 = scalar_lea.vmem (!%p574_p2), [#allocation7], %s2527_s9  ;;  %883 = vst.msk [vmem:[#allocation4] sm:$0xff] (!%p574_p2), %vm874_vm1, %v2854_v49  ;;  %884 = vst.msk [vmem:[#allocation4 + $0x8] sm:$0xff] (!%p574_p2), %vm874_vm1, %v2854_v49  ;;  %vm1457_vm2 = vcmask (!%p574_p2), 130048  }
  0x4c   : > { %v681_v53 = vunpack.c.0.s8 (!%p574_p2), %v680_v51  ;;  %2684 = vset.pattern.permute.xlu0 (!%p574_p2), %v2858_v56  ;;  %2685 = vset.pattern.permute.xlu1 (!%p574_p2), %v2858_v56  ;;  %v2758_v59 = vld.sshfl [vmem:[%s589_s20] sm:$0x33 pattern:$0x73516240] (!%p574_p2)  ;;  %s3087_s22 = scalar_lea.vmem (!%p574_p2), [#allocation6], %s3076_s16  ;;  %885 = vst.msk [vmem:[#allocation4 + $0x10] sm:$0xff] (!%p574_p2), %vm874_vm1, %v2854_v49 }
  0x4d   : > { %v802_v58 = vunpack.c.0.s8 (!%p574_p2), %v801_v55  ;;  %v2759_v60 = vld.sshfl [vmem:[%s589_s20 + $0x2] sm:$0x33 pattern:$0x73516240] (!%p574_p2)  ;;  %v990_v6 = vshrl.u32 (!%p574_p2), %v2758_v59, 16  ;;  %v3090_v20 = vcombine.high (!%p574_p2), %v2758_v59, %v2858_v56  ;;  %886 = vst.msk [vmem:[#allocation4 + $0x18] sm:$0xff] (!%p574_p2), %vm874_vm1, %v2854_v49 }
  0x4e   : > { %v3082_v57 = vsub.s32 (!%p574_p2), %v681_v53, %v683_v52  ;;  %v2760_v61 = vld.sshfl [vmem:[%s589_s20 + $0x8] sm:$0x33 pattern:$0x73516240] (!%p574_p2)  ;;  %v989_v4 = vpack.i.b16 (!%p574_p2), %v2759_v60, %v2758_v59  ;;  %v991_v7 = vshrl.u32 (!%p574_p2), %v2759_v60, 16  ;;  %v3094_v23 = vcombine.high (!%p574_p2), %v2759_v60, %v2858_v56  ;;  %887 = vst.msk [vmem:[#allocation4 + $0x20] sm:$0xff] (!%p574_p2), %vm874_vm1, %v2854_v49 }
  0x4f   : > { %v2761_v62 = vld.sshfl [vmem:[%s589_s20 + $0xa] sm:$0x33 pattern:$0x73516240] (!%p574_p2)  ;;  %v3084_v3 = vsub.s32 (!%p574_p2), %v802_v58, %v683_v52  ;;  %v1002_v8 = vshrl.u32 (!%p574_p2), %v2760_v61, 16  ;;  %v3097_v24 = vcombine.high (!%p574_p2), %v2760_v61, %v2858_v56  ;;  %888 = vst.msk [vmem:[#allocation4 + $0x28] sm:$0xff] (!%p574_p2), %vm874_vm1, %v2854_v49 }
  0x50   : > { %v2762_v63 = vld.sshfl [vmem:[%s589_s20 + $0x10] sm:$0x33 pattern:$0x73516240] (!%p574_p2)  ;;  %v1001_v5 = vpack.i.b16 (!%p574_p2), %v2761_v62, %v2760_v61  ;;  %v1003_v11 = vshrl.u32 (!%p574_p2), %v2761_v62, 16  ;;  %v992_v14 = vpack.i.b16 (!%p574_p2), %v991_v7, %v990_v6  ;;  %v3101_v28 = vcombine.high (!%p574_p2), %v2761_v62, %v2858_v56  ;;  %889 = vst.msk [vmem:[#allocation4 + $0x30] sm:$0xff] (!%p574_p2), %vm874_vm1, %v2854_v49 }
  0x51   : > { %v2763_v0 = vld.sshfl [vmem:[%s589_s20 + $0x12] sm:$0x33 pattern:$0x73516240]  ;;  %v1014_v12 = vshrl.u32 %v2762_v63, 16  ;;  %v3107_v32 = vcombine.high %v2762_v63, %v2858_v56  ;;  %v995_v42 = vpack.i.b16 %v3094_v23, %v3090_v20  ;;  %890 = vst.msk [vmem:[#allocation4 + $0x38] sm:$0xff] %vm874_vm1, %v2854_v49 }
  0x52   : > { %v2764_v1 = vld.sshfl [vmem:[%s589_s20 + $0x18] sm:$0x33 pattern:$0x73516240]  ;;  %v1013_v9 = vpack.i.b16 %v2763_v0, %v2762_v63  ;;  %v1177_v13 = vcombine.low %v989_v4, %v1001_v5  ;;  %v1015_v15 = vshrl.u32 %v2763_v0, 16  ;;  %v1004_v18 = vpack.i.b16 %v1003_v11, %v1002_v8  ;;  %s594_s13 = sand.u32 1, %s2820_s18  }
  0x53   : > { %v2765_v2 = vld.sshfl [vmem:[%s589_s20 + $0x1a] sm:$0x33 pattern:$0x73516240]  ;;  %v1026_v16 = vshrl.u32 %v2764_v1, 16  ;;  %v3110_v33 = vcombine.high %v2763_v0, %v2858_v56  ;;  %v3113_v34 = vcombine.high %v2764_v1, %v2858_v56  ;;  %v1007_v45 = vpack.i.b16 %v3101_v28, %v3097_v24  ;;  %s2528_s14 = sshll.u32 %s594_s13, 5 }
  0x54   : > { %v1025_v10 = vpack.i.b16 %v2765_v2, %v2764_v1  ;;  %v1027_v19 = vshrl.u32 %v2765_v2, 16  ;;  %v1185_v21 = vrot.slane %v1177_v13, %v3084_v3  ;;  %v1016_v22 = vpack.i.b16 %v1015_v15, %v1014_v12  ;;  %v2766_v29 = vld.sshfl [vmem:[%s3087_s22] sm:$0x33 pattern:$0x73516240]  ;;  %s596_s30 = scalar_lea.vmem [#allocation8], %s2528_s14 }
  0x55   : > { %v1236_v27 = vcombine.low %v992_v14, %v1004_v18  ;;  %v2767_v30 = vld.sshfl [vmem:[%s3087_s22 + $0x2] sm:$0x33 pattern:$0x73516240]  ;;  %v3116_v35 = vcombine.high %v2765_v2, %v2858_v56  ;;  %v753_v48 = vshrl.u32 %v2766_v29, 16  ;;  %v1019_v4 = vpack.i.b16 %v3110_v33, %v3107_v32  ;;  %s3419_s18 = scalar_lea.vmem [#allocation9], %s3076_s16 }
  0x56   : > { %v1178_v17 = vcombine.low %v1013_v9, %v1025_v10  ;;  %v1028_v26 = vpack.i.b16 %v1027_v19, %v1026_v16  ;;  %v2768_v31 = vld.sshfl [vmem:[%s3087_s22 + $0x8] sm:$0x33 pattern:$0x73516240]  ;;  %v752_v47 = vpack.i.b16 %v2767_v30, %v2766_v29  ;;  %v754_v53 = vshrl.u32 %v2767_v30, 16  ;;  %s2539_s16 = sshll.u32 (%p2988_p12), %s2844_s24, 1 }
  0x57   : > { %v1244_v38 = vrot.slane %v1236_v27, %v3084_v3  ;;  %v2769_v39 = vld.sshfl [vmem:[%s3087_s22 + $0xa] sm:$0x33 pattern:$0x73516240]  ;;  %v765_v55 = vshrl.u32 %v2768_v31, 16  ;;  %v1031_v7 = vpack.i.b16 %v3116_v35, %v3113_v34  ;;  %v1295_v8 = vcombine.low %v995_v42, %v1007_v45  ;;  %s2237_s27 = scalar_lea.vmem (%p2988_p12), %s3499_s5, %s2539_s16 }
  0x58   : > { %v1192_v25 = vrot.slane %v1178_v17, %v3084_v3  ;;  %v1237_v37 = vcombine.low %v1016_v22, %v1028_v26  ;;  %v2770_v40 = vld.sshfl [vmem:[%s3087_s22 + $0x10] sm:$0x33 pattern:$0x73516240]  ;;  %v764_v51 = vpack.i.b16 %v2769_v39, %v2768_v31  ;;  %v766_v58 = vshrl.u32 %v2769_v39, 16 }
  0x59   : > { %v2771_v41 = vld.sshfl [vmem:[%s3087_s22 + $0x12] sm:$0x33 pattern:$0x73516240]  ;;  %v777_v59 = vshrl.u32 %v2770_v40, 16  ;;  %v755_v61 = vpack.i.b16 %v754_v53, %v753_v48  ;;  %v686_v12 = vcombine.high %v2766_v29, %v2858_v56  ;;  %v1296_v13 = vcombine.low %v1019_v4, %v1031_v7 }
  0x5a   : > { %v1193_v36 = vcombine.low %v1185_v21, %v1192_v25  ;;  %v2772_v43 = vld.sshfl [vmem:[%s3087_s22 + $0x18] sm:$0x33 pattern:$0x73516240]  ;;  %v1251_v46 = vrot.slane %v1237_v37, %v3084_v3  ;;  %v776_v52 = vpack.i.b16 %v2771_v41, %v2770_v40  ;;  %v798_v60 = vcombine.low %v752_v47, %v764_v51 }
  0x5b   : > { %v2773_v44 = vld.sshfl [vmem:[%s3087_s22 + $0x1a] sm:$0x33 pattern:$0x73516240]  ;;  %v778_v62 = vshrl.u32 %v2771_v41, 16  ;;  %v789_v63 = vshrl.u32 %v2772_v43, 16  ;;  %v767_v1 = vpack.i.b16 %v766_v58, %v765_v55  ;;  %v1303_v14 = vrot.slane %v1295_v8, %v3084_v3 }
  0x5c   : > { %2559 = vmatpush3.bf16.xpose.msra.mxu0 %v1193_v36  ;;  %v1252_v50 = vcombine.low %v1244_v38, %v1251_v46  ;;  %v788_v54 = vpack.i.b16 %v2773_v44, %v2772_v43  ;;  %v790_v2 = vshrl.u32 %v2773_v44, 16  ;;  %v806_v5 = vrot.slane %v798_v60, %v3084_v3 }
  0x5d   : > { %2570 = vmatprep.subr.bf16.mxu0 %v2854_v49  ;;  %v779_v6 = vpack.i.b16 %v778_v62, %v777_v59  ;;  %v815_v11 = vcombine.low %v755_v61, %v767_v1  ;;  %v695_v15 = vcombine.high %v2767_v30, %v2858_v56  ;;  %v704_v16 = vcombine.high %v2768_v31, %v2858_v56 }
  0x5e   : > { %2565 = vmatpush3.bf16.xpose.msra.mxu1 %v1252_v50  ;;  %v799_v0 = vcombine.low %v776_v52, %v788_v54  ;;  %v791_v10 = vpack.i.b16 %v790_v2, %v789_v63  ;;  %v713_v21 = vcombine.high %v2769_v39, %v2858_v56  ;;  %v1310_v22 = vrot.slane %v1296_v13, %v3084_v3  ;;  %v1175_v13 = vld [vmem:[%s3497_s3] sm:$0xff] }
  0x5f   : > { %2576 = vmatprep.subr.bf16.mxu1 %v2854_v49  ;;  %v823_v19 = vrot.slane %v815_v11, %v3084_v3  ;;  %v722_v25 = vcombine.high %v2770_v40, %v2858_v56  ;;  %v731_v26 = vcombine.high %v2771_v41, %v2858_v56  ;;  %v740_v27 = vcombine.high %v2772_v43, %v2858_v56 }
  0x60   : > { %v813_v9 = vrot.slane %v799_v0, %v3084_v3  ;;  %v816_v18 = vcombine.low %v779_v6, %v791_v10  ;;  %v749_v30 = vcombine.high %v2773_v44, %v2858_v56  ;;  %v758_v31 = vpack.i.b16 %v695_v15, %v686_v12 }
  0x61   : > { %v770_v36 = vpack.i.b16 %v713_v21, %v704_v16  ;;  %v1311_v37 = vcombine.low %v1303_v14, %v1310_v22  ;;  %v782_v38 = vpack.i.b16 %v731_v26, %v722_v25  ;;  %v996_v39 = vshrl.u32 %v3090_v20, 16 }
  0x62   : > { %v814_v17 = vcombine.low %v806_v5, %v813_v9  ;;  %v830_v29 = vrot.slane %v816_v18, %v3084_v3  ;;  %v997_v40 = vshrl.u32 %v3094_v23, 16  ;;  %v794_v41 = vpack.i.b16 %v749_v30, %v740_v27 }
  0x63   : > { %v832_v45 = vcombine.low %v758_v31, %v770_v36  ;;  %v1008_v43 = vshrl.u32 %v3097_v24, 16  ;;  %v1009_v44 = vshrl.u32 %v3101_v28, 16  ;;  %v1020_v47 = vshrl.u32 %v3107_v32, 16 }
  0x64   : > { %2561 = vmatmul.mubr.bf16.vlgmr.msra.gmra.mrb[0].mxu0 %v814_v17  ;;  %v831_v42 = vcombine.low %v823_v19, %v830_v29  ;;  %v998_v46 = vpack.i.b16 %v997_v40, %v996_v39  ;;  %v1021_v48 = vshrl.u32 %v3110_v33, 16  ;;  %v833_v50 = vcombine.low %v782_v38, %v794_v41 }
  0x65   : > { %2572 = vmatprep.mubr.msk.bf16.mxu0 %vm2856_vm0, %v2854_v49  ;;  %2571 = vmatpush3.bf16.xpose.msra.mxu0 %v1311_v37  ;;  %v840_v51 = vrot.slane %v832_v45, %v3084_v3  ;;  %v1032_v20 = vshrl.u32 %v3113_v34, 16  ;;  %v1033_v23 = vshrl.u32 %v3116_v35, 16  ;;  %v1010_v52 = vpack.i.b16 %v1009_v44, %v1008_v43 }
  0x66   : > { %2567 = vmatmul.mubr.bf16.vlgmr.msra.gmra.mrb[0].mxu1 %v831_v42  ;;  %2582 = vmatprep.subr.bf16.mxu0 %v2854_v49  ;;  %v1022_v24 = vpack.i.b16 %v1021_v48, %v1020_v47  ;;  %v759_v28 = vshrl.u32 %v686_v12, 16  ;;  %v760_v53 = vshrl.u32 %v695_v15, 16  ;;  %v847_v32 = vrot.slane %v833_v50, %v3084_v3  ;;  %v1176_v15 = vld [vmem:[%s3497_s3 + $0x8] sm:$0xff] }
  0x67   : > { %2578 = vmatprep.mubr.msk.bf16.mxu1 %vm2856_vm0, %v2854_v49  ;;  %v1034_v33 = vpack.i.b16 %v1033_v23, %v1032_v20  ;;  %v771_v54 = vshrl.u32 %v704_v16, 16  ;;  %v772_v55 = vshrl.u32 %v713_v21, 16  ;;  %v1354_v58 = vcombine.low %v998_v46, %v1010_v52  ;;  %v2530_v16 = vld [vmem:[%s3498_s4] ss:$0 sm:$0xff]  ;;  %v2532_v46 = vld [vmem:[%s3498_s4 + $0x2] ss:$0 sm:$0xff] }
  0x68   : > { %v761_v59 = vpack.i.b16 %v760_v53, %v759_v28  ;;  %v783_v60 = vshrl.u32 %v722_v25, 16  ;;  %v784_v34 = vshrl.u32 %v731_v26, 16  ;;  %v848_v61 = vcombine.low %v840_v51, %v847_v32  ;;  %v2533_v32 = vld [vmem:[%s3498_s4 + $0x3] ss:$0 sm:$0xff] }
  0x69   : > { %v1355_v35 = vcombine.low %v1022_v24, %v1034_v33  ;;  %v773_v62 = vpack.i.b16 %v772_v55, %v771_v54  ;;  %v795_v63 = vshrl.u32 %v740_v27, 16  ;;  %v1362_v0 = vrot.slane %v1354_v58, %v3084_v3  ;;  %v2531_v27 = vld [vmem:[%s3498_s4 + $0x1] ss:$0 sm:$0xff] }
  0x6a   : > { %v785_v1 = vpack.i.b16 %v784_v34, %v783_v60  ;;  %v796_v2 = vshrl.u32 %v749_v30, 16  ;;  %v2859_v12 = vmov -1e+30  }
  0x6b   : > { %v1369_v4 = vrot.slane %v1355_v35, %v3084_v3  ;;  %v849_v5 = vcombine.low %v761_v59, %v773_v62  ;;  %875 = vst.msk [vmem:[#allocation3] sm:$0xff] %vm874_vm1, %v2859_v12  ;;  %876 = vst.msk [vmem:[#allocation3 + $0x8] sm:$0xff] %vm874_vm1, %v2859_v12 }
  0x6c   : > { %2573 = vmatmul.mubr.bf16.vlgmr.msra.gmra.mrb[4].mxu0 %v848_v61  ;;  %v797_v6 = vpack.i.b16 %v796_v2, %v795_v63  ;;  %877 = vst.msk [vmem:[#allocation3 + $0x10] sm:$0xff] %vm874_vm1, %v2859_v12  ;;  %878 = vst.msk [vmem:[#allocation3 + $0x18] sm:$0xff] %vm874_vm1, %v2859_v12 }
  0x6d   : > { %2584 = vmatprep.mubr.msk.bf16.mxu0 %vm2856_vm0, %v2854_v49  ;;  %v1370_v7 = vcombine.low %v1362_v0, %v1369_v4  ;;  %v857_v9 = vrot.slane %v849_v5, %v3084_v3  ;;  %879 = vst.msk [vmem:[#allocation3 + $0x20] sm:$0xff] %vm874_vm1, %v2859_v12  ;;  %880 = vst.msk [vmem:[#allocation3 + $0x28] sm:$0xff] %vm874_vm1, %v2859_v12 }
  0x6e   : > { %v850_v8 = vcombine.low %v785_v1, %v797_v6  ;;  %881 = vst.msk [vmem:[#allocation3 + $0x30] sm:$0xff] %vm874_vm1, %v2859_v12  ;;  %882 = vst.msk [vmem:[#allocation3 + $0x38] sm:$0xff] %vm874_vm1, %v2859_v12 }
  0x6f   : > { %2577 = vmatpush3.bf16.xpose.msra.mxu1 %v1370_v7 }
  0x70   : > { %v864_v10 = vrot.slane %v850_v8, %v3084_v3  ;;  %2588 = vmatprep.subr.bf16.mxu1 %v2854_v49 }
  0x72   : > { %v865_v11 = vcombine.low %v857_v9, %v864_v10  ;;  %v3247_v62 = vld [vmem:[#allocation3] sm:$0xff]  ;;  %v3254_v2 = vld [vmem:[#allocation3 + $0x8] sm:$0xff] }
  0x73   : > { %v3252_v1 = vld [vmem:[#allocation3 + $0x10] sm:$0xff]  ;;  %v3267_v9 = vld [vmem:[#allocation3 + $0x18] sm:$0xff] }
  0x76   : > { %2579 = vmatmul.mubr.bf16.vlgmr.msra.gmra.mrb[4].mxu1 %v865_v11 }
  0x77   : > { %2590 = vmatprep.mubr.msk.bf16.mxu1 %vm2856_vm0, %v2854_v49 }
 0x137   : > { %v1229_v14 = vpop.f32.mrb[0].mxu0 }
 0x138   : > { %v1230_v17 = vadd.f32 %v1229_v14, %v1175_v13  ;;  %v2562_v18 = vpop.f32.mrb[1].mxu0 }
 0x139   : > { %v1232_v19 = vpop.f32.mrb[2].mxu0  ;;  %v1288_v26 = vpop.f32.mrb[0].mxu1 }
 0x13a   : > { %v1233_v21 = vadd.f32 %v1232_v19, %v1176_v15  ;;  %v2563_v22 = vpop.f32.mrb[3].mxu0  ;;  %v3206_v25 = vadd.f32 %v2530_v16, %v1230_v17  ;;  %v1289_v29 = vadd.f32 %v1288_v26, %v1175_v13  ;;  %v2568_v30 = vpop.f32.mrb[1].mxu1 }
 0x13b   : > { %v1291_v37 = vpop.f32.mrb[2].mxu1  ;;  %v2776_v30 = vld.sshfl [vmem:[%s596_s30 + $0x8] sm:$0x33 pattern:$0x73516240] }
 0x13c   : > { %v1458_v31 = vsel %vm1457_vm2, %v3206_v25, -inf  ;;  %v3213_v36 = vadd.f32 %v2530_v16, %v1233_v21  ;;  %v1292_v38 = vadd.f32 %v1291_v37, %v1176_v15  ;;  %v2569_v39 = vpop.f32.mrb[3].mxu1  ;;  %v3215_v40 = vadd.f32 %v2531_v27, %v1289_v29  ;;  %v2775_v29 = vld.sshfl [vmem:[%s596_s30 + $0x2] sm:$0x33 pattern:$0x73516240] }
 0x13d   : > { %1459 = vmax.xlane.f32.xlu0 %v1458_v31  ;;  %v2777_v31 = vld.sshfl [vmem:[%s596_s30 + $0xa] sm:$0x33 pattern:$0x73516240] }
 0x13e   : > { %v1464_v42 = vsel %vm1457_vm2, %v3215_v40, -inf  ;;  %v1461_v41 = vsel %vm1457_vm2, %v3213_v36, -inf  ;;  %v3221_v45 = vadd.f32 %v2531_v27, %v1292_v38  ;;  %v2774_v27 = vld.sshfl [vmem:[%s596_s30] sm:$0x33 pattern:$0x73516240] }
 0x13f   : > { %1465 = vmax.xlane.f32.xlu1 %v1464_v42  ;;  %v1347_v43 = vpop.f32.mrb[4].mxu0  ;;  %v2778_v37 = vld.sshfl [vmem:[%s596_s30 + $0x10] sm:$0x33 pattern:$0x73516240] }
 0x140   : > { %v1348_v44 = vadd.f32 %v1347_v43, %v1175_v13  ;;  %v1467_v47 = vsel %vm1457_vm2, %v3221_v45, -inf  ;;  %v2574_v48 = vpop.f32.mrb[5].mxu0  ;;  %v2779_v38 = vld.sshfl [vmem:[%s596_s30 + $0x12] sm:$0x33 pattern:$0x73516240]  ;;  %v1125_v43 = vpack.i.b16 %v2775_v29, %v2774_v27 }
 0x141   : > { %1462 = vmax.xlane.f32.xlu0 %v1461_v41  ;;  %v1350_v50 = vpop.f32.mrb[6].mxu0  ;;  %v2780_v39 = vld.sshfl [vmem:[%s596_s30 + $0x18] sm:$0x33 pattern:$0x73516240]  ;;  %v3307_v41 = vld [vmem:[#allocation3 + $0x30] sm:$0xff] }
 0x142   : > { %v1351_v51 = vadd.f32 %v1350_v50, %v1176_v15  ;;  %v2575_v20 = vpop.f32.mrb[7].mxu0  ;;  %v3228_v23 = vadd.f32 %v2532_v46, %v1348_v44  ;;  %v2781_v42 = vld.sshfl [vmem:[%s596_s30 + $0x1a] sm:$0x33 pattern:$0x73516240]  ;;  %v1126_v48 = vshrl.u32 %v2774_v27, 16 }
 0x143   : > { %1468 = vmax.xlane.f32.xlu1 %v1467_v47  ;;  %v3309_v44 = vld [vmem:[#allocation3 + $0x38] sm:$0xff]  ;;  %v1137_v47 = vpack.i.b16 %v2777_v31, %v2776_v30  ;;  %v1127_v50 = vshrl.u32 %v2775_v29, 16 }
 0x144   : > { %v1470_v52 = vsel %vm1457_vm2, %v3228_v23, -inf  ;;  %v3232_v24 = vadd.f32 %v2532_v46, %v1351_v51  ;;  %v1138_v51 = vshrl.u32 %v2776_v30, 16 }
 0x145   : > { %1471 = vmax.xlane.f32.xlu0 %v1470_v52  ;;  %v1149_v52 = vpack.i.b16 %v2779_v38, %v2778_v37 }
 0x146   : > { %v1473_v28 = vsel %vm1457_vm2, %v3232_v24, -inf }
 0x147   : > { %1474 = vmax.xlane.f32.xlu1 %v1473_v28  ;;  %v1161_v28 = vpack.i.b16 %v2781_v42, %v2780_v39 }
 0x149   : > { %v1406_v53 = vpop.f32.mrb[4].mxu1 }
 0x14a   : > { %v1407_v33 = vadd.f32 %v1406_v53, %v1175_v13  ;;  %v2580_v54 = vpop.f32.mrb[5].mxu1  ;;  %v3279_v13 = vld [vmem:[#allocation3 + $0x20] sm:$0xff]  ;;  %v1139_v53 = vshrl.u32 %v2777_v31, 16 }
 0x14b   : > { %v1409_v55 = vpop.f32.mrb[6].mxu1  ;;  %v1128_v54 = vpack.i.b16 %v1127_v50, %v1126_v48 }
 0x14c   : > { %v1410_v58 = vadd.f32 %v1409_v55, %v1176_v15  ;;  %v2581_v59 = vpop.f32.mrb[7].mxu1  ;;  %v3239_v60 = vadd.f32 %v2533_v32, %v1407_v33  ;;  %v3284_v15 = vld [vmem:[#allocation3 + $0x28] sm:$0xff]  ;;  %v1695_v33 = vcombine.low %v1125_v43, %v1137_v47  ;;  %v1150_v55 = vshrl.u32 %v2778_v37, 16 }
 0x14e   : > { %v1476_v34 = vsel %vm1457_vm2, %v3239_v60, -inf  ;;  %v3243_v61 = vadd.f32 %v2533_v32, %v1410_v58  ;;  %v1151_v58 = vshrl.u32 %v2779_v38, 16 }
 0x14f   : > { %1477 = vmax.xlane.f32.xlu0 %v1476_v34 }
 0x150   : > { %v1479_v35 = vsel %vm1457_vm2, %v3243_v61, -inf }
 0x151   : > { %1480 = vmax.xlane.f32.xlu1 %v1479_v35  ;;  %v1696_v35 = vcombine.low %v1149_v52, %v1161_v28  ;;  %v1059_v52 = vcombine.high %v2774_v27, %v2858_v56  ;;  %v1068_v28 = vcombine.high %v2775_v29, %v2858_v56  ;;  %v1122_v27 = vcombine.high %v2781_v42, %v2858_v56 }
 0x153   : > { %v1710_v43 = vrot.slane %v1696_v35, %v3084_v3  ;;  %v1131_v29 = vpack.i.b16 %v1068_v28, %v1059_v52 }
 0x1ca   : > { %v1460_v63 = vpop.xlane.xlu0 %1459 }
 0x1cb   : > { %v3250_v0 = vmax.f32 %v3247_v62, %v1460_v63  ;;  %v1140_v63 = vpack.i.b16 %v1139_v53, %v1138_v51  ;;  %v1077_v53 = vcombine.high %v2776_v30, %v2858_v56 }
 0x1cc   : > { %v1466_v5 = vpop.xlane.xlu1 %1465 }
 0x1cd   : > { %v1490_v4 = vsub.f32 %v3247_v62, %v3250_v0  ;;  %1959 = vst.msk [vmem:[#allocation3] sm:$0xff] %vm874_vm1, %v3250_v0  ;;  %1516 = vperm.xlu0 %2684, %v3250_v0   ;;  %v3262_v7 = vmax.f32 %v3252_v1, %v1466_v5  ;;  %v1703_v5 = vrot.slane %v1695_v33, %v3084_v3 }
 0x1ce   : > { %v1463_v6 = vpop.xlane.xlu0 %1462  ;;  %v1095_v33 = vcombine.high %v2778_v37, %v2858_v56 }
 0x1cf   : > { %v3265_v8 = vmax.f32 %v3254_v2, %v1463_v6  ;;  %v1492_v10 = vsub.f32 %v3252_v1, %v3262_v7  ;;  %1961 = vst.msk [vmem:[#allocation3 + $0x10] sm:$0xff] %vm874_vm1, %v3262_v7  ;;  %v1152_v6 = vpack.i.b16 %v1151_v58, %v1150_v55  ;;  %v1711_v48 = vcombine.low %v1703_v5, %v1710_v43 }
 0x1d0   : > { %v1469_v12 = vpop.xlane.xlu1 %1468  ;;  %v1113_v58 = vcombine.high %v2780_v39, %v2858_v56 }
 0x1d1   : > { %v1491_v11 = vsub.f32 %v3254_v2, %v3265_v8  ;;  %1960 = vst.msk [vmem:[#allocation3 + $0x8] sm:$0xff] %vm874_vm1, %v3265_v8  ;;  %1521 = vperm.xlu1 %2685, %v3265_v8   ;;  %v3282_v14 = vmax.f32 %v3267_v9, %v1469_v12  ;;  %v1162_v12 = vshrl.u32 %v2780_v39, 16  ;;  %2583 = vmatpush3.bf16.msra.mxu0 %v1711_v48  ;;  %v1169_v48 = vshrl.u32 %v1122_v27, 16 }
 0x1d2   : > { %v1472_v16 = vpop.xlane.xlu0 %1471  ;;  %2594 = vmatprep.subr.bf16.mxu0 %v2854_v49  ;;  %v1167_v5 = vpack.i.b16 %v1122_v27, %v1113_v58 }
 0x1d3   : > { %v1493_v17 = vsub.f32 %v3267_v9, %v3282_v14  ;;  %1962 = vst.msk [vmem:[#allocation3 + $0x18] sm:$0xff] %vm874_vm1, %v3282_v14  ;;  %v3292_v18 = vmax.f32 %v3279_v13, %v1472_v16  ;;  %v1163_v16 = vshrl.u32 %v2781_v42, 16 }
 0x1d4   : > { %v1475_v19 = vpop.xlane.xlu1 %1474 }
 0x1d5   : > { %1526 = vperm.xlu1 %2685, %v3262_v7   ;;  %v1494_v21 = vsub.f32 %v3279_v13, %v3292_v18  ;;  %1963 = vst.msk [vmem:[#allocation3 + $0x20] sm:$0xff] %vm874_vm1, %v3292_v18  ;;  %v3299_v22 = vmax.f32 %v3284_v15, %v1475_v19  ;;  %v1164_v47 = vpack.i.b16 %v1163_v16, %v1162_v12  ;;  %v1133_v12 = vshrl.u32 %v1068_v28, 16 }
 0x1d6   : > { %v1144_v16 = vshrl.u32 %v1077_v53, 16 }
 0x1d7   : > { %v1495_v26 = vsub.f32 %v3284_v15, %v3299_v22  ;;  %1964 = vst.msk [vmem:[#allocation3 + $0x28] sm:$0xff] %vm874_vm1, %v3299_v22  ;;  %v1758_v51 = vcombine.low %v1152_v6, %v1164_v47  ;;  %v1132_v6 = vshrl.u32 %v1059_v52, 16  ;;  %v1168_v47 = vshrl.u32 %v1113_v58, 16  ;;  %v1578_v15 = vld [vmem:[#allocation4] sm:$0xff] }
 0x1d8   : > { %v1506_v2 = vmul.f32 1.442695, %v1494_v21  ;;  %v1579_v21 = vld [vmem:[#allocation4 + $0x8] sm:$0xff] }
 0x1d9   : > { %1531 = vperm.xlu1 %2685, %v3282_v14   ;;  %v1772_v55 = vrot.slane %v1758_v51, %v3084_v3  ;;  %v1134_v42 = vpack.i.b16 %v1133_v12, %v1132_v6  ;;  %v1508_v62 = vmul.f32 1.442695, %v1495_v26 }
 0x1dc   : > { %v1478_v46 = vpop.xlane.xlu0 %1477 }
 0x1dd   : > { %1536 = vperm.xlu1 %2685, %v3292_v18   ;;  %v3312_v20 = vmax.f32 %v3307_v41, %v1478_v46  ;;  %v1757_v46 = vcombine.low %v1128_v54, %v1140_v63  ;;  %v1104_v54 = vcombine.high %v2779_v38, %v2858_v56 }
 0x1de   : > { %v1481_v32 = vpop.xlane.xlu1 %1480 }
 0x1df   : > { %v1496_v59 = vsub.f32 %v3307_v41, %v3312_v20  ;;  %1965 = vst.msk [vmem:[#allocation3 + $0x30] sm:$0xff] %vm874_vm1, %v3312_v20  ;;  %v3320_v34 = vmax.f32 %v3309_v44, %v1481_v32  ;;  %v1765_v50 = vrot.slane %v1757_v46, %v3084_v3  ;;  %v1086_v32 = vcombine.high %v2777_v31, %v2858_v56 }
 0x1e0   : > { %v1155_v30 = vpack.i.b16 %v1104_v54, %v1095_v33  ;;  %v1156_v46 = vshrl.u32 %v1095_v33, 16  ;;  %v1157_v56 = vshrl.u32 %v1104_v54, 16 }
 0x1e1   : > { %1541 = vperm.xlu1 %2685, %v3299_v22   ;;  %v1497_v19 = vsub.f32 %v3309_v44, %v3320_v34  ;;  %1966 = vst.msk [vmem:[#allocation3 + $0x38] sm:$0xff] %vm874_vm1, %v3320_v34  ;;  %v1143_v35 = vpack.i.b16 %v1086_v32, %v1077_v53  ;;  %v1773_v63 = vcombine.low %v1765_v50, %v1772_v55  ;;  %v1145_v39 = vshrl.u32 %v1086_v32, 16  ;;  %v1580_v44 = vld [vmem:[#allocation4 + $0x10] sm:$0xff] }
 0x1e2   : > { %v1820_v37 = vcombine.low %v1155_v30, %v1167_v5  ;;  %v1158_v55 = vpack.i.b16 %v1157_v56, %v1156_v46  ;;  %v1510_v0 = vmul.f32 1.442695, %v1496_v59 }
 0x1e3   : > { %v1819_v31 = vcombine.low %v1131_v29, %v1143_v35  ;;  %2589 = vmatpush3.bf16.msra.mxu1 %v1773_v63  ;;  %v1146_v51 = vpack.i.b16 %v1145_v39, %v1144_v16  ;;  %v1170_v29 = vpack.i.b16 %v1169_v48, %v1168_v47  ;;  %v1512_v1 = vmul.f32 1.442695, %v1497_v19  ;;  %v1581_v19 = vld [vmem:[#allocation4 + $0x18] sm:$0xff] }
 0x1e4   : > { %2600 = vmatprep.subr.bf16.mxu1 %v2854_v49  ;;  %v1834_v43 = vrot.slane %v1820_v37, %v3084_v3 }
 0x1e5   : > { %1546 = vperm.xlu1 %2685, %v3312_v20   ;;  %v1827_v38 = vrot.slane %v1819_v31, %v3084_v3  ;;  %v1881_v35 = vcombine.low %v1134_v42, %v1146_v51  ;;  %v1882_v30 = vcombine.low %v1158_v55, %v1170_v29 }
 0x1e7   : > { %v1835_v50 = vcombine.low %v1827_v38, %v1834_v43  ;;  %v1889_v63 = vrot.slane %v1881_v35, %v3084_v3  ;;  %v1896_v52 = vrot.slane %v1882_v30, %v3084_v3 }
 0x1e9   : > { %1551 = vperm.xlu1 %2685, %v3320_v34   ;;  %v1897_v28 = vcombine.low %v1889_v63, %v1896_v52 }
 0x24c   : > { %v1517_v53 = vpop.permute.xlu0 %1516 }
 0x24d   : > { %v1554_v5 = vsub.f32 %v3206_v25, %v1517_v53 }
 0x24f   : > { %v1562_v32 = vmul.f32 1.442695, %v1554_v5 }
 0x250   : > { %v1522_v33 = vpop.permute.xlu1 %1521 }
 0x251   : > { %2710 = vpow2.f32 %v1562_v32  ;;  %v1555_v54 = vsub.f32 %v3213_v36, %v1522_v33 }
 0x253   : > { %v1564_v58 = vmul.f32 1.442695, %v1555_v54 }
 0x254   : > { %v1527_v27 = vpop.permute.xlu1 %1526 }
 0x255   : > { %2712 = vpow2.f32 %v1564_v58  ;;  %v1556_v31 = vsub.f32 %v3215_v40, %v1527_v27 }
 0x257   : > { %v1566_v37 = vmul.f32 1.442695, %v1556_v31  ;;  %v1500_v31 = vmul.f32 1.442695, %v1491_v11 }
 0x258   : > { %v1532_v38 = vpop.permute.xlu1 %1531 }
 0x259   : > { %2714 = vpow2.f32 %v1566_v37  ;;  %v1557_v6 = vsub.f32 %v3221_v45, %v1532_v38  ;;  %v1498_v37 = vmul.f32 1.442695, %v1490_v4  ;;  %v1502_v38 = vmul.f32 1.442695, %v1492_v10 }
 0x25b   : > { %v2711_v12 = vpop.eup %2710  ;;  %v1568_v16 = vmul.f32 1.442695, %v1557_v6  ;;  %v1504_v6 = vmul.f32 1.442695, %v1493_v17 }
 0x25c   : > { %v1537_v43 = vpop.permute.xlu1 %1536  ;;  %v1594_v25 = vsel %vm1457_vm2, %v2711_v12, 0.0 }
 0x25d   : > { %2716 = vpow2.f32 %v1568_v16  ;;  %v1558_v39 = vsub.f32 %v3228_v23, %v1537_v43  ;;  %1595 = vadd.xlane.f32.xlu1 %v1594_v25 }
 0x25f   : > { %v2713_v36 = vpop.eup %2712  ;;  %v1570_v46 = vmul.f32 1.442695, %v1558_v39  ;;  %v1582_v39 = vld [vmem:[#allocation4 + $0x20] sm:$0xff] }
 0x260   : > { %v1542_v56 = vpop.permute.xlu1 %1541  ;;  %v1597_v42 = vsel %vm1457_vm2, %v2713_v36, 0.0  ;;  %v1691_v40 = vpack.c.bf16 %v2713_v36, %v2711_v12 }
 0x261   : > { %2718 = vpow2.f32 %v1570_v46  ;;  %v1559_v47 = vsub.f32 %v3232_v24, %v1542_v56  ;;  %1598 = vadd.xlane.f32.xlu0 %v1597_v42 }
 0x262   : > { %2585 = vmatmul.mubr.msk.bf16.vlgmr.msra.gmra.mrb[8].mxu0 %vm1457_vm2, %v1691_v40 }
 0x263   : > { %v2715_v45 = vpop.eup %2714  ;;  %v1572_v48 = vmul.f32 1.442695, %v1559_v47  ;;  %2595 = vmatpush3.bf16.msra.mxu0 %v1835_v50  ;;  %2596 = vmatprep.mubr.msk.bf16.mxu0 %vm2856_vm0, %v2854_v49  ;;  %v1583_v47 = vld [vmem:[#allocation4 + $0x28] sm:$0xff] }
 0x264   : > { %v1547_v23 = vpop.permute.xlu1 %1546  ;;  %v1600_v51 = vsel %vm1457_vm2, %v2715_v45, 0.0 }
 0x265   : > { %2720 = vpow2.f32 %v1572_v48  ;;  %v1560_v55 = vsub.f32 %v3239_v60, %v1547_v23  ;;  %1601 = vadd.xlane.f32.xlu0 %v1600_v51 }
 0x267   : > { %v2717_v29 = vpop.eup %2716  ;;  %v1574_v35 = vmul.f32 1.442695, %v1560_v55 }
 0x268   : > { %v1552_v30 = vpop.permute.xlu1 %1551  ;;  %v1603_v24 = vsel %vm1457_vm2, %v2717_v29, 0.0  ;;  %v1692_v63 = vpack.c.bf16 %v2717_v29, %v2715_v45  ;;  %v1584_v29 = vld [vmem:[#allocation4 + $0x30] sm:$0xff] }
 0x269   : > { %2722 = vpow2.f32 %v1574_v35  ;;  %v1561_v52 = vsub.f32 %v3243_v61, %v1552_v30  ;;  %1604 = vadd.xlane.f32.xlu1 %v1603_v24 }
 0x26a   : > { %2591 = vmatmul.mubr.msk.bf16.vlgmr.msra.gmra.mrb[8].mxu1 %vm1457_vm2, %v1692_v63 }
 0x26b   : > { %v2719_v50 = vpop.eup %2718  ;;  %v1576_v53 = vmul.f32 1.442695, %v1561_v52  ;;  %2601 = vmatpush3.bf16.msra.mxu1 %v1897_v28  ;;  %2602 = vmatprep.mubr.msk.bf16.mxu1 %vm2856_vm0, %v2854_v49 }
 0x26c   : > { %v1606_v60 = vsel %vm1457_vm2, %v2719_v50, 0.0 }
 0x26d   : > { %2724 = vpow2.f32 %v1576_v53  ;;  %1607 = vadd.xlane.f32.xlu0 %v1606_v60  ;;  %v1585_v53 = vld [vmem:[#allocation4 + $0x38] sm:$0xff] }
 0x26e   : > { %2726 = vpow2.f32 %v1500_v31 }
 0x26f   : > { %v2721_v5 = vpop.eup %2720  ;;  %2728 = vpow2.f32 %v1498_v37 }
 0x270   : > { %v1609_v32 = vsel %vm1457_vm2, %v2721_v5, 0.0  ;;  %v1693_v33 = vpack.c.bf16 %v2721_v5, %v2719_v50  ;;  %2730 = vpow2.f32 %v1502_v38 }
 0x271   : > { %1610 = vadd.xlane.f32.xlu1 %v1609_v32  ;;  %2732 = vpow2.f32 %v1504_v6 }
 0x272   : > { %2597 = vmatmul.mubr.msk.bf16.vlgmr.msra.gmra.mrb[12].mxu0 %vm1457_vm2, %v1693_v33  ;;  %2734 = vpow2.f32 %v1506_v2 }
 0x273   : > { %v2723_v61 = vpop.eup %2722  ;;  %2736 = vpow2.f32 %v1508_v62 }
 0x274   : > { %v1612_v54 = vsel %vm1457_vm2, %v2723_v61, 0.0  ;;  %2738 = vpow2.f32 %v1510_v0 }
 0x275   : > { %1613 = vadd.xlane.f32.xlu0 %v1612_v54  ;;  %2740 = vpow2.f32 %v1512_v1 }
 0x277   : > { %v2725_v58 = vpop.eup %2724 }
 0x278   : > { %v1615_v28 = vsel %vm1457_vm2, %v2725_v58, 0.0  ;;  %v1694_v27 = vpack.c.bf16 %v2725_v58, %v2723_v61  ;;  %v2727_v4 = vpop.eup %2726 }
 0x279   : > { %1616 = vadd.xlane.f32.xlu1 %v1615_v28  ;;  %v2729_v7 = vpop.eup %2728  ;;  %v1587_v26 = vmul.f32 %v2727_v4, %v1579_v21 }
 0x27a   : > { %2603 = vmatmul.mubr.msk.bf16.vlgmr.msra.gmra.mrb[12].mxu1 %vm1457_vm2, %v1694_v27  ;;  %v2731_v8 = vpop.eup %2730  ;;  %v1586_v17 = vmul.f32 %v2729_v7, %v1578_v15 }
 0x27b   : > { %v2733_v9 = vpop.eup %2732  ;;  %v1588_v59 = vmul.f32 %v2731_v8, %v1580_v44 }
 0x27c   : > { %v2735_v10 = vpop.eup %2734  ;;  %v1589_v43 = vmul.f32 %v2733_v9, %v1581_v19 }
 0x27d   : > { %v2737_v11 = vpop.eup %2736  ;;  %v1590_v42 = vmul.f32 %v2735_v10, %v1582_v39 }
 0x27e   : > { %v2739_v13 = vpop.eup %2738  ;;  %v1591_v51 = vmul.f32 %v2737_v11, %v1583_v47 }
 0x27f   : > { %v2741_v14 = vpop.eup %2740  ;;  %v1592_v52 = vmul.f32 %v2739_v13, %v1584_v29 }
 0x280   : > { %v1593_v61 = vmul.f32 %v2741_v14, %v1585_v53 }
 0x28a   : > { %1650 = vperm.xlu1 %2685, %v2727_v4  }
 0x28b   : > { %1645 = vperm.xlu0 %2684, %v2729_v7  }
 0x28e   : > { %1655 = vperm.xlu1 %2685, %v2731_v8  }
 0x28f   : > { %1660 = vperm.xlu0 %2684, %v2733_v9  }
 0x292   : > { %1665 = vperm.xlu1 %2685, %v2735_v10  }
 0x293   : > { %1670 = vperm.xlu0 %2684, %v2737_v11  }
 0x296   : > { %1675 = vperm.xlu1 %2685, %v2739_v13  }
 0x297   : > { %1680 = vperm.xlu0 %2684, %v2741_v14  }
 0x2ea   : > { %v1596_v18 = vpop.xlane.xlu1 %1595 }
 0x2eb   : > { %v1618_v22 = vadd.f32 %v1596_v18, %v1586_v17 }
 0x2ed   : > { %1627 = vst.msk [vmem:[#allocation4] sm:$0xff] %vm874_vm1, %v1618_v22 }
 0x2ee   : > { %v1599_v41 = vpop.xlane.xlu0 %1598 }
 0x2ef   : > { %v1619_v20 = vadd.f32 %v1599_v41, %v1587_v26 }
 0x2f1   : > { %1628 = vst.msk [vmem:[#allocation4 + $0x8] sm:$0xff] %vm874_vm1, %v1619_v20 }
 0x2f2   : > { %v1602_v34 = vpop.xlane.xlu0 %1601 }
 0x2f3   : > { %v1620_v12 = vadd.f32 %v1602_v34, %v1588_v59 }
 0x2f4   : > { %v1970_v16 = vld [vmem:[#allocation4] sm:$0xff] }
 0x2f5   : > { %1629 = vst.msk [vmem:[#allocation4 + $0x10] sm:$0xff] %vm874_vm1, %v1620_v12  ;;  %vm1978_vm3 = vcmp.eq.f32.partialorder %v1970_v16, 0.0 }
 0x2f6   : > { %v1605_v25 = vpop.xlane.xlu1 %1604  ;;  %v1986_v36 = vsel %vm1978_vm3, 1.0, %v1970_v16 }
 0x2f7   : > { %v1621_v46 = vadd.f32 %v1605_v25, %v1589_v43  ;;  %2742 = vrcp.f32 %v1986_v36 }
 0x2f8   : > { %v1971_v56 = vld [vmem:[#allocation4 + $0x8] sm:$0xff] }
 0x2f9   : > { %1630 = vst.msk [vmem:[#allocation4 + $0x18] sm:$0xff] %vm874_vm1, %v1621_v46  ;;  %vm1979_vm4 = vcmp.eq.f32.partialorder %v1971_v56, 0.0 }
 0x2fa   : > { %v1608_v40 = vpop.xlane.xlu0 %1607  ;;  %v1987_v45 = vsel %vm1979_vm4, 1.0, %v1971_v56 }
 0x2fb   : > { %v1622_v48 = vadd.f32 %v1608_v40, %v1590_v42  ;;  %2744 = vrcp.f32 %v1987_v45 }
 0x2fc   : > { %v1972_v23 = vld [vmem:[#allocation4 + $0x10] sm:$0xff] }
 0x2fd   : > { %1631 = vst.msk [vmem:[#allocation4 + $0x20] sm:$0xff] %vm874_vm1, %v1622_v48  ;;  %vm1980_vm5 = vcmp.eq.f32.partialorder %v1972_v23, 0.0 }
 0x2fe   : > { %v1611_v55 = vpop.xlane.xlu1 %1610  ;;  %v1988_v35 = vsel %vm1980_vm5, 1.0, %v1972_v23 }
 0x2ff   : > { %v1623_v30 = vadd.f32 %v1611_v55, %v1591_v51  ;;  %2746 = vrcp.f32 %v1988_v35 }
 0x300   : > { %v1973_v24 = vld [vmem:[#allocation4 + $0x18] sm:$0xff] }
 0x301   : > { %v2743_v63 = vpop.eup %2742  ;;  %1632 = vst.msk [vmem:[#allocation4 + $0x28] sm:$0xff] %vm874_vm1, %v1623_v30  ;;  %vm1981_vm6 = vcmp.eq.f32.partialorder %v1973_v24, 0.0 }
 0x302   : > { %v1614_v50 = vpop.xlane.xlu0 %1613  ;;  %2012 = vperm.xlu1 %2685, %v2743_v63   ;;  %v1989_v60 = vsel %vm1981_vm6, 1.0, %v1973_v24 }
 0x303   : > { %v1624_v5 = vadd.f32 %v1614_v50, %v1592_v52  ;;  %2748 = vrcp.f32 %v1989_v60 }
 0x304   : > { %v1974_v32 = vld [vmem:[#allocation4 + $0x20] sm:$0xff] }
 0x305   : > { %v2745_v33 = vpop.eup %2744  ;;  %1633 = vst.msk [vmem:[#allocation4 + $0x30] sm:$0xff] %vm874_vm1, %v1624_v5  ;;  %vm1982_vm7 = vcmp.eq.f32.partialorder %v1974_v32, 0.0 }
 0x306   : > { %2017 = vperm.xlu0 %2684, %v2745_v33   ;;  %v1617_v54 = vpop.xlane.xlu1 %1616  ;;  %v1990_v58 = vsel %vm1982_vm7, 1.0, %v1974_v32 }
 0x307   : > { %v1625_v28 = vadd.f32 %v1617_v54, %v1593_v61  ;;  %2750 = vrcp.f32 %v1990_v58 }
 0x308   : > { %v1975_v27 = vld [vmem:[#allocation4 + $0x28] sm:$0xff] }
 0x309   : > { %v2747_v31 = vpop.eup %2746  ;;  %1634 = vst.msk [vmem:[#allocation4 + $0x38] sm:$0xff] %vm874_vm1, %v1625_v28  ;;  %vm1983_vm8 = vcmp.eq.f32.partialorder %v1975_v27, 0.0 }
 0x30a   : > { %2022 = vperm.xlu1 %2685, %v2747_v31   ;;  %v1991_v37 = vsel %vm1983_vm8, 1.0, %v1975_v27  ;;  %v1651_v19 = vpop.permute.xlu1 %1650  ;;  %v1646_v12 = vpop.permute.xlu0 %1645 }
 0x30b   : > { %2752 = vrcp.f32 %v1991_v37  ;;  %v1683_v47 = vmul.f32 0.0, %v1646_v12  ;;  %v1684_v29 = vmul.f32 0.0, %v1651_v19 }
 0x30c   : > { %v1976_v38 = vld [vmem:[#allocation4 + $0x30] sm:$0xff] }
 0x30d   : > { %v2749_v6 = vpop.eup %2748  ;;  %vm1984_vm9 = vcmp.eq.f32.partialorder %v1976_v38, 0.0 }
 0x30e   : > { %2027 = vperm.xlu0 %2684, %v2749_v6   ;;  %v1992_v2 = vsel %vm1984_vm9, 1.0, %v1976_v38  ;;  %v1656_v16 = vpop.permute.xlu1 %1655  ;;  %v1661_v43 = vpop.permute.xlu0 %1660 }
 0x30f   : > { %2754 = vrcp.f32 %v1992_v2  ;;  %v1685_v5 = vmul.f32 0.0, %v1656_v16  ;;  %v1686_v2 = vmul.f32 0.0, %v1661_v43 }
 0x310   : > { %v1977_v62 = vld [vmem:[#allocation4 + $0x38] sm:$0xff] }
 0x311   : > { %v2751_v0 = vpop.eup %2750  ;;  %vm1985_vm10 = vcmp.eq.f32.partialorder %v1977_v62, 0.0 }
 0x312   : > { %2032 = vperm.xlu1 %2685, %v2751_v0   ;;  %v1993_v1 = vsel %vm1985_vm10, 1.0, %v1977_v62  ;;  %v1666_v25 = vpop.permute.xlu1 %1665  ;;  %v1671_v39 = vpop.permute.xlu0 %1670 }
 0x313   : > { %2756 = vrcp.f32 %v1993_v1  ;;  %v1687_v45 = vmul.f32 0.0, %v1666_v25  ;;  %v1688_v35 = vmul.f32 0.0, %v1671_v39 }
 0x315   : > { %v2753_v4 = vpop.eup %2752 }
 0x316   : > { %2037 = vperm.xlu0 %2684, %v2753_v4   ;;  %v1676_v36 = vpop.permute.xlu1 %1675  ;;  %v1681_v46 = vpop.permute.xlu0 %1680 }
 0x317   : > { %v1689_v32 = vmul.f32 0.0, %v1676_v36  ;;  %v1690_v37 = vmul.f32 0.0, %v1681_v46 }
 0x319   : > { %v2755_v7 = vpop.eup %2754 }
 0x31a   : > { %2042 = vperm.xlu1 %2685, %v2755_v7  }
 0x31d   : > { %v2757_v8 = vpop.eup %2756 }
 0x31e   : > { %2047 = vperm.xlu0 %2684, %v2757_v8  }
 0x335   : > { %v1750_v9 = vpop.f32.mrb[8].mxu0 }
 0x336   : > { %v2586_v10 = vpop.f32.mrb[9].mxu0  ;;  %v1943_v48 = vadd.f32 %v1750_v9, %v1683_v47 }
 0x337   : > { %v1753_v11 = vpop.f32.mrb[10].mxu0 }
 0x338   : > { %v2587_v13 = vpop.f32.mrb[11].mxu0  ;;  %v1944_v63 = vadd.f32 %v1753_v11, %v1684_v29 }
 0x33d   : > { %v1812_v14 = vpop.f32.mrb[8].mxu1 }
 0x33e   : > { %v2592_v15 = vpop.f32.mrb[9].mxu1  ;;  %v1945_v54 = vadd.f32 %v1812_v14, %v1685_v5 }
 0x33f   : > { %v1815_v17 = vpop.f32.mrb[10].mxu1 }
 0x340   : > { %v2593_v18 = vpop.f32.mrb[11].mxu1  ;;  %v1946_v4 = vadd.f32 %v1815_v17, %v1686_v2 }
 0x345   : > { %v1874_v21 = vpop.f32.mrb[12].mxu0 }
 0x346   : > { %v2598_v22 = vpop.f32.mrb[13].mxu0  ;;  %v1947_v23 = vadd.f32 %v1874_v21, %v1687_v45 }
 0x347   : > { %v1877_v26 = vpop.f32.mrb[14].mxu0 }
 0x348   : > { %v2599_v41 = vpop.f32.mrb[15].mxu0  ;;  %v1948_v52 = vadd.f32 %v1877_v26, %v1688_v35 }
 0x34d   : > { %v1936_v44 = vpop.f32.mrb[12].mxu1 }
 0x34e   : > { %v2604_v20 = vpop.f32.mrb[13].mxu1  ;;  %v1949_v58 = vadd.f32 %v1936_v44, %v1689_v32 }
 0x34f   : > { %v1939_v59 = vpop.f32.mrb[14].mxu1 }
 0x350   : > { %v2605_v34 = vpop.f32.mrb[15].mxu1  ;;  %v1950_v62 = vadd.f32 %v1939_v59, %v1690_v37 }
 0x381   : > { %v2013_v56 = vpop.permute.xlu1 %2012 }
 0x382   : > { %v2050_v30 = vmul.f32 %v2013_v56, %v1943_v48 }
 0x385   : > { %v2018_v42 = vpop.permute.xlu0 %2017 }
 0x386   : > { %v2051_v33 = vmul.f32 %v2018_v42, %v1944_v63 }
 0x389   : > { %v2023_v40 = vpop.permute.xlu1 %2022 }
 0x38a   : > { %v2052_v38 = vmul.f32 %v2023_v40, %v1945_v54 }
 0x38d   : > { %v2028_v51 = vpop.permute.xlu0 %2027 }
 0x38e   : > { %v2053_v14 = vmul.f32 %v2028_v51, %v1946_v4 }
 0x391   : > { %v2033_v55 = vpop.permute.xlu1 %2032 }
 0x392   : > { %v2054_v24 = vmul.f32 %v2033_v55, %v1947_v23 }
 0x394   : > { %v2058_v50 = vcombine.low %v2050_v30, %v2054_v24  ;;  %v2059_v53 = vcombine.high %v2050_v30, %v2054_v24 }
 0x395   : > { %v2038_v60 = vpop.permute.xlu0 %2037 }
 0x396   : > { %v2055_v61 = vmul.f32 %v2038_v60, %v1948_v52  ;;  %v2066_v7 = vrot.slane %v2058_v50, %v3084_v3  ;;  %v2073_v9 = vrot.slane %v2059_v53, %v3084_v3 }
 0x398   : > { %v2126_v28 = vcombine.low %v2051_v33, %v2055_v61  ;;  %v2127_v27 = vcombine.high %v2051_v33, %v2055_v61 }
 0x399   : > { %v2043_v31 = vpop.permute.xlu1 %2042 }
 0x39a   : > { %v2056_v6 = vmul.f32 %v2043_v31, %v1949_v58  ;;  %v2134_v34 = vrot.slane %v2126_v28, %v3084_v3  ;;  %v2141_v19 = vrot.slane %v2127_v27, %v3084_v3 }
 0x39c   : > { %v2074_v0 = vcombine.low %v2052_v38, %v2056_v6  ;;  %v2075_v1 = vcombine.high %v2052_v38, %v2056_v6 }
 0x39d   : > { %v2048_v8 = vpop.permute.xlu0 %2047 }
 0x39e   : > { %v2082_v10 = vrot.slane %v2074_v0, %v3084_v3  ;;  %v2089_v11 = vrot.slane %v2075_v1, %v3084_v3  ;;  %v2057_v13 = vmul.f32 %v2048_v8, %v1950_v62 }
 0x3a0   : > { %v2090_v15 = vcombine.low %v2066_v7, %v2082_v10  ;;  %v2091_v18 = vcombine.high %v2066_v7, %v2082_v10  ;;  %v2106_v21 = vcombine.low %v2073_v9, %v2089_v11  ;;  %v2107_v22 = vcombine.high %v2073_v9, %v2089_v11 }
 0x3a1   : > { %v2142_v26 = vcombine.low %v2053_v14, %v2057_v13  ;;  %v2143_v41 = vcombine.high %v2053_v14, %v2057_v13 }
 0x3a2   : > { %v2098_v44 = vrot.slane %v2090_v15, %v3082_v57  ;;  %v2105_v17 = vrot.slane %v2091_v18, %v3082_v57  ;;  %v2114_v20 = vrot.slane %v2106_v21, %v3082_v57  ;;  %v2121_v59 = vrot.slane %v2107_v22, %v3082_v57 }
 0x3a3   : > { %v2150_v12 = vrot.slane %v2142_v26, %v3084_v3  ;;  %v2157_v16 = vrot.slane %v2143_v41, %v3084_v3 }
 0x3a4   : > { %v2122_v43 = vcombine.high %v2098_v44, %v2854_v49  ;;  %v2123_v25 = vcombine.high %v2105_v17, %v2854_v49  ;;  %v2124_v39 = vcombine.high %v2114_v20, %v2854_v49  ;;  %v2125_v36 = vcombine.high %v2121_v59, %v2854_v49 }
 0x3a5   : > { %v2194_v46 = vpack.c.bf16 %v2098_v44, %v2098_v44  ;;  %v2196_v56 = vpack.c.bf16 %v2105_v17, %v2105_v17  ;;  %v2198_v42 = vpack.c.bf16 %v2114_v20, %v2114_v20  ;;  %v2200_v40 = vpack.c.bf16 %v2121_v59, %v2121_v59 }
 0x3a6   : > { %v2195_v47 = vpack.c.bf16 %v2122_v43, %v2122_v43  ;;  %v2197_v45 = vpack.c.bf16 %v2123_v25, %v2123_v25  ;;  %v2199_v48 = vpack.c.bf16 %v2124_v39, %v2124_v39  ;;  %v2201_v23 = vpack.c.bf16 %v2125_v36, %v2125_v36 }
 0x3a7   : > { %2210 = vst [vmem:[%s3419_s18] sm:$0x3] %v2194_v46  ;;  %2212 = vst [vmem:[%s3419_s18 + $0x4] sm:$0x3] %v2196_v56  ;;  %v2158_v3 = vcombine.low %v2134_v34, %v2150_v12  ;;  %v2159_v51 = vcombine.high %v2134_v34, %v2150_v12  ;;  %v2174_v55 = vcombine.low %v2141_v19, %v2157_v16 }
 0x3a8   : > { %2214 = vst [vmem:[%s3419_s18 + $0x8] sm:$0x3] %v2198_v42  ;;  %2216 = vst [vmem:[%s3419_s18 + $0xc] sm:$0x3] %v2200_v40  ;;  %v2175_v29 = vcombine.high %v2141_v19, %v2157_v16 }
 0x3a9   : > { %2211 = vst [vmem:[%s3419_s18 + $0x2] sm:$0x3] %v2195_v47  ;;  %2213 = vst [vmem:[%s3419_s18 + $0x6] sm:$0x3] %v2197_v45  ;;  %v2166_v35 = vrot.slane %v2158_v3, %v3082_v57  ;;  %v2173_v30 = vrot.slane %v2159_v51, %v3082_v57  ;;  %v2182_v24 = vrot.slane %v2174_v55, %v3082_v57 }
 0x3aa   : > { %2215 = vst [vmem:[%s3419_s18 + $0xa] sm:$0x3] %v2199_v48  ;;  %2217 = vst [vmem:[%s3419_s18 + $0xe] sm:$0x3] %v2201_v23  ;;  %v2189_v63 = vrot.slane %v2175_v29, %v3082_v57 }
 0x3ab   : > { %v2190_v52 = vcombine.high %v2166_v35, %v2854_v49  ;;  %v2191_v50 = vcombine.high %v2173_v30, %v2854_v49  ;;  %v2192_v53 = vcombine.high %v2182_v24, %v2854_v49  ;;  %v2202_v5 = vpack.c.bf16 %v2166_v35, %v2166_v35  ;;  %2232 = sbr.rel (!%p2988_p12) target bundleno = 956 (0x3bc), region = 175 }
 0x3ac   : > { %v2193_v60 = vcombine.high %v2189_v63, %v2854_v49  ;;  %v2204_v32 = vpack.c.bf16 %v2173_v30, %v2173_v30  ;;  %v2206_v33 = vpack.c.bf16 %v2182_v24, %v2182_v24  ;;  %v2208_v61 = vpack.c.bf16 %v2189_v63, %v2189_v63 }
 0x3ad   : > { %v2203_v54 = vpack.c.bf16 %v2190_v52, %v2190_v52  ;;  %v2205_v58 = vpack.c.bf16 %v2191_v50, %v2191_v50  ;;  %v2207_v57 = vpack.c.bf16 %v2192_v53, %v2192_v53  ;;  %2218 = vst [vmem:[%s3419_s18 + $0x10] sm:$0x3] %v2202_v5 }
 0x3ae   : > { %v2209_v28 = vpack.c.bf16 %v2193_v60, %v2193_v60  ;;  %2220 = vst [vmem:[%s3419_s18 + $0x14] sm:$0x3] %v2204_v32  ;;  %2222 = vst [vmem:[%s3419_s18 + $0x18] sm:$0x3] %v2206_v33  ;;  %v2253_v49 = vld [vmem:[%s3419_s18] sm:$0x3] (%p2988_p12) }
 0x3af   : > { %2224 = vst [vmem:[%s3419_s18 + $0x1c] sm:$0x3] %v2208_v61  ;;  %2219 = vst [vmem:[%s3419_s18 + $0x12] sm:$0x3] %v2203_v54  ;;  %v2257_v31 = vld [vmem:[%s3419_s18 + $0x4] sm:$0x3] (%p2988_p12) }
 0x3b0   : > { %2221 = vst [vmem:[%s3419_s18 + $0x16] sm:$0x3] %v2205_v58  ;;  %2223 = vst [vmem:[%s3419_s18 + $0x1a] sm:$0x3] %v2207_v57  ;;  %v2255_v27 = vld [vmem:[%s3419_s18 + $0x2] sm:$0x3] (%p2988_p12) }
 0x3b1   : > { %2225 = vst [vmem:[%s3419_s18 + $0x1e] sm:$0x3] %v2209_v28  ;;  %v2259_v37 = vld [vmem:[%s3419_s18 + $0x6] sm:$0x3] (%p2988_p12)  ;;  %v2261_v38 = vld [vmem:[%s3419_s18 + $0x8] sm:$0x3] (%p2988_p12) }
 0x3b2   : > { %2254 = vst [vmem:[%s2237_s27] sm:$0x3] %v2253_v49  ;;  %2256 = vst [vmem:[%s2237_s27 + $0x8] sm:$0x3] %v2255_v27  ;;  %v2263_v6 = vld [vmem:[%s3419_s18 + $0xa] sm:$0x3] }
 0x3b3   : > { %2258 = vst [vmem:[%s2237_s27 + $0x10] sm:$0x3] %v2257_v31  ;;  %2260 = vst [vmem:[%s2237_s27 + $0x18] sm:$0x3] %v2259_v37  ;;  %v2265_v2 = vld [vmem:[%s3419_s18 + $0xc] sm:$0x3] }
 0x3b4   : > { %2262 = vst [vmem:[%s2237_s27 + $0x20] sm:$0x3] %v2261_v38  ;;  %v2267_v62 = vld [vmem:[%s3419_s18 + $0xe] sm:$0x3]  ;;  %2264 = vst [vmem:[%s2237_s27 + $0x28] sm:$0x3] %v2263_v6 }
 0x3b5   : > { %2266 = vst [vmem:[%s2237_s27 + $0x30] sm:$0x3] %v2265_v2  ;;  %2268 = vst [vmem:[%s2237_s27 + $0x38] sm:$0x3] %v2267_v62  ;;  %v2269_v0 = vld [vmem:[%s3419_s18 + $0x10] sm:$0x3] }
 0x3b6   : > { %v2271_v1 = vld [vmem:[%s3419_s18 + $0x12] sm:$0x3]  ;;  %v2273_v4 = vld [vmem:[%s3419_s18 + $0x14] sm:$0x3]  ;;  %2270 = vst [vmem:[%s2237_s27 + $0x40] sm:$0x3] %v2269_v0 }
 0x3b7   : > { %2272 = vst [vmem:[%s2237_s27 + $0x48] sm:$0x3] %v2271_v1  ;;  %2274 = vst [vmem:[%s2237_s27 + $0x50] sm:$0x3] %v2273_v4  ;;  %v2275_v7 = vld [vmem:[%s3419_s18 + $0x16] sm:$0x3] }
 0x3b8   : > { %v2277_v8 = vld [vmem:[%s3419_s18 + $0x18] sm:$0x3]  ;;  %v2279_v9 = vld [vmem:[%s3419_s18 + $0x1a] sm:$0x3]  ;;  %2276 = vst [vmem:[%s2237_s27 + $0x58] sm:$0x3] %v2275_v7 }
 0x3b9   : > { %2278 = vst [vmem:[%s2237_s27 + $0x60] sm:$0x3] %v2277_v8  ;;  %2280 = vst [vmem:[%s2237_s27 + $0x68] sm:$0x3] %v2279_v9  ;;  %v2281_v10 = vld [vmem:[%s3419_s18 + $0x1c] sm:$0x3] }
 0x3ba   : > { %v2283_v11 = vld [vmem:[%s3419_s18 + $0x1e] sm:$0x3]  ;;  %2282 = vst [vmem:[%s2237_s27 + $0x70] sm:$0x3] %v2281_v10 }
 0x3bb   : > { %2284 = vst [vmem:[%s2237_s27 + $0x78] sm:$0x3] %v2283_v11 }
 0x3bc PF: > { %s15_s26 = sadd.s32 1, %s2852_s26   ;;  %s3504_s18 = smov %s2824_s19 }
 0x3bd   : > { %p12_p3 = scmp.ge.s32.totalorder %s15_s26, 6   ;;  %s3505_s19 = smov %s2977_s6 }
 0x3be   : > { %s3506_s20 = smov %s2832_s21  ;;  %s3507_s21 = smov %s2961_s12 }
 0x3bf   : > { %s3508_s22 = smov %s2840_s23  ;;  %s3509_s23 = smov %s2958_s11 }
 0x3c0   : > { %s3510_s24 = smov %s2848_s25  ;;  %s3511_s25 = smov %s3513_s28 }
 0x3c1   :  { %14 = sbr.rel (!%p12_p3) target bundleno = 5 (0x5), region = 269 }

// kernel: transformer_encoder_layer.8
= control target key start
LH: loop header
LB: loop body
LE: loop exit
PB: predicated region body
PF: predicated region fallthrough
CT: control target
= control target key end

     0   :  { %v488_v1 = vmov 0   ;;  %v305_v21 = vlaneseq  ;;  %s596_s1 = inlined_call_operand.vmem [shape: bf16[128,256], index: 1, kind: input, shape index: {}]   ;;  %s597_s0 = inlined_call_operand.vmem [shape: bf16[64,128], index: 0, kind: input, shape index: {}]   ;;  %s598_s2 = inlined_call_operand.vmem [shape: f32[1,256], index: 2, kind: input, shape index: {}]   ;;  %s599_s3 = inlined_call_operand.vmem [shape: bf16[64,256], index: 3, kind: output, shape index: {}]  }
   0x1   :  { %v460_v0 = vld [vmem:[%s596_s1 + $0x4] ss:$8 sps:$4 sm:$0xff]   ;;  %211 = vmatprep.mubr.bf16.mxu0 %v488_v1  ;;  %231 = vmatprep.mubr.bf16.mxu1 %v488_v1  ;;  %v462_v2 = vld [vmem:[%s596_s1] ss:$8 sps:$4 sm:$0xff]   ;;  %v463_v3 = vld [vmem:[%s596_s1 + $0x14] ss:$8 sps:$4 sm:$0xff]  }
   0x2   :  { %179 = vmatprep.subr.bf16.mxu0 %v460_v0  ;;  %443 = vmatprep.subr.bf16.mxu1 %v460_v0  ;;  %v465_v4 = vld [vmem:[%s596_s1 + $0x10] ss:$8 sps:$4 sm:$0xff]   ;;  %v466_v5 = vld [vmem:[%s596_s1 + $0x24] ss:$8 sps:$4 sm:$0xff]   ;;  %v468_v6 = vld [vmem:[%s596_s1 + $0x20] ss:$8 sps:$4 sm:$0xff]  }
   0x3   :  { %180 = vmatpush1.bf16.msra.mxu0 %v462_v2  ;;  %451 = vmatpush1.bf16.msra.mxu1 %v462_v2  ;;  %v469_v7 = vld [vmem:[%s596_s1 + $0x34] ss:$8 sps:$4 sm:$0xff]   ;;  %v471_v8 = vld [vmem:[%s596_s1 + $0x30] ss:$8 sps:$4 sm:$0xff]   ;;  %v472_v9 = vld [vmem:[%s596_s1 + $0x44] ss:$8 sps:$4 sm:$0xff]  }
   0x4   :  { %181 = vmatprep.subr.bf16.mxu0 %v463_v3  ;;  %444 = vmatprep.subr.bf16.mxu1 %v463_v3  ;;  %v474_v10 = vld [vmem:[%s596_s1 + $0x40] ss:$8 sps:$4 sm:$0xff]   ;;  %v475_v11 = vld [vmem:[%s596_s1 + $0x54] ss:$8 sps:$4 sm:$0xff]   ;;  %v477_v12 = vld [vmem:[%s596_s1 + $0x50] ss:$8 sps:$4 sm:$0xff]  }
   0x5   :  { %v478_v13 = vld [vmem:[%s596_s1 + $0x64] ss:$8 sps:$4 sm:$0xff]   ;;  %v480_v14 = vld [vmem:[%s596_s1 + $0x60] ss:$8 sps:$4 sm:$0xff]   ;;  %v481_v15 = vld [vmem:[%s596_s1 + $0x74] ss:$8 sps:$4 sm:$0xff]  }
   0x6   :  { %v483_v16 = vld [vmem:[%s596_s1 + $0x70] ss:$8 sps:$4 sm:$0xff]   ;;  %v484_v17 = vld [vmem:[%s597_s0] sm:$0xff]   ;;  %v486_v19 = vld [vmem:[%s597_s0 + $0x8] sm:$0xff]   ;;  %v306_v22 = vshrl.u32 %v305_v21, 7 }
   0x7   :  { %182 = vmatpush1.bf16.msra.mxu0 %v465_v4  ;;  %452 = vmatpush1.bf16.msra.mxu1 %v465_v4  ;;  %v485_v18 = vld [vmem:[%s597_s0 + $0x10] sm:$0xff]   ;;  %v487_v20 = vld [vmem:[%s597_s0 + $0x18] sm:$0xff]   ;;  %v303_v24 = vld [vmem:[%s598_s2] sm:$0x3] }
   0x8   :  { %183 = vmatprep.subr.bf16.mxu0 %v466_v5  ;;  %445 = vmatprep.subr.bf16.mxu1 %v466_v5  ;;  %v307_v23 = vsub.s32 0, %v306_v22  ;;  %v311_v25 = vsub.s32 1, %v306_v22 }
   0xa   :  { %v308_v26 = vrot.slane %v303_v24, %v307_v23  ;;  %v312_v27 = vrot.slane %v303_v24, %v311_v25 }
   0xb   :  { %184 = vmatpush1.bf16.msra.mxu0 %v468_v6  ;;  %453 = vmatpush1.bf16.msra.mxu1 %v468_v6 }
   0xc   :  { %185 = vmatprep.subr.bf16.mxu0 %v469_v7  ;;  %446 = vmatprep.subr.bf16.mxu1 %v469_v7 }
   0xf   :  { %186 = vmatpush1.bf16.msra.mxu0 %v471_v8  ;;  %454 = vmatpush1.bf16.msra.mxu1 %v471_v8 }
  0x10   :  { %187 = vmatprep.subr.bf16.mxu0 %v472_v9  ;;  %447 = vmatprep.subr.bf16.mxu1 %v472_v9 }
  0x13   :  { %188 = vmatpush1.bf16.msra.mxu0 %v474_v10  ;;  %455 = vmatpush1.bf16.msra.mxu1 %v474_v10 }
  0x14   :  { %189 = vmatprep.subr.bf16.mxu0 %v475_v11  ;;  %448 = vmatprep.subr.bf16.mxu1 %v475_v11 }
  0x17   :  { %190 = vmatpush1.bf16.msra.mxu0 %v477_v12  ;;  %456 = vmatpush1.bf16.msra.mxu1 %v477_v12 }
  0x18   :  { %191 = vmatprep.subr.bf16.mxu0 %v478_v13  ;;  %449 = vmatprep.subr.bf16.mxu1 %v478_v13 }
  0x1b   :  { %192 = vmatpush1.bf16.msra.mxu0 %v480_v14  ;;  %457 = vmatpush1.bf16.msra.mxu1 %v480_v14 }
  0x1c   :  { %193 = vmatprep.subr.bf16.mxu0 %v481_v15  ;;  %450 = vmatprep.subr.bf16.mxu1 %v481_v15 }
  0x1f   :  { %194 = vmatpush1.bf16.msra.mxu0 %v483_v16  ;;  %458 = vmatpush1.bf16.msra.mxu1 %v483_v16 }
  0x22   :  { %212 = vmatmul.mubr.bf16.vlgmr.msra.gmra.mrb[0].mxu0 %v484_v17  ;;  %232 = vmatmul.mubr.bf16.vlgmr.msra.gmra.mrb[0].mxu1 %v485_v18 }
  0x23   :  { %221 = vmatprep.mubr.bf16.mxu0 %v488_v1  ;;  %241 = vmatprep.mubr.bf16.mxu1 %v488_v1 }
  0x2a   :  { %222 = vmatmul.mubr.bf16.gmra.mrb[4].mxu0 %v486_v19  ;;  %242 = vmatmul.mubr.bf16.gmra.mrb[4].mxu1 %v487_v20 }
  0xf5   :  { %v213_v28 = vpop.f32.mrb[0].mxu0  ;;  %v233_v29 = vpop.f32.mrb[0].mxu1 }
  0xf6   :  { %v315_v30 = vadd.f32 %v308_v26, %v213_v28  ;;  %v323_v31 = vadd.f32 %v308_v26, %v233_v29  ;;  %v215_v32 = vpop.f32.mrb[1].mxu0  ;;  %v235_v33 = vpop.f32.mrb[1].mxu1 }
  0xf7   :  { %v316_v34 = vadd.f32 %v312_v27, %v215_v32  ;;  %v324_v35 = vadd.f32 %v312_v27, %v235_v33  ;;  %v217_v36 = vpop.f32.mrb[2].mxu0  ;;  %v237_v37 = vpop.f32.mrb[2].mxu1 }
  0xf8   :  { %v331_v38 = vmax.f32 %v315_v30, 0.0  ;;  %v339_v39 = vmax.f32 %v323_v31, 0.0  ;;  %v317_v40 = vadd.f32 %v308_v26, %v217_v36  ;;  %v325_v41 = vadd.f32 %v308_v26, %v237_v37  ;;  %v219_v42 = vpop.f32.mrb[3].mxu0  ;;  %v239_v43 = vpop.f32.mrb[3].mxu1 }
  0xf9   :  { %v332_v44 = vmax.f32 %v316_v34, 0.0  ;;  %v340_v45 = vmax.f32 %v324_v35, 0.0  ;;  %v318_v46 = vadd.f32 %v312_v27, %v219_v42  ;;  %v326_v47 = vadd.f32 %v312_v27, %v239_v43 }
  0xfa   :  { %v333_v48 = vmax.f32 %v317_v40, 0.0  ;;  %v341_v49 = vmax.f32 %v325_v41, 0.0 }
  0xfb   :  { %v435_v50 = vpack.c.bf16 %v332_v44, %v331_v38  ;;  %v439_v51 = vpack.c.bf16 %v340_v45, %v339_v39  ;;  %v334_v52 = vmax.f32 %v318_v46, 0.0  ;;  %v342_v53 = vmax.f32 %v326_v47, 0.0 }
  0xfd   :  { %395 = vst [vmem:[%s599_s3] sm:$0xff] %v435_v50  ;;  %399 = vst [vmem:[%s599_s3 + $0x20] sm:$0xff] %v439_v51  ;;  %v436_v54 = vpack.c.bf16 %v334_v52, %v333_v48  ;;  %v440_v55 = vpack.c.bf16 %v342_v53, %v341_v49  ;;  %v223_v56 = vpop.f32.mrb[4].mxu0  ;;  %v243_v57 = vpop.f32.mrb[4].mxu1 }
  0xfe   :  { %v319_v58 = vadd.f32 %v308_v26, %v223_v56  ;;  %v327_v59 = vadd.f32 %v308_v26, %v243_v57  ;;  %v225_v60 = vpop.f32.mrb[5].mxu0  ;;  %v245_v61 = vpop.f32.mrb[5].mxu1 }
  0xff   :  { %396 = vst [vmem:[%s599_s3 + $0x8] sm:$0xff] %v436_v54  ;;  %400 = vst [vmem:[%s599_s3 + $0x28] sm:$0xff] %v440_v55  ;;  %v320_v62 = vadd.f32 %v312_v27, %v225_v60  ;;  %v328_v63 = vadd.f32 %v312_v27, %v245_v61  ;;  %v227_v0 = vpop.f32.mrb[6].mxu0  ;;  %v247_v1 = vpop.f32.mrb[6].mxu1 }
 0x100   :  { %v335_v2 = vmax.f32 %v319_v58, 0.0  ;;  %v343_v3 = vmax.f32 %v327_v59, 0.0  ;;  %v321_v4 = vadd.f32 %v308_v26, %v227_v0  ;;  %v329_v5 = vadd.f32 %v308_v26, %v247_v1  ;;  %v229_v6 = vpop.f32.mrb[7].mxu0  ;;  %v249_v7 = vpop.f32.mrb[7].mxu1 }
 0x101   :  { %v336_v8 = vmax.f32 %v320_v62, 0.0  ;;  %v344_v9 = vmax.f32 %v328_v63, 0.0  ;;  %v322_v10 = vadd.f32 %v312_v27, %v229_v6  ;;  %v330_v11 = vadd.f32 %v312_v27, %v249_v7 }
 0x102   :  { %v337_v12 = vmax.f32 %v321_v4, 0.0  ;;  %v345_v13 = vmax.f32 %v329_v5, 0.0 }
 0x103   :  { %v437_v14 = vpack.c.bf16 %v336_v8, %v335_v2  ;;  %v441_v15 = vpack.c.bf16 %v344_v9, %v343_v3  ;;  %v338_v16 = vmax.f32 %v322_v10, 0.0  ;;  %v346_v17 = vmax.f32 %v330_v11, 0.0 }
 0x105   :  { %397 = vst [vmem:[%s599_s3 + $0x10] sm:$0xff] %v437_v14  ;;  %401 = vst [vmem:[%s599_s3 + $0x30] sm:$0xff] %v441_v15  ;;  %v438_v18 = vpack.c.bf16 %v338_v16, %v337_v12  ;;  %v442_v19 = vpack.c.bf16 %v346_v17, %v345_v13 }
 0x107   :  { %398 = vst [vmem:[%s599_s3 + $0x18] sm:$0xff] %v438_v18  ;;  %402 = vst [vmem:[%s599_s3 + $0x38] sm:$0xff] %v442_v19 }

// kernel: transformer_encoder_layer.7
= control target key start
LH: loop header
LB: loop body
LE: loop exit
PB: predicated region body
PF: predicated region fallthrough
CT: control target
= control target key end

     0   :  { %s1222_s1 = inlined_call_operand.vmem [shape: bf16[512,128], index: 1, kind: input, shape index: {}]   ;;  %s1223_s0 = inlined_call_operand.vmem [shape: bf16[64,512], index: 0, kind: input, shape index: {}]   ;;  %s1224_s3 = inlined_call_operand.vmem [shape: bf16[64,128], index: 3, kind: input, shape index: {}]   ;;  %s1225_s2 = inlined_call_operand.vmem [shape: f32[1,128], index: 2, kind: input, shape index: {}]   ;;  %s1226_s4 = inlined_call_operand.vmem [shape: f32[1,128], index: 4, kind: input, shape index: {}]   ;;  %s1227_s5 = inlined_call_operand.vmem [shape: f32[1,128], index: 5, kind: input, shape index: {}]   ;;  %s1228_s6 = inlined_call_operand.vmem [shape: f32[64,128], index: 6, kind: output, shape index: {}]  }
   0x1   :  { %v873_v0 = vld [vmem:[%s1222_s1 + $0x40] sm:$0xff]   ;;  %v877_v4 = vld [vmem:[%s1222_s1 + $0x48] sm:$0xff]   ;;  %v881_v8 = vld [vmem:[%s1222_s1 + $0x50] sm:$0xff]  }
   0x2   :  { %v874_v1 = vld [vmem:[%s1222_s1 + $0xc0] sm:$0xff]   ;;  %793 = vmatprep.subr.bf16.mxu0 %v873_v0  ;;  %v878_v5 = vld [vmem:[%s1222_s1 + $0xc8] sm:$0xff]   ;;  %v882_v9 = vld [vmem:[%s1222_s1 + $0xd0] sm:$0xff]  }
   0x3   :  { %v875_v2 = vld [vmem:[%s1222_s1] sm:$0xff]   ;;  %833 = vmatprep.subr.bf16.mxu1 %v874_v1  ;;  %v879_v6 = vld [vmem:[%s1222_s1 + $0x8] sm:$0xff]   ;;  %v883_v10 = vld [vmem:[%s1222_s1 + $0x10] sm:$0xff]  }
   0x4   :  { %v876_v3 = vld [vmem:[%s1222_s1 + $0x80] sm:$0xff]   ;;  %794 = vmatpush3.bf16.msra.mxu0 %v875_v2  ;;  %v880_v7 = vld [vmem:[%s1222_s1 + $0x88] sm:$0xff]   ;;  %v884_v11 = vld [vmem:[%s1222_s1 + $0x90] sm:$0xff]  }
   0x5   :  { %834 = vmatpush3.bf16.msra.mxu1 %v876_v3  ;;  %795 = vmatprep.subr.bf16.mxu0 %v877_v4  ;;  %v885_v12 = vld [vmem:[%s1222_s1 + $0x58] sm:$0xff]   ;;  %v889_v16 = vld [vmem:[%s1222_s1 + $0x60] sm:$0xff]   ;;  %v893_v20 = vld [vmem:[%s1222_s1 + $0x68] sm:$0xff]  }
   0x6   :  { %835 = vmatprep.subr.bf16.mxu1 %v878_v5  ;;  %v886_v13 = vld [vmem:[%s1222_s1 + $0xd8] sm:$0xff]   ;;  %v890_v17 = vld [vmem:[%s1222_s1 + $0xe0] sm:$0xff]   ;;  %v894_v21 = vld [vmem:[%s1222_s1 + $0xe8] sm:$0xff]  }
   0x7   :  { %v887_v14 = vld [vmem:[%s1222_s1 + $0x18] sm:$0xff]   ;;  %v891_v18 = vld [vmem:[%s1222_s1 + $0x20] sm:$0xff]   ;;  %v895_v22 = vld [vmem:[%s1222_s1 + $0x28] sm:$0xff]  }
   0x8   :  { %796 = vmatpush3.bf16.msra.mxu0 %v879_v6  ;;  %v888_v15 = vld [vmem:[%s1222_s1 + $0x98] sm:$0xff]   ;;  %v892_v19 = vld [vmem:[%s1222_s1 + $0xa0] sm:$0xff]   ;;  %v896_v23 = vld [vmem:[%s1222_s1 + $0xa8] sm:$0xff]  }
   0x9   :  { %836 = vmatpush3.bf16.msra.mxu1 %v880_v7  ;;  %797 = vmatprep.subr.bf16.mxu0 %v881_v8  ;;  %v897_v24 = vld [vmem:[%s1222_s1 + $0x70] sm:$0xff]   ;;  %v901_v28 = vld [vmem:[%s1222_s1 + $0x78] sm:$0xff]   ;;  %v775_v54 = vld [vmem:[%s1224_s3] sm:$0xff]  }
   0xa   :  { %837 = vmatprep.subr.bf16.mxu1 %v882_v9  ;;  %v898_v25 = vld [vmem:[%s1222_s1 + $0xf0] sm:$0xff]   ;;  %v902_v29 = vld [vmem:[%s1222_s1 + $0xf8] sm:$0xff]   ;;  %v1130_v60 = vld [vmem:[%s1225_s2] ss:$0 sm:$0xff]  ;;  %v776_v63 = vunpack.c.l.bf16 %v775_v54  ;;  %v777_v7 = vunpack.c.h.bf16 %v775_v54 }
   0xb   :  { %v899_v26 = vld [vmem:[%s1222_s1 + $0x30] sm:$0xff]   ;;  %v903_v30 = vld [vmem:[%s1222_s1 + $0x38] sm:$0xff]  }
   0xc   :  { %798 = vmatpush3.bf16.msra.mxu0 %v883_v10  ;;  %v900_v27 = vld [vmem:[%s1222_s1 + $0xb0] sm:$0xff]   ;;  %v904_v31 = vld [vmem:[%s1222_s1 + $0xb8] sm:$0xff]  }
   0xd   :  { %838 = vmatpush3.bf16.msra.mxu1 %v884_v11  ;;  %799 = vmatprep.subr.bf16.mxu0 %v885_v12  ;;  %v905_v32 = vld [vmem:[%s1223_s0] ss:$16 sps:$4 sm:$0xff]   ;;  %v907_v33 = vld [vmem:[%s1223_s0 + $0x4] ss:$16 sps:$4 sm:$0xff]   ;;  %v908_v34 = vld [vmem:[%s1223_s0 + $0x8] ss:$16 sps:$4 sm:$0xff]  }
   0xe   :  { %839 = vmatprep.subr.bf16.mxu1 %v886_v13  ;;  %v910_v35 = vld [vmem:[%s1223_s0 + $0xc] ss:$16 sps:$4 sm:$0xff]   ;;  %428 = vmatprep.mubr.bf16.mxu0 %v907_v33  ;;  %v911_v36 = vld [vmem:[%s1223_s0 + $0x24] ss:$16 sps:$4 sm:$0xff]   ;;  %v915_v38 = vld [vmem:[%s1223_s0 + $0x20] ss:$16 sps:$4 sm:$0xff]  }
   0xf   :  { %493 = vmatprep.mubr.bf16.mxu1 %v910_v35  ;;  %v913_v37 = vld [vmem:[%s1223_s0 + $0x2c] ss:$16 sps:$4 sm:$0xff]   ;;  %v916_v39 = vld [vmem:[%s1223_s0 + $0x28] ss:$16 sps:$4 sm:$0xff]   ;;  %v917_v40 = vld [vmem:[%s1223_s0 + $0x44] ss:$16 sps:$4 sm:$0xff]  }
  0x10   :  { %800 = vmatpush3.bf16.msra.mxu0 %v887_v14  ;;  %v919_v41 = vld [vmem:[%s1223_s0 + $0x4c] ss:$16 sps:$4 sm:$0xff]   ;;  %v921_v42 = vld [vmem:[%s1223_s0 + $0x40] ss:$16 sps:$4 sm:$0xff]   ;;  %v922_v43 = vld [vmem:[%s1223_s0 + $0x48] ss:$16 sps:$4 sm:$0xff]  }
  0x11   :  { %840 = vmatpush3.bf16.msra.mxu1 %v888_v15  ;;  %801 = vmatprep.subr.bf16.mxu0 %v889_v16  ;;  %v923_v44 = vld [vmem:[%s1223_s0 + $0x64] ss:$16 sps:$4 sm:$0xff]   ;;  %v925_v45 = vld [vmem:[%s1223_s0 + $0x6c] ss:$16 sps:$4 sm:$0xff]   ;;  %v927_v46 = vld [vmem:[%s1223_s0 + $0x60] ss:$16 sps:$4 sm:$0xff]  }
  0x12   :  { %841 = vmatprep.subr.bf16.mxu1 %v890_v17  ;;  %v928_v47 = vld [vmem:[%s1223_s0 + $0x68] ss:$16 sps:$4 sm:$0xff]  }
  0x13   :  { %v790_v11 = vld [vmem:[%s1224_s3 + $0x8] sm:$0xff]  }
  0x14   :  { %802 = vmatpush3.bf16.msra.mxu0 %v891_v18 }
  0x15   :  { %842 = vmatpush3.bf16.msra.mxu1 %v892_v19  ;;  %803 = vmatprep.subr.bf16.mxu0 %v893_v20  ;;  %v780_v20 = vunpack.c.l.bf16 %v790_v11 }
  0x16   :  { %843 = vmatprep.subr.bf16.mxu1 %v894_v21 }
  0x18   :  { %804 = vmatpush3.bf16.msra.mxu0 %v895_v22 }
  0x19   :  { %844 = vmatpush3.bf16.msra.mxu1 %v896_v23  ;;  %805 = vmatprep.subr.bf16.mxu0 %v897_v24 }
  0x1a   :  { %845 = vmatprep.subr.bf16.mxu1 %v898_v25 }
  0x1c   :  { %806 = vmatpush3.bf16.msra.mxu0 %v899_v26 }
  0x1d   :  { %846 = vmatpush3.bf16.msra.mxu1 %v900_v27  ;;  %807 = vmatprep.subr.bf16.mxu0 %v901_v28  ;;  %v781_v28 = vunpack.c.h.bf16 %v790_v11 }
  0x1e   :  { %847 = vmatprep.subr.bf16.mxu1 %v902_v29 }
  0x20   :  { %808 = vmatpush3.bf16.msra.mxu0 %v903_v30 }
  0x21   :  { %848 = vmatpush3.bf16.msra.mxu1 %v904_v31 }
  0x23   :  { %429 = vmatmul.mubr.bf16.vlgmr.msra.gmra.mrb[0].mxu0 %v905_v32  ;;  %v791_v32 = vld [vmem:[%s1224_s3 + $0x10] sm:$0xff]  }
  0x24   :  { %494 = vmatmul.mubr.bf16.vlgmr.msra.gmra.mrb[0].mxu1 %v908_v34  ;;  %436 = vmatprep.mubr.bf16.mxu0 %v911_v36 }
  0x25   :  { %501 = vmatprep.mubr.bf16.mxu1 %v913_v37 }
  0x2b   :  { %437 = vmatmul.mubr.bf16.gmra.mrb[4].mxu0 %v915_v38 }
  0x2c   :  { %502 = vmatmul.mubr.bf16.gmra.mrb[4].mxu1 %v916_v39  ;;  %444 = vmatprep.mubr.bf16.mxu0 %v917_v40 }
  0x2d   :  { %509 = vmatprep.mubr.bf16.mxu1 %v919_v41  ;;  %v784_v41 = vunpack.c.l.bf16 %v791_v32 }
  0x33   :  { %445 = vmatmul.mubr.bf16.gmra.mrb[8].mxu0 %v921_v42 }
  0x34   :  { %510 = vmatmul.mubr.bf16.gmra.mrb[8].mxu1 %v922_v43  ;;  %452 = vmatprep.mubr.bf16.mxu0 %v923_v44  ;;  %v785_v44 = vunpack.c.h.bf16 %v791_v32 }
  0x35   :  { %517 = vmatprep.mubr.bf16.mxu1 %v925_v45 }
  0x3b   :  { %453 = vmatmul.mubr.bf16.gmra.mrb[12].mxu0 %v927_v46 }
  0x3c   :  { %518 = vmatmul.mubr.bf16.gmra.mrb[12].mxu1 %v928_v47 }
  0xf6   :  { %v809_v48 = vpop.f32.mrb[0].mxu0 }
  0xf7   :  { %v849_v49 = vpop.f32.mrb[0].mxu1  ;;  %v810_v50 = vpop.f32.mrb[1].mxu0 }
  0xf8   :  { %v811_v51 = vadd.f32 %v810_v50, %v809_v48  ;;  %v850_v52 = vpop.f32.mrb[1].mxu1  ;;  %v812_v53 = vpop.f32.mrb[2].mxu0 }
  0xf9   :  { %v851_v55 = vadd.f32 %v850_v52, %v849_v49  ;;  %v852_v56 = vpop.f32.mrb[2].mxu1  ;;  %v813_v57 = vpop.f32.mrb[3].mxu0 }
  0xfa   :  { %v814_v58 = vadd.f32 %v813_v57, %v812_v53  ;;  %v853_v59 = vpop.f32.mrb[3].mxu1  ;;  %v792_v53 = vld [vmem:[%s1224_s3 + $0x18] sm:$0xff]  }
  0xfb   :  { %v496_v61 = vadd.f32 %v851_v55, %v811_v51  ;;  %v854_v62 = vadd.f32 %v853_v59, %v852_v56 }
  0xfd   :  { %v499_v0 = vadd.f32 %v854_v62, %v814_v58  ;;  %v560_v1 = vadd.f32 %v1130_v60, %v496_v61 }
  0xfe   :  { %v815_v2 = vpop.f32.mrb[4].mxu0 }
  0xff   :  { %v855_v3 = vpop.f32.mrb[4].mxu1  ;;  %v816_v4 = vpop.f32.mrb[5].mxu0  ;;  %v1133_v5 = vadd.f32 %v776_v63, %v560_v1  ;;  %v561_v6 = vadd.f32 %v1130_v60, %v499_v0  ;;  %v788_v63 = vunpack.c.l.bf16 %v792_v53 }
 0x100   :  { %v817_v8 = vadd.f32 %v816_v4, %v815_v2  ;;  %v856_v9 = vpop.f32.mrb[5].mxu1  ;;  %v818_v10 = vpop.f32.mrb[6].mxu0  ;;  %v789_v2 = vunpack.c.h.bf16 %v792_v53  ;;  %v773_v53 = vld [vmem:[%s1227_s5] ss:$0 sm:$0xff] }
 0x101   :  { %v857_v12 = vadd.f32 %v856_v9, %v855_v3  ;;  %v858_v13 = vpop.f32.mrb[6].mxu1  ;;  %592 = vadd.xlane.f32.xlu0 %v1133_v5  ;;  %v819_v14 = vpop.f32.mrb[7].mxu0  ;;  %v1140_v19 = vadd.f32 %v777_v7, %v561_v6 }
 0x102   :  { %v820_v15 = vadd.f32 %v819_v14, %v818_v10  ;;  %v859_v16 = vpop.f32.mrb[7].mxu1 }
 0x103   :  { %v504_v17 = vadd.f32 %v857_v12, %v817_v8  ;;  %v860_v18 = vadd.f32 %v859_v16, %v858_v13 }
 0x105   :  { %v507_v21 = vadd.f32 %v860_v18, %v820_v15  ;;  %594 = vadd.xlane.f32.xlu0 %v1140_v19  ;;  %v562_v22 = vadd.f32 %v1130_v60, %v504_v17 }
 0x106   :  { %v821_v23 = vpop.f32.mrb[8].mxu0 }
 0x107   :  { %v861_v24 = vpop.f32.mrb[8].mxu1  ;;  %v822_v25 = vpop.f32.mrb[9].mxu0  ;;  %v586_v26 = vadd.f32 %v780_v20, %v562_v22  ;;  %v563_v27 = vadd.f32 %v1130_v60, %v507_v21 }
 0x108   :  { %v823_v29 = vadd.f32 %v822_v25, %v821_v23  ;;  %v862_v30 = vpop.f32.mrb[9].mxu1  ;;  %v824_v31 = vpop.f32.mrb[10].mxu0 }
 0x109   :  { %v863_v33 = vadd.f32 %v862_v30, %v861_v24  ;;  %v864_v34 = vpop.f32.mrb[10].mxu1  ;;  %596 = vadd.xlane.f32.xlu1 %v586_v26  ;;  %v825_v35 = vpop.f32.mrb[11].mxu0  ;;  %v587_v40 = vadd.f32 %v781_v28, %v563_v27 }
 0x10a   :  { %v826_v36 = vadd.f32 %v825_v35, %v824_v31  ;;  %v865_v37 = vpop.f32.mrb[11].mxu1 }
 0x10b   :  { %v512_v38 = vadd.f32 %v863_v33, %v823_v29  ;;  %v866_v39 = vadd.f32 %v865_v37, %v864_v34 }
 0x10d   :  { %v515_v42 = vadd.f32 %v866_v39, %v826_v36  ;;  %598 = vadd.xlane.f32.xlu1 %v587_v40  ;;  %v564_v43 = vadd.f32 %v1130_v60, %v512_v38 }
 0x10e   :  { %v827_v45 = vpop.f32.mrb[12].mxu0 }
 0x10f   :  { %v867_v46 = vpop.f32.mrb[12].mxu1  ;;  %v828_v47 = vpop.f32.mrb[13].mxu0  ;;  %v588_v48 = vadd.f32 %v784_v41, %v564_v43  ;;  %v565_v49 = vadd.f32 %v1130_v60, %v515_v42 }
 0x110   :  { %v829_v50 = vadd.f32 %v828_v47, %v827_v45  ;;  %v868_v51 = vpop.f32.mrb[13].mxu1  ;;  %v830_v52 = vpop.f32.mrb[14].mxu0 }
 0x111   :  { %v869_v54 = vadd.f32 %v868_v51, %v867_v46  ;;  %v870_v55 = vpop.f32.mrb[14].mxu1  ;;  %600 = vadd.xlane.f32.xlu0 %v588_v48  ;;  %v831_v56 = vpop.f32.mrb[15].mxu0  ;;  %v589_v57 = vadd.f32 %v785_v44, %v565_v49  ;;  %v772_v49 = vld [vmem:[%s1226_s4] ss:$0 sm:$0xff] }
 0x112   :  { %v832_v58 = vadd.f32 %v831_v56, %v830_v52  ;;  %v871_v59 = vpop.f32.mrb[15].mxu1 }
 0x113   :  { %v520_v61 = vadd.f32 %v869_v54, %v829_v50  ;;  %v872_v62 = vadd.f32 %v871_v59, %v870_v55  ;;  %602 = vadd.xlane.f32.xlu1 %v589_v57 }
 0x115   :  { %v523_v0 = vadd.f32 %v872_v62, %v832_v58  ;;  %v566_v1 = vadd.f32 %v1130_v60, %v520_v61 }
 0x117   :  { %v590_v3 = vadd.f32 %v788_v63, %v566_v1  ;;  %v567_v4 = vadd.f32 %v1130_v60, %v523_v0 }
 0x119   :  { %604 = vadd.xlane.f32.xlu0 %v590_v3  ;;  %v591_v6 = vadd.f32 %v789_v2, %v567_v4 }
 0x11b   :  { %606 = vadd.xlane.f32.xlu1 %v591_v6 }
 0x18e   :  { %v593_v7 = vpop.xlane.xlu0 %592 }
 0x18f   :  { %v609_v8 = vmul.f32 0.0078125, %v593_v7 }
 0x191   :  { %v617_v9 = vsub.f32 %v1133_v5, %v609_v8 }
 0x192   :  { %v595_v10 = vpop.xlane.xlu0 %594 }
 0x193   :  { %v610_v11 = vmul.f32 0.0078125, %v595_v10  ;;  %v625_v12 = vmul.f32 %v617_v9, %v617_v9 }
 0x195   :  { %v1157_v13 = vsub.f32 %v1140_v19, %v610_v11  ;;  %633 = vadd.xlane.f32.xlu0 %v625_v12 }
 0x196   :  { %v597_v14 = vpop.xlane.xlu1 %596 }
 0x197   :  { %v611_v15 = vmul.f32 0.0078125, %v597_v14  ;;  %v626_v16 = vmul.f32 %v1157_v13, %v1157_v13 }
 0x199   :  { %v1161_v60 = vsub.f32 %v586_v26, %v611_v15  ;;  %635 = vadd.xlane.f32.xlu1 %v626_v16 }
 0x19a   :  { %v599_v17 = vpop.xlane.xlu1 %598 }
 0x19b   :  { %v612_v18 = vmul.f32 0.0078125, %v599_v17  ;;  %v627_v5 = vmul.f32 %v1161_v60, %v1161_v60 }
 0x19d   :  { %v1165_v20 = vsub.f32 %v587_v40, %v612_v18  ;;  %637 = vadd.xlane.f32.xlu0 %v627_v5 }
 0x19e   :  { %v601_v21 = vpop.xlane.xlu0 %600 }
 0x19f   :  { %v613_v19 = vmul.f32 0.0078125, %v601_v21  ;;  %v628_v22 = vmul.f32 %v1165_v20, %v1165_v20 }
 0x1a0   :  { %v603_v23 = vpop.xlane.xlu1 %602 }
 0x1a1   :  { %v1169_v24 = vsub.f32 %v588_v48, %v613_v19  ;;  %v614_v25 = vmul.f32 0.0078125, %v603_v23  ;;  %639 = vadd.xlane.f32.xlu1 %v628_v22 }
 0x1a3   :  { %v1171_v26 = vsub.f32 %v589_v57, %v614_v25  ;;  %v629_v27 = vmul.f32 %v1169_v24, %v1169_v24 }
 0x1a5   :  { %641 = vadd.xlane.f32.xlu0 %v629_v27  ;;  %v630_v28 = vmul.f32 %v1171_v26, %v1171_v26 }
 0x1a6   :  { %v605_v29 = vpop.xlane.xlu0 %604 }
 0x1a7   :  { %v615_v30 = vmul.f32 0.0078125, %v605_v29  ;;  %643 = vadd.xlane.f32.xlu1 %v630_v28 }
 0x1a8   :  { %v607_v31 = vpop.xlane.xlu1 %606 }
 0x1a9   :  { %v1177_v32 = vsub.f32 %v590_v3, %v615_v30  ;;  %v616_v33 = vmul.f32 0.0078125, %v607_v31 }
 0x1ab   :  { %v1179_v34 = vsub.f32 %v591_v6, %v616_v33  ;;  %v631_v35 = vmul.f32 %v1177_v32, %v1177_v32 }
 0x1ad   :  { %645 = vadd.xlane.f32.xlu0 %v631_v35  ;;  %v632_v36 = vmul.f32 %v1179_v34, %v1179_v34 }
 0x1af   :  { %647 = vadd.xlane.f32.xlu1 %v632_v36 }
 0x222   :  { %v634_v37 = vpop.xlane.xlu0 %633 }
 0x223   :  { %v649_v38 = vmul.f32 0.0078125, %v634_v37 }
 0x225   :  { %v657_v39 = vadd.f32 1e-05, %v649_v38 }
 0x226   :  { %v636_v40 = vpop.xlane.xlu1 %635 }
 0x227   :  { %929 = vrsqrt.f32 %v657_v39  ;;  %v650_v41 = vmul.f32 0.0078125, %v636_v40 }
 0x229   :  { %v658_v42 = vadd.f32 1e-05, %v650_v41 }
 0x22a   :  { %v638_v43 = vpop.xlane.xlu0 %637 }
 0x22b   :  { %931 = vrsqrt.f32 %v658_v42  ;;  %v651_v44 = vmul.f32 0.0078125, %v638_v43 }
 0x22d   :  { %v659_v45 = vadd.f32 1e-05, %v651_v44 }
 0x22e   :  { %v640_v46 = vpop.xlane.xlu1 %639 }
 0x22f   :  { %933 = vrsqrt.f32 %v659_v45  ;;  %v652_v47 = vmul.f32 0.0078125, %v640_v46 }
 0x231   :  { %v930_v48 = vpop.eup %929  ;;  %v660_v50 = vadd.f32 1e-05, %v652_v47 }
 0x232   :  { %v673_v51 = vmul.f32 %v930_v48, %v617_v9  ;;  %v642_v52 = vpop.xlane.xlu0 %641 }
 0x233   :  { %935 = vrsqrt.f32 %v660_v50  ;;  %v653_v54 = vmul.f32 0.0078125, %v642_v52 }
 0x234   :  { %v688_v55 = vmul.f32 %v772_v49, %v673_v51  ;;  %v644_v56 = vpop.xlane.xlu1 %643 }
 0x235   :  { %v932_v57 = vpop.eup %931  ;;  %v661_v58 = vadd.f32 1e-05, %v653_v54  ;;  %v654_v59 = vmul.f32 0.0078125, %v644_v56 }
 0x236   :  { %v703_v61 = vadd.f32 %v773_v53, %v688_v55  ;;  %v674_v62 = vmul.f32 %v932_v57, %v1157_v13 }
 0x237   :  { %937 = vrsqrt.f32 %v661_v58  ;;  %v662_v63 = vadd.f32 1e-05, %v654_v59 }
 0x238   :  { %711 = vst [vmem:[%s1228_s6] sm:$0xff] %v703_v61  ;;  %v689_v0 = vmul.f32 %v772_v49, %v674_v62 }
 0x239   :  { %v934_v1 = vpop.eup %933  ;;  %939 = vrsqrt.f32 %v662_v63 }
 0x23a   :  { %v704_v2 = vadd.f32 %v773_v53, %v689_v0  ;;  %v675_v3 = vmul.f32 %v934_v1, %v1161_v60  ;;  %v646_v4 = vpop.xlane.xlu0 %645 }
 0x23b   :  { %v655_v6 = vmul.f32 0.0078125, %v646_v4 }
 0x23c   :  { %712 = vst [vmem:[%s1228_s6 + $0x8] sm:$0xff] %v704_v2  ;;  %v690_v7 = vmul.f32 %v772_v49, %v675_v3  ;;  %v648_v8 = vpop.xlane.xlu1 %647 }
 0x23d   :  { %v936_v9 = vpop.eup %935  ;;  %v663_v10 = vadd.f32 1e-05, %v655_v6  ;;  %v656_v11 = vmul.f32 0.0078125, %v648_v8 }
 0x23e   :  { %v705_v12 = vadd.f32 %v773_v53, %v690_v7  ;;  %v676_v13 = vmul.f32 %v936_v9, %v1165_v20 }
 0x23f   :  { %941 = vrsqrt.f32 %v663_v10  ;;  %v664_v14 = vadd.f32 1e-05, %v656_v11 }
 0x240   :  { %713 = vst [vmem:[%s1228_s6 + $0x10] sm:$0xff] %v705_v12  ;;  %v691_v15 = vmul.f32 %v772_v49, %v676_v13 }
 0x241   :  { %v938_v16 = vpop.eup %937  ;;  %943 = vrsqrt.f32 %v664_v14 }
 0x242   :  { %v706_v60 = vadd.f32 %v773_v53, %v691_v15  ;;  %v677_v17 = vmul.f32 %v938_v16, %v1169_v24 }
 0x243   :  { %v940_v18 = vpop.eup %939 }
 0x244   :  { %714 = vst [vmem:[%s1228_s6 + $0x18] sm:$0xff] %v706_v60  ;;  %v692_v5 = vmul.f32 %v772_v49, %v677_v17  ;;  %v678_v20 = vmul.f32 %v940_v18, %v1171_v26 }
 0x246   :  { %v707_v21 = vadd.f32 %v773_v53, %v692_v5  ;;  %v693_v19 = vmul.f32 %v772_v49, %v678_v20 }
 0x248   :  { %715 = vst [vmem:[%s1228_s6 + $0x20] sm:$0xff] %v707_v21  ;;  %v708_v22 = vadd.f32 %v773_v53, %v693_v19 }
 0x249   :  { %v942_v23 = vpop.eup %941 }
 0x24a   :  { %716 = vst [vmem:[%s1228_s6 + $0x28] sm:$0xff] %v708_v22  ;;  %v679_v24 = vmul.f32 %v942_v23, %v1177_v32 }
 0x24b   :  { %v944_v25 = vpop.eup %943 }
 0x24c   :  { %v694_v27 = vmul.f32 %v772_v49, %v679_v24  ;;  %v680_v28 = vmul.f32 %v944_v25, %v1179_v34 }
 0x24e   :  { %v709_v29 = vadd.f32 %v773_v53, %v694_v27  ;;  %v695_v26 = vmul.f32 %v772_v49, %v680_v28 }
 0x250   :  { %717 = vst [vmem:[%s1228_s6 + $0x30] sm:$0xff] %v709_v29  ;;  %v710_v30 = vadd.f32 %v773_v53, %v695_v26 }
 0x252   :  { %718 = vst [vmem:[%s1228_s6 + $0x38] sm:$0xff] %v710_v30 }

// kernel: transformer_encoder_layer.9
= control target key start
LH: loop header
LB: loop body
LE: loop exit
PB: predicated region body
PF: predicated region fallthrough
CT: control target
= control target key end

     0   :  { %s846_s0 = inlined_call_operand.vmem [shape: bf16[64,256], index: 0, kind: input, shape index: {}]   ;;  %s847_s1 = inlined_call_operand.vmem [shape: bf16[256,128], index: 1, kind: input, shape index: {}]   ;;  %s848_s2 = inlined_call_operand.vmem [shape: f32[1,128], index: 2, kind: input, shape index: {}]   ;;  %s849_s3 = inlined_call_operand.vmem [shape: bf16[64,128], index: 3, kind: input, shape index: {}]   ;;  %s850_s4 = inlined_call_operand.vmem [shape: f32[1,128], index: 4, kind: input, shape index: {}]   ;;  %s851_s5 = inlined_call_operand.vmem [shape: f32[1,128], index: 5, kind: input, shape index: {}]   ;;  %s852_s6 = inlined_call_operand.hbm [shape: f32[64,128], index: 6, kind: output, shape index: {}]  }
   0x1   :  { %v600_v0 = vld [vmem:[%s847_s1 + $0x40] sm:$0xff]   ;;  %v602_v2 = vld [vmem:[%s847_s1 + $0x48] sm:$0xff]   ;;  %v604_v4 = vld [vmem:[%s847_s1 + $0x50] sm:$0xff]  }
   0x2   :  { %v601_v1 = vld [vmem:[%s847_s1] sm:$0xff]   ;;  %541 = vmatprep.subr.bf16.mxu0 %v600_v0  ;;  %581 = vmatprep.subr.bf16.mxu1 %v600_v0  ;;  %v603_v3 = vld [vmem:[%s847_s1 + $0x8] sm:$0xff]   ;;  %v605_v5 = vld [vmem:[%s847_s1 + $0x10] sm:$0xff]  }
   0x3   :  { %542 = vmatpush3.bf16.msra.mxu0 %v601_v1  ;;  %589 = vmatpush3.bf16.msra.mxu1 %v601_v1  ;;  %v606_v6 = vld [vmem:[%s847_s1 + $0x58] sm:$0xff]   ;;  %v608_v8 = vld [vmem:[%s847_s1 + $0x60] sm:$0xff]   ;;  %v610_v10 = vld [vmem:[%s847_s1 + $0x68] sm:$0xff]  }
   0x4   :  { %543 = vmatprep.subr.bf16.mxu0 %v602_v2  ;;  %582 = vmatprep.subr.bf16.mxu1 %v602_v2  ;;  %v607_v7 = vld [vmem:[%s847_s1 + $0x18] sm:$0xff]   ;;  %v609_v9 = vld [vmem:[%s847_s1 + $0x20] sm:$0xff]   ;;  %v611_v13 = vld [vmem:[%s847_s1 + $0x28] sm:$0xff]  }
   0x5   :  { %v618_v11 = vld [vmem:[%s846_s0 + $0x4] ss:$8 sps:$4 sm:$0xff]   ;;  %v612_v14 = vld [vmem:[%s847_s1 + $0x70] sm:$0xff]  }
   0x6   :  { %v621_v12 = vld [vmem:[%s846_s0 + $0x24] ss:$8 sps:$4 sm:$0xff]   ;;  %253 = vmatprep.mubr.bf16.mxu0 %v618_v11 }
   0x7   :  { %544 = vmatpush3.bf16.msra.mxu0 %v603_v3  ;;  %590 = vmatpush3.bf16.msra.mxu1 %v603_v3 }
   0x8   :  { %545 = vmatprep.subr.bf16.mxu0 %v604_v4  ;;  %583 = vmatprep.subr.bf16.mxu1 %v604_v4 }
   0x9   :  { %269 = vmatprep.mubr.bf16.mxu1 %v621_v12 }
   0xb   :  { %546 = vmatpush3.bf16.msra.mxu0 %v605_v5  ;;  %591 = vmatpush3.bf16.msra.mxu1 %v605_v5 }
   0xc   :  { %547 = vmatprep.subr.bf16.mxu0 %v606_v6  ;;  %584 = vmatprep.subr.bf16.mxu1 %v606_v6 }
   0xf   :  { %548 = vmatpush3.bf16.msra.mxu0 %v607_v7  ;;  %592 = vmatpush3.bf16.msra.mxu1 %v607_v7 }
  0x10   :  { %549 = vmatprep.subr.bf16.mxu0 %v608_v8  ;;  %585 = vmatprep.subr.bf16.mxu1 %v608_v8 }
  0x13   :  { %550 = vmatpush3.bf16.msra.mxu0 %v609_v9  ;;  %593 = vmatpush3.bf16.msra.mxu1 %v609_v9 }
  0x14   :  { %551 = vmatprep.subr.bf16.mxu0 %v610_v10  ;;  %586 = vmatprep.subr.bf16.mxu1 %v610_v10 }
  0x15   :  { %11 = vsyncpa [#allocation4], 0  ;;  %v613_v15 = vld [vmem:[%s847_s1 + $0x30] sm:$0xff]   ;;  %v614_v16 = vld [vmem:[%s847_s1 + $0x78] sm:$0xff]  }
  0x16   :  { %v615_v17 = vld [vmem:[%s847_s1 + $0x38] sm:$0xff]   ;;  %v616_v18 = vld [vmem:[%s846_s0] ss:$8 sps:$4 sm:$0xff]   ;;  %v539_v27 = vld [vmem:[%s849_s3 + $0x10] sm:$0xff]  }
  0x17   :  { %552 = vmatpush3.bf16.msra.mxu0 %v611_v13  ;;  %594 = vmatpush3.bf16.msra.mxu1 %v611_v13  ;;  %v619_v19 = vld [vmem:[%s846_s0 + $0x20] ss:$8 sps:$4 sm:$0xff]   ;;  %v622_v20 = vld [vmem:[%s846_s0 + $0x14] ss:$8 sps:$4 sm:$0xff]   ;;  %v624_v22 = vld [vmem:[%s846_s0 + $0x10] ss:$8 sps:$4 sm:$0xff]   ;;  %v533_v38 = vunpack.c.h.bf16 %v539_v27  ;;  %v532_v39 = vunpack.c.l.bf16 %v539_v27 }
  0x18   :  { %553 = vmatprep.subr.bf16.mxu0 %v612_v14  ;;  %587 = vmatprep.subr.bf16.mxu1 %v612_v14  ;;  %v625_v21 = vld [vmem:[%s846_s0 + $0x34] ss:$8 sps:$4 sm:$0xff]   ;;  %v627_v23 = vld [vmem:[%s846_s0 + $0x30] ss:$8 sps:$4 sm:$0xff]   ;;  %v523_v24 = vld [vmem:[%s849_s3] sm:$0xff]  }
  0x19   :  { %v519_v29 = vld [vmem:[%s848_s2] ss:$0 sm:$0xff]  ;;  %v524_v35 = vunpack.c.l.bf16 %v523_v24  ;;  %v538_v46 = vld [vmem:[%s849_s3 + $0x8] sm:$0xff]   ;;  %v540_v51 = vld [vmem:[%s849_s3 + $0x18] sm:$0xff]   ;;  %v525_v54 = vunpack.c.h.bf16 %v523_v24 }
  0x1a   :  { %v528_v60 = vunpack.c.l.bf16 %v538_v46  ;;  %v529_v63 = vunpack.c.h.bf16 %v538_v46  ;;  %v536_v0 = vunpack.c.l.bf16 %v540_v51  ;;  %v537_v11 = vunpack.c.h.bf16 %v540_v51 }
  0x1b   :  { %554 = vmatpush3.bf16.msra.mxu0 %v613_v15  ;;  %595 = vmatpush3.bf16.msra.mxu1 %v613_v15 }
  0x1c   :  { %555 = vmatprep.subr.bf16.mxu0 %v614_v16  ;;  %588 = vmatprep.subr.bf16.mxu1 %v614_v16 }
  0x1f   :  { %556 = vmatpush3.bf16.msra.mxu0 %v615_v17  ;;  %596 = vmatpush3.bf16.msra.mxu1 %v615_v17 }
  0x22   :  { %254 = vmatmul.mubr.bf16.vlgmr.msra.gmra.mrb[0].mxu0 %v616_v18  ;;  %270 = vmatmul.mubr.bf16.vlgmr.msra.gmra.mrb[0].mxu1 %v619_v19 }
  0x23   :  { %261 = vmatprep.mubr.bf16.mxu0 %v622_v20  ;;  %277 = vmatprep.mubr.bf16.mxu1 %v625_v21 }
  0x2a   :  { %262 = vmatmul.mubr.bf16.gmra.mrb[4].mxu0 %v624_v22  ;;  %278 = vmatmul.mubr.bf16.gmra.mrb[4].mxu1 %v627_v23 }
  0xf5   :  { %v557_v25 = vpop.f32.mrb[0].mxu0  ;;  %v569_v26 = vpop.f32.mrb[0].mxu1 }
  0xf6   :  { %v558_v28 = vpop.f32.mrb[1].mxu0  ;;  %v570_v30 = vpop.f32.mrb[1].mxu1 }
  0xf7   :  { %v559_v31 = vadd.f32 %v558_v28, %v557_v25  ;;  %v571_v32 = vadd.f32 %v570_v30, %v569_v26  ;;  %v560_v33 = vpop.f32.mrb[2].mxu0  ;;  %v572_v34 = vpop.f32.mrb[2].mxu1 }
  0xf8   :  { %v561_v36 = vpop.f32.mrb[3].mxu0  ;;  %v573_v37 = vpop.f32.mrb[3].mxu1 }
  0xf9   :  { %v320_v40 = vadd.f32 %v559_v31, %v519_v29  ;;  %v324_v41 = vadd.f32 %v571_v32, %v519_v29  ;;  %v562_v42 = vadd.f32 %v561_v36, %v560_v33  ;;  %v574_v43 = vadd.f32 %v573_v37, %v572_v34 }
  0xfb   :  { %v325_v44 = vadd.f32 %v574_v43, %v519_v29  ;;  %v344_v45 = vadd.f32 %v524_v35, %v320_v40  ;;  %v348_v50 = vadd.f32 %v532_v39, %v324_v41  ;;  %v321_v55 = vadd.f32 %v562_v42, %v519_v29 }
  0xfd   :  { %v563_v47 = vpop.f32.mrb[4].mxu0  ;;  %352 = vadd.xlane.f32.xlu0 %v344_v45  ;;  %v349_v48 = vadd.f32 %v533_v38, %v325_v44  ;;  %v575_v49 = vpop.f32.mrb[4].mxu1  ;;  %v345_v7 = vadd.f32 %v525_v54, %v321_v55 }
  0xfe   :  { %v564_v52 = vpop.f32.mrb[5].mxu0  ;;  %v576_v53 = vpop.f32.mrb[5].mxu1 }
  0xff   :  { %v565_v56 = vadd.f32 %v564_v52, %v563_v47  ;;  %362 = vadd.xlane.f32.xlu1 %v349_v48  ;;  %v566_v57 = vpop.f32.mrb[6].mxu0  ;;  %v577_v58 = vadd.f32 %v576_v53, %v575_v49  ;;  %v578_v59 = vpop.f32.mrb[6].mxu1 }
 0x100   :  { %v567_v61 = vpop.f32.mrb[7].mxu0  ;;  %v579_v62 = vpop.f32.mrb[7].mxu1 }
 0x101   :  { %v322_v1 = vadd.f32 %v565_v56, %v519_v29  ;;  %v568_v2 = vadd.f32 %v567_v61, %v566_v57  ;;  %360 = vadd.xlane.f32.xlu0 %v348_v50  ;;  %v326_v3 = vadd.f32 %v577_v58, %v519_v29  ;;  %v580_v4 = vadd.f32 %v579_v62, %v578_v59  ;;  %v520_v62 = vld [vmem:[%s850_s4] ss:$0 sm:$0xff]  ;;  %s668_s4 = smov [#allocation3]  }
 0x103   :  { %v323_v5 = vadd.f32 %v568_v2, %v519_v29  ;;  %v346_v6 = vadd.f32 %v528_v60, %v322_v1  ;;  %v327_v8 = vadd.f32 %v580_v4, %v519_v29  ;;  %v350_v10 = vadd.f32 %v536_v0, %v326_v3  ;;  %v521_v3 = vld [vmem:[%s851_s5] ss:$0 sm:$0xff]  ;;  %s484_s5 = sshll.u32 %s668_s4, 4  ;;  %s485_s5 = int_to_ptr.vmem [resolvable:$true] %s484_s5 }
 0x104   :  { %s644_s7 = scalar_lea.vmem %s485_s5, 1024  ;;  %p649_p1 = scmp.lt.s32.totalorder %s485_s5, %s485_s5 }
 0x105   :  { %356 = vadd.xlane.f32.xlu1 %v346_v6  ;;  %354 = vadd.xlane.f32.xlu0 %v345_v7  ;;  %v347_v9 = vadd.f32 %v529_v63, %v323_v5  ;;  %v351_v12 = vadd.f32 %v537_v11, %v327_v8  ;;  %p645_p0 = scmp.ne.s32.totalorder %s485_s5, %s644_s7  ;;  %p650_p2 = scmp.lt.s32.totalorder %s644_s7, %s644_s7 }
 0x107   :  { %p651_p3 = por %p650_p2, %p649_p1 }
 0x109   :  { %358 = vadd.xlane.f32.xlu1 %v347_v9  ;;  %364 = vadd.xlane.f32.xlu0 %v350_v10  ;;  %p652_p4 = pnand %p651_p3, %p645_p0 }
 0x10d   :  { %366 = vadd.xlane.f32.xlu1 %v351_v12 }
 0x18a   :  { %v353_v13 = vpop.xlane.xlu0 %352 }
 0x18b   :  { %v369_v14 = vmul.f32 0.0078125, %v353_v13 }
 0x18c   :  { %v363_v16 = vpop.xlane.xlu1 %362 }
 0x18d   :  { %v377_v15 = vsub.f32 %v344_v45, %v369_v14  ;;  %v374_v21 = vmul.f32 0.0078125, %v363_v16 }
 0x18e   :  { %v361_v17 = vpop.xlane.xlu0 %360 }
 0x18f   :  { %v373_v18 = vmul.f32 0.0078125, %v361_v17  ;;  %v385_v19 = vmul.f32 %v377_v15, %v377_v15  ;;  %v801_v29 = vsub.f32 %v349_v48, %v374_v21 }
 0x191   :  { %v793_v20 = vsub.f32 %v348_v50, %v373_v18  ;;  %393 = vadd.xlane.f32.xlu0 %v385_v19  ;;  %v390_v40 = vmul.f32 %v801_v29, %v801_v29 }
 0x192   :  { %v357_v22 = vpop.xlane.xlu1 %356  ;;  %v355_v23 = vpop.xlane.xlu0 %354 }
 0x193   :  { %v371_v24 = vmul.f32 0.0078125, %v357_v22  ;;  %v370_v25 = vmul.f32 0.0078125, %v355_v23  ;;  %v389_v26 = vmul.f32 %v793_v20, %v793_v20 }
 0x195   :  { %v797_v27 = vsub.f32 %v346_v6, %v371_v24  ;;  %v799_v28 = vsub.f32 %v345_v7, %v370_v25  ;;  %401 = vadd.xlane.f32.xlu0 %v389_v26 }
 0x196   :  { %v359_v30 = vpop.xlane.xlu1 %358  ;;  %v365_v31 = vpop.xlane.xlu0 %364 }
 0x197   :  { %v372_v32 = vmul.f32 0.0078125, %v359_v30  ;;  %v375_v33 = vmul.f32 0.0078125, %v365_v31  ;;  %v387_v34 = vmul.f32 %v797_v27, %v797_v27  ;;  %v386_v35 = vmul.f32 %v799_v28, %v799_v28 }
 0x199   :  { %v807_v36 = vsub.f32 %v350_v10, %v375_v33  ;;  %397 = vadd.xlane.f32.xlu0 %v387_v34  ;;  %395 = vadd.xlane.f32.xlu1 %v386_v35  ;;  %v809_v38 = vsub.f32 %v347_v9, %v372_v32 }
 0x19a   :  { %v367_v37 = vpop.xlane.xlu1 %366 }
 0x19b   :  { %v376_v39 = vmul.f32 0.0078125, %v367_v37  ;;  %v391_v41 = vmul.f32 %v807_v36, %v807_v36  ;;  %v388_v43 = vmul.f32 %v809_v38, %v809_v38 }
 0x19d   :  { %403 = vadd.xlane.f32.xlu1 %v390_v40  ;;  %405 = vadd.xlane.f32.xlu0 %v391_v41  ;;  %v815_v42 = vsub.f32 %v351_v12, %v376_v39 }
 0x19f   :  { %v392_v44 = vmul.f32 %v815_v42, %v815_v42 }
 0x1a1   :  { %399 = vadd.xlane.f32.xlu1 %v388_v43 }
 0x1a5   :  { %407 = vadd.xlane.f32.xlu1 %v392_v44 }
 0x21e   :  { %v394_v45 = vpop.xlane.xlu0 %393 }
 0x21f   :  { %v409_v46 = vmul.f32 0.0078125, %v394_v45 }
 0x221   :  { %v417_v47 = vadd.f32 1e-05, %v409_v46 }
 0x222   :  { %v402_v48 = vpop.xlane.xlu0 %401 }
 0x223   :  { %628 = vrsqrt.f32 %v417_v47  ;;  %v413_v49 = vmul.f32 0.0078125, %v402_v48 }
 0x225   :  { %v421_v50 = vadd.f32 1e-05, %v413_v49 }
 0x226   :  { %v396_v51 = vpop.xlane.xlu1 %395  ;;  %v398_v52 = vpop.xlane.xlu0 %397 }
 0x227   :  { %630 = vrsqrt.f32 %v421_v50  ;;  %v410_v53 = vmul.f32 0.0078125, %v396_v51  ;;  %v411_v54 = vmul.f32 0.0078125, %v398_v52 }
 0x229   :  { %v418_v55 = vadd.f32 1e-05, %v410_v53  ;;  %v419_v56 = vadd.f32 1e-05, %v411_v54 }
 0x22a   :  { %v404_v57 = vpop.xlane.xlu1 %403  ;;  %v406_v58 = vpop.xlane.xlu0 %405 }
 0x22b   :  { %632 = vrsqrt.f32 %v418_v55  ;;  %v414_v59 = vmul.f32 0.0078125, %v404_v57  ;;  %v415_v60 = vmul.f32 0.0078125, %v406_v58 }
 0x22c   :  { %634 = vrsqrt.f32 %v419_v56 }
 0x22d   :  { %v629_v61 = vpop.eup %628  ;;  %v422_v63 = vadd.f32 1e-05, %v414_v59  ;;  %v423_v0 = vadd.f32 1e-05, %v415_v60 }
 0x22e   :  { %v433_v1 = vmul.f32 %v629_v61, %v377_v15  ;;  %v400_v2 = vpop.xlane.xlu1 %399 }
 0x22f   :  { %636 = vrsqrt.f32 %v422_v63  ;;  %v412_v4 = vmul.f32 0.0078125, %v400_v2 }
 0x230   :  { %v448_v5 = vmul.f32 %v520_v62, %v433_v1  ;;  %638 = vrsqrt.f32 %v423_v0 }
 0x231   :  { %v631_v6 = vpop.eup %630  ;;  %v420_v7 = vadd.f32 1e-05, %v412_v4 }
 0x232   :  { %v463_v8 = vadd.f32 %v521_v3, %v448_v5  ;;  %v437_v9 = vmul.f32 %v631_v6, %v793_v20  ;;  %v408_v10 = vpop.xlane.xlu1 %407 }
 0x233   :  { %640 = vrsqrt.f32 %v420_v7  ;;  %v416_v11 = vmul.f32 0.0078125, %v408_v10 }
 0x234   :  { %471 = vst [vmem:[#allocation3] sm:$0xff] %v463_v8  ;;  %v452_v12 = vmul.f32 %v520_v62, %v437_v9 }
 0x235   :  { %v633_v13 = vpop.eup %632  ;;  %v424_v14 = vadd.f32 1e-05, %v416_v11 }
 0x236   :  { %v635_v15 = vpop.eup %634  ;;  %v467_v16 = vadd.f32 %v521_v3, %v452_v12  ;;  %v434_v17 = vmul.f32 %v633_v13, %v799_v28 }
 0x237   :  { %v435_v18 = vmul.f32 %v635_v15, %v797_v27  ;;  %642 = vrsqrt.f32 %v424_v14 }
 0x238   :  { %475 = vst [vmem:[#allocation3 + $0x20] sm:$0xff] %v467_v16  ;;  %v449_v19 = vmul.f32 %v520_v62, %v434_v17 }
 0x239   :  { %v637_v21 = vpop.eup %636  ;;  %v450_v22 = vmul.f32 %v520_v62, %v435_v18 }
 0x23a   :  { %v639_v23 = vpop.eup %638  ;;  %v464_v20 = vadd.f32 %v521_v3, %v449_v19  ;;  %v438_v24 = vmul.f32 %v637_v21, %v801_v29 }
 0x23b   :  { %v465_v25 = vadd.f32 %v521_v3, %v450_v22  ;;  %v439_v26 = vmul.f32 %v639_v23, %v807_v36 }
 0x23c   :  { %472 = vst [vmem:[#allocation3 + $0x8] sm:$0xff] %v464_v20  ;;  %v453_v30 = vmul.f32 %v520_v62, %v438_v24 }
 0x23d   :  { %v641_v31 = vpop.eup %640  ;;  %473 = vst [vmem:[#allocation3 + $0x10] sm:$0xff] %v465_v25  ;;  %v454_v32 = vmul.f32 %v520_v62, %v439_v26 }
 0x23e   :  { %v468_v28 = vadd.f32 %v521_v3, %v453_v30  ;;  %v436_v27 = vmul.f32 %v641_v31, %v809_v38 }
 0x23f   :  { %v469_v33 = vadd.f32 %v521_v3, %v454_v32 }
 0x240   :  { %476 = vst [vmem:[#allocation3 + $0x28] sm:$0xff] %v468_v28  ;;  %v451_v34 = vmul.f32 %v520_v62, %v436_v27 }
 0x241   :  { %v643_v35 = vpop.eup %642  ;;  %477 = vst [vmem:[#allocation3 + $0x30] sm:$0xff] %v469_v33 }
 0x242   :  { %v466_v37 = vadd.f32 %v521_v3, %v451_v34  ;;  %v440_v39 = vmul.f32 %v643_v35, %v815_v42 }
 0x244   :  { %474 = vst [vmem:[#allocation3 + $0x18] sm:$0xff] %v466_v37  ;;  %v455_v29 = vmul.f32 %v520_v62, %v440_v39 }
 0x246   :  { %v470_v36 = vadd.f32 %v521_v3, %v455_v29 }
 0x248   :  { %478 = vst [vmem:[#allocation3 + $0x38] sm:$0xff] %v470_v36 }
 0x249   :  { %655 = shalt.err (!%p652_p4)
}
 0x24a   :  { %s656_s10 = scalar_lea.hbm %s852_s6, 1024 }
 0x24b   :  { %p657_p5 = scmp.ne.s32.totalorder %s852_s6, %s656_s10  ;;  %p660_p6 = scmp.lt.u32.totalorder %s656_s10, %s852_s6 }
 0x24d   :  { %p662_p7 = pnand %p660_p6, %p657_p5 }
 0x24f   :  { %665 = shalt.err (!%p662_p7)
}
 0x250   :  { %s669_s15 = smov 128   ;;  %s670_s16 = smov 8  }
 0x251   :  { %490 = dma.vmem_to_hbm [thread:$0]  %s485_s5, 1024, %s852_s6, [#allocation4], %s669_s15, %s669_s15, %s670_s16  }
 0x252   :  { %666 = dma.done.wait [#allocation4], 1024  }
 0x253   :  { %667 = vsyncadd [#allocation4], 4294966272 }
 0x254   :  { %494 = vsyncpa [#allocation4], 1 }

</bundles_post_ra>
